<compile_context>
chip_gen: v6e
topology: v6e:2x2x1
jax: 0.10.0
libtpu: 0.0.40
codegen_flags: <defaults>
</compile_context>

<pallas_src>
import jax
import jax.numpy as jnp
import numpy as np
from jax.experimental import pallas as pl
from jax.experimental.pallas import tpu as pltpu

# --------------------------- model hyper-parameters -------------------------
IMAGE_H, IMAGE_W = 24, 40                     # 3x5 = 15 patches
PATCH = 8
CHANNELS = 3
PATCH_DIM = CHANNELS * PATCH * PATCH          # 192
PATCH_DIM_PAD = 256                           # zero-padded -> vreg/MXU aligned K
NUM_PATCHES = (IMAGE_H // PATCH) * (IMAGE_W // PATCH)  # 15
N_TOK = NUM_PATCHES + 1                       # 16 tokens (CLS + patches)
DIM = 128
DEPTH = 2
HEADS = 2
DIM_HEAD = 64
INNER = HEADS * DIM_HEAD                      # 128
MLP_DIM = 256
NUM_CLASSES = 16
BATCH = 8                                     # BN = 128 rows -> full MXU row usage
BN = BATCH * N_TOK
SCALE = DIM_HEAD ** -0.5
LN_EPS = 1e-5


# ------------------------------ shared helpers -------------------------------
def _layer_norm(x, g, b):
    mu = jnp.mean(x, axis=-1, keepdims=True)
    xc = x - mu
    var = jnp.mean(xc * xc, axis=-1, keepdims=True)
    return xc * jax.lax.rsqrt(var + LN_EPS) * g + b


def rearrange_patches(img):
    # 'b c (h p1) (w p2) -> b (h w) (p1 p2 c)'
    B, C, H, W = img.shape
    hh, ww = H // PATCH, W // PATCH
    x = img.reshape(B, C, hh, PATCH, ww, PATCH)
    x = jnp.transpose(x, (0, 2, 4, 3, 5, 1))          # b h w p1 p2 c
    return x.reshape(B, hh * ww, PATCH * PATCH * C)


# ------------------------------- fused kernel --------------------------------
def _vit_kernel(xin_ref, addv_ref, patch_w_ref,
                ln1_g_ref, ln1_b_ref, qkv_w_ref, proj_w_ref, proj_b_ref,
                ln2_g_ref, ln2_b_ref, ff_w1_ref, ff_b1_ref, ff_w2_ref, ff_b2_ref,
                hln_g_ref, hln_b_ref, head_w_ref, head_b_ref,
                out_ref, x_scratch):
    f32 = jnp.float32
    bf16 = jnp.bfloat16
    l = pl.program_id(0)

    # ---- patch embedding (only on the first grid step) ----------------------
    @pl.when(l == 0)
    def _():
        pe = jnp.dot(xin_ref[...], patch_w_ref[...], preferred_element_type=f32)
        # addv holds (cls + pos[0]) on row 0, (patch_bias + pos[i]) on patch rows;
        # broadcast over the batch inside the kernel.
        pe = pe.reshape(BATCH, N_TOK, DIM) + addv_ref[...]
        x_scratch[...] = pe.reshape(BN, DIM)

    x = x_scratch[...]                                              # (BN, DIM) f32

    # ---- PreNorm + multi-head scaled-dot attention + residual ---------------
    h = _layer_norm(x, ln1_g_ref[0], ln1_b_ref[0])
    hb = h.astype(bf16)
    att = jnp.zeros((BN, DIM), f32)
    for hd in range(HEADS):                                         # unrolled (2)
        q = jnp.dot(hb, qkv_w_ref[0, 0 * HEADS + hd], preferred_element_type=f32)
        k = jnp.dot(hb, qkv_w_ref[0, 1 * HEADS + hd], preferred_element_type=f32)
        v = jnp.dot(hb, qkv_w_ref[0, 2 * HEADS + hd], preferred_element_type=f32)
        q3 = q.reshape(BATCH, N_TOK, DIM_HEAD)                      # layout-preserving
        k3 = k.reshape(BATCH, N_TOK, DIM_HEAD)
        v3 = v.reshape(BATCH, N_TOK, DIM_HEAD)
        dots = jnp.einsum('bqd,bkd->bqk', q3, k3,
                          preferred_element_type=f32) * SCALE       # (B, N, N)
        dots = dots - jnp.max(dots, axis=-1, keepdims=True)
        e = jnp.exp(dots)
        p = e * pl.reciprocal(jnp.sum(e, axis=-1, keepdims=True), approx=True)
        o = jnp.einsum('bqk,bkd->bqd', p, v3,
                       preferred_element_type=f32)                  # (B, N, dh)
        o2 = o.reshape(BN, DIM_HEAD).astype(bf16)
        # per-head slice of the output projection -> no concat / misaligned slice
        att = att + jnp.dot(o2, proj_w_ref[0, hd], preferred_element_type=f32)
    x = x + att + proj_b_ref[0]

    # ---- PreNorm + MLP (GELU) + residual -------------------------------------
    h2 = _layer_norm(x, ln2_g_ref[0], ln2_b_ref[0])
    f1 = jnp.dot(h2.astype(bf16), ff_w1_ref[0], preferred_element_type=f32) + ff_b1_ref[0]
    # TODO(synk): torch nn.GELU is exact (erf); tanh approximation used here.
    f1 = jax.nn.gelu(f1)
    x = x + jnp.dot(f1.astype(bf16), ff_w2_ref[0], preferred_element_type=f32) + ff_b2_ref[0]

    x_scratch[...] = x                                              # persist across steps

    # ---- CLS pooling + LayerNorm + classification head (last step) -----------
    @pl.when(l == DEPTH - 1)
    def _():
        cls = x_scratch[pl.ds(0, BATCH, stride=N_TOK), :]           # (B, DIM) strided read
        cls_n = _layer_norm(cls, hln_g_ref[...], hln_b_ref[...])
        logits = (jnp.dot(cls_n.astype(bf16), head_w_ref[...],
                          preferred_element_type=f32) + head_b_ref[...])
        out_ref[...] = logits.astype(out_ref.dtype)


def _cost_estimate():
    mm = lambda m, k, n: 2 * m * k * n
    flops = mm(BN, PATCH_DIM_PAD, DIM)
    per_layer = (3 * HEADS * mm(BN, DIM, DIM_HEAD)
                 + BATCH * HEADS * (mm(N_TOK, DIM_HEAD, N_TOK) + mm(N_TOK, N_TOK, DIM_HEAD))
                 + HEADS * mm(BN, DIM_HEAD, DIM)
                 + mm(BN, DIM, MLP_DIM) + mm(BN, MLP_DIM, DIM))
    flops += DEPTH * per_layer + mm(BATCH, DIM, NUM_CLASSES)
    transcendentals = DEPTH * (BATCH * HEADS * N_TOK * N_TOK + BN * MLP_DIM)
    bytes_bf16 = 2 * (BN * PATCH_DIM_PAD + PATCH_DIM_PAD * DIM
                      + DEPTH * (3 * INNER * DIM + INNER * DIM + DIM * MLP_DIM + MLP_DIM * DIM)
                      + DIM * NUM_CLASSES)
    bytes_f32 = 4 * (N_TOK * DIM + DEPTH * (6 * DIM + MLP_DIM) + 2 * DIM
                     + NUM_CLASSES + BATCH * NUM_CLASSES)
    return pl.CostEstimate(flops=int(flops), transcendentals=int(transcendentals),
                           bytes_accessed=int(bytes_bf16 + bytes_f32))


# ------------------------------ forward wrapper -------------------------------
@jax.jit
def vit_forward(params, img):
    B = img.shape[0]
    assert B == BATCH, f"kernel is specialized for batch {BATCH}, got {B}"

    patches = rearrange_patches(img)                                 # (B, P, patch_dim)
    # Row 0 of every image is a zero CLS slot; columns [PATCH_DIM:] are zero padding
    # so the padded patch-embed weight rows contribute nothing.
    xin = jnp.zeros((B, N_TOK, PATCH_DIM_PAD), jnp.float32)
    xin = xin.at[:, 1:, :PATCH_DIM].set(patches)
    xin = xin.reshape(BN, PATCH_DIM_PAD).astype(jnp.bfloat16)

    # Row 0: cls_token + pos[0]; rows i>0: patch bias + pos[i]. Broadcast in-kernel.
    addv = jnp.concatenate(
        [params["cls"] + params["pos"][0:1, :],
         params["pos"][1:, :] + params["patch_b"]], axis=0)          # (N_TOK, DIM) f32

    layer_vec = lambda last: pl.BlockSpec((1, 1, last), lambda l: (l, 0, 0))
    grid_spec = pltpu.PrefetchScalarGridSpec(
        num_scalar_prefetch=0,
        grid=(DEPTH,),
        in_specs=[
            pl.BlockSpec((BN, PATCH_DIM_PAD), lambda l: (0, 0)),          # xin
            pl.BlockSpec((N_TOK, DIM), lambda l: (0, 0)),                 # addv
            pl.BlockSpec((PATCH_DIM_PAD, DIM), lambda l: (0, 0)),         # patch_w
            layer_vec(DIM),                                               # ln1_g
            layer_vec(DIM),                                               # ln1_b
            pl.BlockSpec((1, 3 * HEADS, DIM, DIM_HEAD),
                         lambda l: (l, 0, 0, 0)),                         # qkv_w
            pl.BlockSpec((1, HEADS, DIM_HEAD, DIM),
                         lambda l: (l, 0, 0, 0)),                         # proj_w
            layer_vec(DIM),                                               # proj_b
            layer_vec(DIM),                                               # ln2_g
            layer_vec(DIM),                                               # ln2_b
            pl.BlockSpec((1, DIM, MLP_DIM), lambda l: (l, 0, 0)),         # ff_w1
            layer_vec(MLP_DIM),                                           # ff_b1
            pl.BlockSpec((1, MLP_DIM, DIM), lambda l: (l, 0, 0)),         # ff_w2
            layer_vec(DIM),                                               # ff_b2
            pl.BlockSpec((1, DIM), lambda l: (0, 0)),                     # hln_g
            pl.BlockSpec((1, DIM), lambda l: (0, 0)),                     # hln_b
            pl.BlockSpec((DIM, NUM_CLASSES), lambda l: (0, 0)),           # head_w
            pl.BlockSpec((1, NUM_CLASSES), lambda l: (0, 0)),             # head_b
        ],
        out_specs=pl.BlockSpec((BATCH, NUM_CLASSES), lambda l: (0, 0)),
        scratch_shapes=[pltpu.VMEM((BN, DIM), jnp.float32)],
    )

    return pl.pallas_call(
        _vit_kernel,
        out_shape=jax.ShapeDtypeStruct((BATCH, NUM_CLASSES), jnp.float32),
        grid_spec=grid_spec,
        cost_estimate=_cost_estimate(),
        compiler_params=pltpu.CompilerParams(
            dimension_semantics=("arbitrary",),
            vmem_limit_bytes=8 * 1024 * 1024),
    )(xin, addv,
      params["patch_w"],
      params["ln1_g"], params["ln1_b"], params["qkv_w"],
      params["proj_w"], params["proj_b"],
      params["ln2_g"], params["ln2_b"],
      params["ff_w1"], params["ff_b1"], params["ff_w2"], params["ff_b2"],
      params["hln_g"], params["hln_b"], params["head_w"], params["head_b"])


# ------------------------------ parameter init --------------------------------
def init_params(key):
    ks = jax.random.split(key, 16)

    def w(k, shape, fan_in, dtype=jnp.bfloat16):
        return (jax.random.normal(k, shape, jnp.float32)
                * np.float32(1.0 / np.sqrt(fan_in))).astype(dtype)

    patch_w_core = w(ks[0], (PATCH_DIM, DIM), PATCH_DIM)
    patch_w = jnp.concatenate(
        [patch_w_core,
         jnp.zeros((PATCH_DIM_PAD - PATCH_DIM, DIM), jnp.bfloat16)], axis=0)

    return {
        # matmul weights stored pre-transposed (in, out) and in bfloat16
        "patch_w": patch_w,                                            # (256, 128) bf16
        "patch_b": 0.01 * jax.random.normal(ks[1], (1, DIM), jnp.float32),
        "pos":     0.02 * jax.random.normal(ks[2], (N_TOK, DIM), jnp.float32),
        "cls":     0.02 * jax.random.normal(ks[3], (1, DIM), jnp.float32),
        "ln1_g":   1.0 + 0.05 * jax.random.normal(ks[4], (DEPTH, 1, DIM), jnp.float32),
        "ln1_b":   0.05 * jax.random.normal(ks[5], (DEPTH, 1, DIM), jnp.float32),
        # per-head q/k/v weights on a leading axis: index = qkv_type * HEADS + head
        "qkv_w":   w(ks[6], (DEPTH, 3 * HEADS, DIM, DIM_HEAD), DIM),
        # per-head output-projection blocks (sum over heads == Linear on concat)
        "proj_w":  w(ks[7], (DEPTH, HEADS, DIM_HEAD, DIM), INNER),
        "proj_b":  0.01 * jax.random.normal(ks[8], (DEPTH, 1, DIM), jnp.float32),
        "ln2_g":   1.0 + 0.05 * jax.random.normal(ks[9], (DEPTH, 1, DIM), jnp.float32),
        "ln2_b":   0.05 * jax.random.normal(ks[10], (DEPTH, 1, DIM), jnp.float32),
        "ff_w1":   w(ks[11], (DEPTH, DIM, MLP_DIM), DIM),
        "ff_b1":   0.01 * jax.random.normal(ks[12], (DEPTH, 1, MLP_DIM), jnp.float32),
        "ff_w2":   w(ks[13], (DEPTH, MLP_DIM, DIM), MLP_DIM),
        "ff_b2":   0.01 * jax.random.normal(ks[14], (DEPTH, 1, DIM), jnp.float32),
        "hln_g":   jnp.ones((1, DIM), jnp.float32),
        "hln_b":   jnp.zeros((1, DIM), jnp.float32),
        "head_w":  w(ks[15], (DIM, NUM_CLASSES), DIM),
        "head_b":  jnp.zeros((1, NUM_CLASSES), jnp.float32),
    }


# ----------------------------- pure-JAX reference -----------------------------
def reference_forward(params, img):
    f32 = jnp.float32
    B = img.shape[0]
    patches = rearrange_patches(img)                                    # (B, P, 192)
    pw = params["patch_w"].astype(f32)[:PATCH_DIM]                      # unpadded rows
    x = patches @ pw + params["patch_b"]                                # (B, P, D)
    cls_tok = jnp.broadcast_to(params["cls"][None], (B, 1, DIM))
    x = jnp.concatenate([cls_tok, x], axis=1) + params["pos"][None]     # (B, N, D)

    qkv_w = params["qkv_w"].astype(f32).reshape(DEPTH, 3, HEADS, DIM, DIM_HEAD)
    proj_w = params["proj_w"].astype(f32)                               # (L, H, dh, D)
    ff_w1 = params["ff_w1"].astype(f32)
    ff_w2 = params["ff_w2"].astype(f32)

    for l in range(DEPTH):
        h = _layer_norm(x, params["ln1_g"][l], params["ln1_b"][l])
        q = jnp.einsum('bnd,hdf->bhnf', h, qkv_w[l, 0])
        k = jnp.einsum('bnd,hdf->bhnf', h, qkv_w[l, 1])
        v = jnp.einsum('bnd,hdf->bhnf', h, qkv_w[l, 2])
        dots = jnp.einsum('bhqf,bhkf->bhqk', q, k) * SCALE
        attn = jax.nn.softmax(dots, axis=-1)
        o = jnp.einsum('bhqk,bhkf->bhqf', attn, v)
        x = x + jnp.einsum('bhnf,hfd->bnd', o, proj_w[l]) + params["proj_b"][l]
        h2 = _layer_norm(x, params["ln2_g"][l], params["ln2_b"][l])
        f = jax.nn.gelu(h2 @ ff_w1[l] + params["ff_b1"][l])
        x = x + f @ ff_w2[l] + params["ff_b2"][l]

    c = _layer_norm(x[:, 0, :], params["hln_g"], params["hln_b"])
    return c @ params["head_w"].astype(f32) + params["head_b"]


# ----------------------------------- main --------------------------------------
if __name__ == "__main__":
    key = jax.random.PRNGKey(0)
    k_param, k_img = jax.random.split(key)
    params = init_params(k_param)
    img = jax.random.normal(k_img, (BATCH, CHANNELS, IMAGE_H, IMAGE_W), jnp.float32)

    logits = vit_forward(params, img)
    jax.block_until_ready(logits)

    ref = reference_forward(params, img)
    # bf16 matmul operands in the kernel vs f32 reference -> bf16-level tolerance.
    np.testing.assert_allclose(np.asarray(logits), np.asarray(ref), rtol=4e-2, atol=4e-2)

    print("KERNEL_OK")
</pallas_src>

<mosaic_0001>
module attributes {stable_mosaic.version = 11 : i64} {
  func.func @_vit_kernel(%arg0: i32, %arg1: memref<128x256xbf16, #tpu.memory_space<vmem>>, %arg2: memref<16x128xf32, #tpu.memory_space<vmem>>, %arg3: memref<256x128xbf16, #tpu.memory_space<vmem>>, %arg4: memref<1x1x128xf32, #tpu.memory_space<vmem>>, %arg5: memref<1x1x128xf32, #tpu.memory_space<vmem>>, %arg6: memref<1x6x128x64xbf16, #tpu.memory_space<vmem>>, %arg7: memref<1x2x64x128xbf16, #tpu.memory_space<vmem>>, %arg8: memref<1x1x128xf32, #tpu.memory_space<vmem>>, %arg9: memref<1x1x128xf32, #tpu.memory_space<vmem>>, %arg10: memref<1x1x128xf32, #tpu.memory_space<vmem>>, %arg11: memref<1x128x256xbf16, #tpu.memory_space<vmem>>, %arg12: memref<1x1x256xf32, #tpu.memory_space<vmem>>, %arg13: memref<1x256x128xbf16, #tpu.memory_space<vmem>>, %arg14: memref<1x1x128xf32, #tpu.memory_space<vmem>>, %arg15: memref<1x128xf32, #tpu.memory_space<vmem>>, %arg16: memref<1x128xf32, #tpu.memory_space<vmem>>, %arg17: memref<128x16xbf16, #tpu.memory_space<vmem>>, %arg18: memref<1x16xf32, #tpu.memory_space<vmem>>, %arg19: memref<8x16xf32, #tpu.memory_space<vmem>>, %arg20: memref<128x128xf32, #tpu.memory_space<vmem>>) attributes {dimension_semantics = [#tpu.dimension_semantics<arbitrary>], iteration_bounds = array<i64: 2>, scalar_prefetch = 0 : i64, scratch_operands = 1 : i64, tpu.core_type = #tpu.core_type<tc>, window_params = [{pipeline_mode = #tpu.pipeline_mode<synchronous>, transform_indices = @transform_0, window_bounds = array<i64: 128, 256>}, {pipeline_mode = #tpu.pipeline_mode<synchronous>, transform_indices = @transform_1, window_bounds = array<i64: 16, 128>}, {pipeline_mode = #tpu.pipeline_mode<synchronous>, transform_indices = @transform_2, window_bounds = array<i64: 256, 128>}, {transform_indices = @transform_3, window_bounds = array<i64: 1, 1, 128>}, {transform_indices = @transform_4, window_bounds = array<i64: 1, 1, 128>}, {transform_indices = @transform_5, window_bounds = array<i64: 1, 6, 128, 64>}, {transform_indices = @transform_6, window_bounds = array<i64: 1, 2, 64, 128>}, {transform_indices = @transform_7, window_bounds = array<i64: 1, 1, 128>}, {transform_indices = @transform_8, window_bounds = array<i64: 1, 1, 128>}, {transform_indices = @transform_9, window_bounds = array<i64: 1, 1, 128>}, {transform_indices = @transform_10, window_bounds = array<i64: 1, 128, 256>}, {transform_indices = @transform_11, window_bounds = array<i64: 1, 1, 256>}, {transform_indices = @transform_12, window_bounds = array<i64: 1, 256, 128>}, {transform_indices = @transform_13, window_bounds = array<i64: 1, 1, 128>}, {pipeline_mode = #tpu.pipeline_mode<synchronous>, transform_indices = @transform_14, window_bounds = array<i64: 1, 128>}, {pipeline_mode = #tpu.pipeline_mode<synchronous>, transform_indices = @transform_15, window_bounds = array<i64: 1, 128>}, {pipeline_mode = #tpu.pipeline_mode<synchronous>, transform_indices = @transform_16, window_bounds = array<i64: 128, 16>}, {pipeline_mode = #tpu.pipeline_mode<synchronous>, transform_indices = @transform_17, window_bounds = array<i64: 1, 16>}, {pipeline_mode = #tpu.pipeline_mode<synchronous>, transform_indices = @transform_18, window_bounds = array<i64: 8, 16>}]} {
    %c0_i32 = arith.constant 0 : i32
    %0 = arith.cmpi eq, %arg0, %c0_i32 : i32
    %1 = arith.extui %0 : i1 to i32
    %c0_i32_0 = arith.constant 0 : i32
    %2 = arith.cmpi ne, %1, %c0_i32_0 : i32
    scf.if %2 {
      %c0_93 = arith.constant 0 : index
      %c0_94 = arith.constant 0 : index
      %157 = vector.load %arg1[%c0_93, %c0_94] : memref<128x256xbf16, #tpu.memory_space<vmem>>, vector<128x256xbf16>
      %c0_95 = arith.constant 0 : index
      %c0_96 = arith.constant 0 : index
      %158 = vector.load %arg3[%c0_95, %c0_96] : memref<256x128xbf16, #tpu.memory_space<vmem>>, vector<256x128xbf16>
      %cst_97 = arith.constant dense<0.000000e+00> : vector<128x128xf32>
      %159 = tpu.matmul %157, %158, %cst_97 {dimension_numbers = #tpu.dot_dimension_numbers<[1], [0], [0], [1], [0, 0, 1, 1], [], []>} : vector<128x256xbf16>, vector<256x128xbf16>, vector<128x128xf32> -> vector<128x128xf32>
      %160 = vector.shape_cast %159 : vector<128x128xf32> to vector<8x16x128xf32>
      %c0_98 = arith.constant 0 : index
      %c0_99 = arith.constant 0 : index
      %161 = vector.load %arg2[%c0_98, %c0_99] : memref<16x128xf32, #tpu.memory_space<vmem>>, vector<16x128xf32>
      %162 = vector.shape_cast %161 : vector<16x128xf32> to vector<1x16x128xf32>
      %163 = vector.broadcast %162 : vector<1x16x128xf32> to vector<8x16x128xf32>
      %164 = arith.addf %160, %163 : vector<8x16x128xf32>
      %165 = vector.shape_cast %164 : vector<8x16x128xf32> to vector<128x128xf32>
      %c0_100 = arith.constant 0 : index
      %c0_101 = arith.constant 0 : index
      %166 = vector.load %arg20[%c0_100, %c0_101] : memref<128x128xf32, #tpu.memory_space<vmem>>, vector<128x128xf32>
      tpu.vector_store %arg20[%c0_100, %c0_101], %165 {strides = array<i32>} : memref<128x128xf32, #tpu.memory_space<vmem>>, vector<128x128xf32>,
    } else {
    }
    %c0 = arith.constant 0 : index
    %c0_1 = arith.constant 0 : index
    %3 = vector.load %arg20[%c0, %c0_1] : memref<128x128xf32, #tpu.memory_space<vmem>>, vector<128x128xf32>
    %c0_2 = arith.constant 0 : index
    %c0_3 = arith.constant 0 : index
    %c0_4 = arith.constant 0 : index
    %4 = vector.load %arg4[%c0_2, %c0_3, %c0_4] : memref<1x1x128xf32, #tpu.memory_space<vmem>>, vector<1x1x128xf32>
    %5 = vector.shape_cast %4 : vector<1x1x128xf32> to vector<1x128xf32>
    %c0_5 = arith.constant 0 : index
    %c0_6 = arith.constant 0 : index
    %c0_7 = arith.constant 0 : index
    %6 = vector.load %arg5[%c0_5, %c0_6, %c0_7] : memref<1x1x128xf32, #tpu.memory_space<vmem>>, vector<1x1x128xf32>
    %7 = vector.shape_cast %6 : vector<1x1x128xf32> to vector<1x128xf32>
    %cst = arith.constant dense<0.000000e+00> : vector<128xf32>
    %8 = vector.multi_reduction <add>, %3, %cst [1] : vector<128x128xf32> to vector<128xf32>
    %9 = vector.shape_cast %8 : vector<128xf32> to vector<128x1xf32>
    %cst_8 = arith.constant 1.280000e+02 : f32
    %10 = vector.broadcast %cst_8 : f32 to vector<128x1xf32>
    %11 = arith.divf %9, %10 : vector<128x1xf32>
    %12 = vector.broadcast %11 : vector<128x1xf32> to vector<128x128xf32>
    %13 = arith.subf %3, %12 : vector<128x128xf32>
    %14 = arith.mulf %13, %13 : vector<128x128xf32>
    %cst_9 = arith.constant dense<0.000000e+00> : vector<128xf32>
    %15 = vector.multi_reduction <add>, %14, %cst_9 [1] : vector<128x128xf32> to vector<128xf32>
    %16 = vector.shape_cast %15 : vector<128xf32> to vector<128x1xf32>
    %cst_10 = arith.constant 1.280000e+02 : f32
    %17 = vector.broadcast %cst_10 : f32 to vector<128x1xf32>
    %18 = arith.divf %16, %17 : vector<128x1xf32>
    %cst_11 = arith.constant 9.99999974E-6 : f32
    %19 = vector.broadcast %cst_11 : f32 to vector<128x1xf32>
    %20 = arith.addf %18, %19 : vector<128x1xf32>
    %21 = math.rsqrt %20 : vector<128x1xf32>
    %22 = vector.broadcast %21 : vector<128x1xf32> to vector<128x128xf32>
    %23 = arith.mulf %13, %22 : vector<128x128xf32>
    %24 = vector.broadcast %5 : vector<1x128xf32> to vector<128x128xf32>
    %25 = arith.mulf %23, %24 : vector<128x128xf32>
    %26 = vector.broadcast %7 : vector<1x128xf32> to vector<128x128xf32>
    %27 = arith.addf %25, %26 : vector<128x128xf32>
    %28 = arith.truncf %27 : vector<128x128xf32> to vector<128x128xbf16>
    %cst_12 = arith.constant 0.000000e+00 : f32
    %29 = vector.broadcast %cst_12 : f32 to vector<128x128xf32>
    %c0_13 = arith.constant 0 : index
    %c0_14 = arith.constant 0 : index
    %c0_15 = arith.constant 0 : index
    %c0_16 = arith.constant 0 : index
    %30 = vector.load %arg6[%c0_13, %c0_14, %c0_15, %c0_16] : memref<1x6x128x64xbf16, #tpu.memory_space<vmem>>, vector<1x1x128x64xbf16>
    %31 = vector.shape_cast %30 : vector<1x1x128x64xbf16> to vector<128x64xbf16>
    %cst_17 = arith.constant dense<0.000000e+00> : vector<128x64xf32>
    %32 = tpu.matmul %28, %31, %cst_17 {dimension_numbers = #tpu.dot_dimension_numbers<[1], [0], [0], [1], [0, 0, 1, 1], [], []>} : vector<128x128xbf16>, vector<128x64xbf16>, vector<128x64xf32> -> vector<128x64xf32>
    %c0_18 = arith.constant 0 : index
    %c2 = arith.constant 2 : index
    %c0_19 = arith.constant 0 : index
    %c0_20 = arith.constant 0 : index
    %33 = vector.load %arg6[%c0_18, %c2, %c0_19, %c0_20] : memref<1x6x128x64xbf16, #tpu.memory_space<vmem>>, vector<1x1x128x64xbf16>
    %34 = vector.shape_cast %33 : vector<1x1x128x64xbf16> to vector<128x64xbf16>
    %cst_21 = arith.constant dense<0.000000e+00> : vector<128x64xf32>
    %35 = tpu.matmul %28, %34, %cst_21 {dimension_numbers = #tpu.dot_dimension_numbers<[1], [0], [0], [1], [0, 0, 1, 1], [], []>} : vector<128x128xbf16>, vector<128x64xbf16>, vector<128x64xf32> -> vector<128x64xf32>
    %c0_22 = arith.constant 0 : index
    %c4 = arith.constant 4 : index
    %c0_23 = arith.constant 0 : index
    %c0_24 = arith.constant 0 : index
    %36 = vector.load %arg6[%c0_22, %c4, %c0_23, %c0_24] : memref<1x6x128x64xbf16, #tpu.memory_space<vmem>>, vector<1x1x128x64xbf16>
    %37 = vector.shape_cast %36 : vector<1x1x128x64xbf16> to vector<128x64xbf16>
    %cst_25 = arith.constant dense<0.000000e+00> : vector<128x64xf32>
    %38 = tpu.matmul %28, %37, %cst_25 {dimension_numbers = #tpu.dot_dimension_numbers<[1], [0], [0], [1], [0, 0, 1, 1], [], []>} : vector<128x128xbf16>, vector<128x64xbf16>, vector<128x64xf32> -> vector<128x64xf32>
    %39 = vector.shape_cast %32 : vector<128x64xf32> to vector<8x16x64xf32>
    %40 = vector.shape_cast %35 : vector<128x64xf32> to vector<8x16x64xf32>
    %41 = vector.shape_cast %38 : vector<128x64xf32> to vector<8x16x64xf32>
    "tpu.trace_start"() <{level = 10 : i32, message = "bqd,bkd->bqk"}> : () -> ()
    %cst_26 = arith.constant dense<0.000000e+00> : vector<8x16x16xf32>
    %42 = tpu.matmul %39, %40, %cst_26 {dimension_numbers = #tpu.dot_dimension_numbers<[2], [2], [1], [1], [0, 0, 0, 1, 1, 1], [0], [0]>} : vector<8x16x64xf32>, vector<8x16x64xf32>, vector<8x16x16xf32> -> vector<8x16x16xf32>
    "tpu.trace_stop"() : () -> ()
    %cst_27 = arith.constant 1.250000e-01 : f32
    %43 = vector.broadcast %cst_27 : f32 to vector<8x16x16xf32>
    %44 = arith.mulf %42, %43 : vector<8x16x16xf32>
    %cst_28 = arith.constant dense<0xFF800000> : vector<8x16xf32>
    %45 = vector.multi_reduction <maximumf>, %44, %cst_28 [2] : vector<8x16x16xf32> to vector<8x16xf32>
    %46 = vector.shape_cast %45 : vector<8x16xf32> to vector<8x16x1xf32>
    %47 = vector.broadcast %46 : vector<8x16x1xf32> to vector<8x16x16xf32>
    %48 = arith.subf %44, %47 : vector<8x16x16xf32>
    %49 = math.exp %48 : vector<8x16x16xf32>
    %cst_29 = arith.constant dense<0.000000e+00> : vector<8x16xf32>
    %50 = vector.multi_reduction <add>, %49, %cst_29 [2] : vector<8x16x16xf32> to vector<8x16xf32>
    %51 = vector.shape_cast %50 : vector<8x16xf32> to vector<8x16x1xf32>
    %52 = tpu.reciprocal %51 {approx = true} : vector<8x16x1xf32> -> vector<8x16x1xf32>
    %53 = vector.broadcast %52 : vector<8x16x1xf32> to vector<8x16x16xf32>
    %54 = arith.mulf %49, %53 : vector<8x16x16xf32>
    "tpu.trace_start"() <{level = 10 : i32, message = "bqk,bkd->bqd"}> : () -> ()
    %cst_30 = arith.constant dense<0.000000e+00> : vector<8x16x64xf32>
    %55 = tpu.matmul %54, %41, %cst_30 {dimension_numbers = #tpu.dot_dimension_numbers<[2], [1], [1], [2], [0, 0, 0, 1, 1, 2], [0], [0]>} : vector<8x16x16xf32>, vector<8x16x64xf32>, vector<8x16x64xf32> -> vector<8x16x64xf32>
    "tpu.trace_stop"() : () -> ()
    %56 = vector.shape_cast %55 : vector<8x16x64xf32> to vector<128x64xf32>
    %57 = arith.truncf %56 : vector<128x64xf32> to vector<128x64xbf16>
    %c0_31 = arith.constant 0 : index
    %c0_32 = arith.constant 0 : index
    %c0_33 = arith.constant 0 : index
    %c0_34 = arith.constant 0 : index
    %58 = vector.load %arg7[%c0_31, %c0_32, %c0_33, %c0_34] : memref<1x2x64x128xbf16, #tpu.memory_space<vmem>>, vector<1x1x64x128xbf16>
    %59 = vector.shape_cast %58 : vector<1x1x64x128xbf16> to vector<64x128xbf16>
    %cst_35 = arith.constant dense<0.000000e+00> : vector<128x128xf32>
    %60 = tpu.matmul %57, %59, %cst_35 {dimension_numbers = #tpu.dot_dimension_numbers<[1], [0], [0], [1], [0, 0, 1, 1], [], []>} : vector<128x64xbf16>, vector<64x128xbf16>, vector<128x128xf32> -> vector<128x128xf32>
    %61 = arith.addf %29, %60 : vector<128x128xf32>
    %c0_36 = arith.constant 0 : index
    %c1 = arith.constant 1 : index
    %c0_37 = arith.constant 0 : index
    %c0_38 = arith.constant 0 : index
    %62 = vector.load %arg6[%c0_36, %c1, %c0_37, %c0_38] : memref<1x6x128x64xbf16, #tpu.memory_space<vmem>>, vector<1x1x128x64xbf16>
    %63 = vector.shape_cast %62 : vector<1x1x128x64xbf16> to vector<128x64xbf16>
    %cst_39 = arith.constant dense<0.000000e+00> : vector<128x64xf32>
    %64 = tpu.matmul %28, %63, %cst_39 {dimension_numbers = #tpu.dot_dimension_numbers<[1], [0], [0], [1], [0, 0, 1, 1], [], []>} : vector<128x128xbf16>, vector<128x64xbf16>, vector<128x64xf32> -> vector<128x64xf32>
    %c0_40 = arith.constant 0 : index
    %c3 = arith.constant 3 : index
    %c0_41 = arith.constant 0 : index
    %c0_42 = arith.constant 0 : index
    %65 = vector.load %arg6[%c0_40, %c3, %c0_41, %c0_42] : memref<1x6x128x64xbf16, #tpu.memory_space<vmem>>, vector<1x1x128x64xbf16>
    %66 = vector.shape_cast %65 : vector<1x1x128x64xbf16> to vector<128x64xbf16>
    %cst_43 = arith.constant dense<0.000000e+00> : vector<128x64xf32>
    %67 = tpu.matmul %28, %66, %cst_43 {dimension_numbers = #tpu.dot_dimension_numbers<[1], [0], [0], [1], [0, 0, 1, 1], [], []>} : vector<128x128xbf16>, vector<128x64xbf16>, vector<128x64xf32> -> vector<128x64xf32>
    %c0_44 = arith.constant 0 : index
    %c5 = arith.constant 5 : index
    %c0_45 = arith.constant 0 : index
    %c0_46 = arith.constant 0 : index
    %68 = vector.load %arg6[%c0_44, %c5, %c0_45, %c0_46] : memref<1x6x128x64xbf16, #tpu.memory_space<vmem>>, vector<1x1x128x64xbf16>
    %69 = vector.shape_cast %68 : vector<1x1x128x64xbf16> to vector<128x64xbf16>
    %cst_47 = arith.constant dense<0.000000e+00> : vector<128x64xf32>
    %70 = tpu.matmul %28, %69, %cst_47 {dimension_numbers = #tpu.dot_dimension_numbers<[1], [0], [0], [1], [0, 0, 1, 1], [], []>} : vector<128x128xbf16>, vector<128x64xbf16>, vector<128x64xf32> -> vector<128x64xf32>
    %71 = vector.shape_cast %64 : vector<128x64xf32> to vector<8x16x64xf32>
    %72 = vector.shape_cast %67 : vector<128x64xf32> to vector<8x16x64xf32>
    %73 = vector.shape_cast %70 : vector<128x64xf32> to vector<8x16x64xf32>
    "tpu.trace_start"() <{level = 10 : i32, message = "bqd,bkd->bqk"}> : () -> ()
    %cst_48 = arith.constant dense<0.000000e+00> : vector<8x16x16xf32>
    %74 = tpu.matmul %71, %72, %cst_48 {dimension_numbers = #tpu.dot_dimension_numbers<[2], [2], [1], [1], [0, 0, 0, 1, 1, 1], [0], [0]>} : vector<8x16x64xf32>, vector<8x16x64xf32>, vector<8x16x16xf32> -> vector<8x16x16xf32>
    "tpu.trace_stop"() : () -> ()
    %cst_49 = arith.constant 1.250000e-01 : f32
    %75 = vector.broadcast %cst_49 : f32 to vector<8x16x16xf32>
    %76 = arith.mulf %74, %75 : vector<8x16x16xf32>
    %cst_50 = arith.constant dense<0xFF800000> : vector<8x16xf32>
    %77 = vector.multi_reduction <maximumf>, %76, %cst_50 [2] : vector<8x16x16xf32> to vector<8x16xf32>
    %78 = vector.shape_cast %77 : vector<8x16xf32> to vector<8x16x1xf32>
    %79 = vector.broadcast %78 : vector<8x16x1xf32> to vector<8x16x16xf32>
    %80 = arith.subf %76, %79 : vector<8x16x16xf32>
    %81 = math.exp %80 : vector<8x16x16xf32>
    %cst_51 = arith.constant dense<0.000000e+00> : vector<8x16xf32>
    %82 = vector.multi_reduction <add>, %81, %cst_51 [2] : vector<8x16x16xf32> to vector<8x16xf32>
    %83 = vector.shape_cast %82 : vector<8x16xf32> to vector<8x16x1xf32>
    %84 = tpu.reciprocal %83 {approx = true} : vector<8x16x1xf32> -> vector<8x16x1xf32>
    %85 = vector.broadcast %84 : vector<8x16x1xf32> to vector<8x16x16xf32>
    %86 = arith.mulf %81, %85 : vector<8x16x16xf32>
    "tpu.trace_start"() <{level = 10 : i32, message = "bqk,bkd->bqd"}> : () -> ()
    %cst_52 = arith.constant dense<0.000000e+00> : vector<8x16x64xf32>
    %87 = tpu.matmul %86, %73, %cst_52 {dimension_numbers = #tpu.dot_dimension_numbers<[2], [1], [1], [2], [0, 0, 0, 1, 1, 2], [0], [0]>} : vector<8x16x16xf32>, vector<8x16x64xf32>, vector<8x16x64xf32> -> vector<8x16x64xf32>
    "tpu.trace_stop"() : () -> ()
    %88 = vector.shape_cast %87 : vector<8x16x64xf32> to vector<128x64xf32>
    %89 = arith.truncf %88 : vector<128x64xf32> to vector<128x64xbf16>
    %c0_53 = arith.constant 0 : index
    %c1_54 = arith.constant 1 : index
    %c0_55 = arith.constant 0 : index
    %c0_56 = arith.constant 0 : index
    %90 = vector.load %arg7[%c0_53, %c1_54, %c0_55, %c0_56] : memref<1x2x64x128xbf16, #tpu.memory_space<vmem>>, vector<1x1x64x128xbf16>
    %91 = vector.shape_cast %90 : vector<1x1x64x128xbf16> to vector<64x128xbf16>
    %cst_57 = arith.constant dense<0.000000e+00> : vector<128x128xf32>
    %92 = tpu.matmul %89, %91, %cst_57 {dimension_numbers = #tpu.dot_dimension_numbers<[1], [0], [0], [1], [0, 0, 1, 1], [], []>} : vector<128x64xbf16>, vector<64x128xbf16>, vector<128x128xf32> -> vector<128x128xf32>
    %93 = arith.addf %61, %92 : vector<128x128xf32>
    %94 = arith.addf %3, %93 : vector<128x128xf32>
    %c0_58 = arith.constant 0 : index
    %c0_59 = arith.constant 0 : index
    %c0_60 = arith.constant 0 : index
    %95 = vector.load %arg8[%c0_58, %c0_59, %c0_60] : memref<1x1x128xf32, #tpu.memory_space<vmem>>, vector<1x1x128xf32>
    %96 = vector.shape_cast %95 : vector<1x1x128xf32> to vector<1x128xf32>
    %97 = vector.broadcast %96 : vector<1x128xf32> to vector<128x128xf32>
    %98 = arith.addf %94, %97 : vector<128x128xf32>
    %c0_61 = arith.constant 0 : index
    %c0_62 = arith.constant 0 : index
    %c0_63 = arith.constant 0 : index
    %99 = vector.load %arg9[%c0_61, %c0_62, %c0_63] : memref<1x1x128xf32, #tpu.memory_space<vmem>>, vector<1x1x128xf32>
    %100 = vector.shape_cast %99 : vector<1x1x128xf32> to vector<1x128xf32>
    %c0_64 = arith.constant 0 : index
    %c0_65 = arith.constant 0 : index
    %c0_66 = arith.constant 0 : index
    %101 = vector.load %arg10[%c0_64, %c0_65, %c0_66] : memref<1x1x128xf32, #tpu.memory_space<vmem>>, vector<1x1x128xf32>
    %102 = vector.shape_cast %101 : vector<1x1x128xf32> to vector<1x128xf32>
    %cst_67 = arith.constant dense<0.000000e+00> : vector<128xf32>
    %103 = vector.multi_reduction <add>, %98, %cst_67 [1] : vector<128x128xf32> to vector<128xf32>
    %104 = vector.shape_cast %103 : vector<128xf32> to vector<128x1xf32>
    %cst_68 = arith.constant 1.280000e+02 : f32
    %105 = vector.broadcast %cst_68 : f32 to vector<128x1xf32>
    %106 = arith.divf %104, %105 : vector<128x1xf32>
    %107 = vector.broadcast %106 : vector<128x1xf32> to vector<128x128xf32>
    %108 = arith.subf %98, %107 : vector<128x128xf32>
    %109 = arith.mulf %108, %108 : vector<128x128xf32>
    %cst_69 = arith.constant dense<0.000000e+00> : vector<128xf32>
    %110 = vector.multi_reduction <add>, %109, %cst_69 [1] : vector<128x128xf32> to vector<128xf32>
    %111 = vector.shape_cast %110 : vector<128xf32> to vector<128x1xf32>
    %cst_70 = arith.constant 1.280000e+02 : f32
    %112 = vector.broadcast %cst_70 : f32 to vector<128x1xf32>
    %113 = arith.divf %111, %112 : vector<128x1xf32>
    %cst_71 = arith.constant 9.99999974E-6 : f32
    %114 = vector.broadcast %cst_71 : f32 to vector<128x1xf32>
    %115 = arith.addf %113, %114 : vector<128x1xf32>
    %116 = math.rsqrt %115 : vector<128x1xf32>
    %117 = vector.broadcast %116 : vector<128x1xf32> to vector<128x128xf32>
    %118 = arith.mulf %108, %117 : vector<128x128xf32>
    %119 = vector.broadcast %100 : vector<1x128xf32> to vector<128x128xf32>
    %120 = arith.mulf %118, %119 : vector<128x128xf32>
    %121 = vector.broadcast %102 : vector<1x128xf32> to vector<128x128xf32>
    %122 = arith.addf %120, %121 : vector<128x128xf32>
    %123 = arith.truncf %122 : vector<128x128xf32> to vector<128x128xbf16>
    %c0_72 = arith.constant 0 : index
    %c0_73 = arith.constant 0 : index
    %c0_74 = arith.constant 0 : index
    %124 = vector.load %arg11[%c0_72, %c0_73, %c0_74] : memref<1x128x256xbf16, #tpu.memory_space<vmem>>, vector<1x128x256xbf16>
    %125 = vector.shape_cast %124 : vector<1x128x256xbf16> to vector<128x256xbf16>
    %cst_75 = arith.constant dense<0.000000e+00> : vector<128x256xf32>
    %126 = tpu.matmul %123, %125, %cst_75 {dimension_numbers = #tpu.dot_dimension_numbers<[1], [0], [0], [1], [0, 0, 1, 1], [], []>} : vector<128x128xbf16>, vector<128x256xbf16>, vector<128x256xf32> -> vector<128x256xf32>
    %c0_76 = arith.constant 0 : index
    %c0_77 = arith.constant 0 : index
    %c0_78 = arith.constant 0 : index
    %127 = vector.load %arg12[%c0_76, %c0_77, %c0_78] : memref<1x1x256xf32, #tpu.memory_space<vmem>>, vector<1x1x256xf32>
    %128 = vector.shape_cast %127 : vector<1x1x256xf32> to vector<1x256xf32>
    %129 = vector.broadcast %128 : vector<1x256xf32> to vector<128x256xf32>
    %130 = arith.addf %126, %129 : vector<128x256xf32>
    %131 = arith.mulf %130, %130 : vector<128x256xf32>
    %132 = arith.mulf %130, %131 : vector<128x256xf32>
    %cst_79 = arith.constant 4.471500e-02 : f32
    %133 = vector.broadcast %cst_79 : f32 to vector<128x256xf32>
    %134 = arith.mulf %133, %132 : vector<128x256xf32>
    %135 = arith.addf %130, %134 : vector<128x256xf32>
    %cst_80 = arith.constant 0.797884583 : f32
    %136 = vector.broadcast %cst_80 : f32 to vector<128x256xf32>
    %137 = arith.mulf %136, %135 : vector<128x256xf32>
    %138 = math.tanh %137 : vector<128x256xf32>
    %cst_81 = arith.constant 1.000000e+00 : f32
    %139 = vector.broadcast %cst_81 : f32 to vector<128x256xf32>
    %140 = arith.addf %139, %138 : vector<128x256xf32>
    %cst_82 = arith.constant 5.000000e-01 : f32
    %141 = vector.broadcast %cst_82 : f32 to vector<128x256xf32>
    %142 = arith.mulf %141, %140 : vector<128x256xf32>
    %143 = arith.mulf %130, %142 : vector<128x256xf32>
    %144 = arith.truncf %143 : vector<128x256xf32> to vector<128x256xbf16>
    %c0_83 = arith.constant 0 : index
    %c0_84 = arith.constant 0 : index
    %c0_85 = arith.constant 0 : index
    %145 = vector.load %arg13[%c0_83, %c0_84, %c0_85] : memref<1x256x128xbf16, #tpu.memory_space<vmem>>, vector<1x256x128xbf16>
    %146 = vector.shape_cast %145 : vector<1x256x128xbf16> to vector<256x128xbf16>
    %cst_86 = arith.constant dense<0.000000e+00> : vector<128x128xf32>
    %147 = tpu.matmul %144, %146, %cst_86 {dimension_numbers = #tpu.dot_dimension_numbers<[1], [0], [0], [1], [0, 0, 1, 1], [], []>} : vector<128x256xbf16>, vector<256x128xbf16>, vector<128x128xf32> -> vector<128x128xf32>
    %148 = arith.addf %98, %147 : vector<128x128xf32>
    %c0_87 = arith.constant 0 : index
    %c0_88 = arith.constant 0 : index
    %c0_89 = arith.constant 0 : index
    %149 = vector.load %arg14[%c0_87, %c0_88, %c0_89] : memref<1x1x128xf32, #tpu.memory_space<vmem>>, vector<1x1x128xf32>
    %150 = vector.shape_cast %149 : vector<1x1x128xf32> to vector<1x128xf32>
    %151 = vector.broadcast %150 : vector<1x128xf32> to vector<128x128xf32>
    %152 = arith.addf %148, %151 : vector<128x128xf32>
    %c0_90 = arith.constant 0 : index
    %c0_91 = arith.constant 0 : index
    %153 = vector.load %arg20[%c0_90, %c0_91] : memref<128x128xf32, #tpu.memory_space<vmem>>, vector<128x128xf32>
    tpu.vector_store %arg20[%c0_90, %c0_91], %152 {strides = array<i32>} : memref<128x128xf32, #tpu.memory_space<vmem>>, vector<128x128xf32>,
    %c1_i32 = arith.constant 1 : i32
    %154 = arith.cmpi eq, %arg0, %c1_i32 : i32
    %155 = arith.extui %154 : i1 to i32
    %c0_i32_92 = arith.constant 0 : i32
    %156 = arith.cmpi ne, %155, %c0_i32_92 : i32
    scf.if %156 {
      %c0_93 = arith.constant 0 : index
      %c0_94 = arith.constant 0 : index
      %157 = tpu.strided_load %arg20[%c0_93, %c0_94] {strides = array<i32: 16, 1>} : memref<128x128xf32, #tpu.memory_space<vmem>>, vector<8x128xf32>
      %c0_95 = arith.constant 0 : index
      %c0_96 = arith.constant 0 : index
      %158 = vector.load %arg15[%c0_95, %c0_96] : memref<1x128xf32, #tpu.memory_space<vmem>>, vector<1x128xf32>
      %c0_97 = arith.constant 0 : index
      %c0_98 = arith.constant 0 : index
      %159 = vector.load %arg16[%c0_97, %c0_98] : memref<1x128xf32, #tpu.memory_space<vmem>>, vector<1x128xf32>
      %cst_99 = arith.constant dense<0.000000e+00> : vector<8xf32>
      %160 = vector.multi_reduction <add>, %157, %cst_99 [1] : vector<8x128xf32> to vector<8xf32>
      %161 = vector.shape_cast %160 : vector<8xf32> to vector<8x1xf32>
      %cst_100 = arith.constant 1.280000e+02 : f32
      %162 = vector.broadcast %cst_100 : f32 to vector<8x1xf32>
      %163 = arith.divf %161, %162 : vector<8x1xf32>
      %164 = vector.broadcast %163 : vector<8x1xf32> to vector<8x128xf32>
      %165 = arith.subf %157, %164 : vector<8x128xf32>
      %166 = arith.mulf %165, %165 : vector<8x128xf32>
      %cst_101 = arith.constant dense<0.000000e+00> : vector<8xf32>
      %167 = vector.multi_reduction <add>, %166, %cst_101 [1] : vector<8x128xf32> to vector<8xf32>
      %168 = vector.shape_cast %167 : vector<8xf32> to vector<8x1xf32>
      %cst_102 = arith.constant 1.280000e+02 : f32
      %169 = vector.broadcast %cst_102 : f32 to vector<8x1xf32>
      %170 = arith.divf %168, %169 : vector<8x1xf32>
      %cst_103 = arith.constant 9.99999974E-6 : f32
      %171 = vector.broadcast %cst_103 : f32 to vector<8x1xf32>
      %172 = arith.addf %170, %171 : vector<8x1xf32>
      %173 = math.rsqrt %172 : vector<8x1xf32>
      %174 = vector.broadcast %173 : vector<8x1xf32> to vector<8x128xf32>
      %175 = arith.mulf %165, %174 : vector<8x128xf32>
      %176 = vector.broadcast %158 : vector<1x128xf32> to vector<8x128xf32>
      %177 = arith.mulf %175, %176 : vector<8x128xf32>
      %178 = vector.broadcast %159 : vector<1x128xf32> to vector<8x128xf32>
      %179 = arith.addf %177, %178 : vector<8x128xf32>
      %180 = arith.truncf %179 : vector<8x128xf32> to vector<8x128xbf16>
      %c0_104 = arith.constant 0 : index
      %c0_105 = arith.constant 0 : index
      %181 = vector.load %arg17[%c0_104, %c0_105] : memref<128x16xbf16, #tpu.memory_space<vmem>>, vector<128x16xbf16>
      %cst_106 = arith.constant dense<0.000000e+00> : vector<8x16xf32>
      %182 = tpu.matmul %180, %181, %cst_106 {dimension_numbers = #tpu.dot_dimension_numbers<[1], [0], [0], [1], [0, 0, 1, 1], [], []>} : vector<8x128xbf16>, vector<128x16xbf16>, vector<8x16xf32> -> vector<8x16xf32>
      %c0_107 = arith.constant 0 : index
      %c0_108 = arith.constant 0 : index
      %183 = vector.load %arg18[%c0_107, %c0_108] : memref<1x16xf32, #tpu.memory_space<vmem>>, vector<1x16xf32>
      %184 = vector.broadcast %183 : vector<1x16xf32> to vector<8x16xf32>
      %185 = arith.addf %182, %184 : vector<8x16xf32>
      %c0_109 = arith.constant 0 : index
      %c0_110 = arith.constant 0 : index
      %186 = vector.load %arg19[%c0_109, %c0_110] : memref<8x16xf32, #tpu.memory_space<vmem>>, vector<8x16xf32>
      tpu.vector_store %arg19[%c0_109, %c0_110], %185 {strides = array<i32>} : memref<8x16xf32, #tpu.memory_space<vmem>>, vector<8x16xf32>,
    } else {
    }
    return
  }
  func.func @transform_0(%arg0: i32) -> (i32, i32) {
    %c0_i32 = arith.constant 0 : i32
    %c0_i32_0 = arith.constant 0 : i32
    %c0_i32_1 = arith.constant 0 : i32
    return %c0_i32, %c0_i32_0 : i32, i32
  }
  func.func @transform_1(%arg0: i32) -> (i32, i32) {
    %c0_i32 = arith.constant 0 : i32
    %c0_i32_0 = arith.constant 0 : i32
    %c0_i32_1 = arith.constant 0 : i32
    return %c0_i32, %c0_i32_0 : i32, i32
  }
  func.func @transform_2(%arg0: i32) -> (i32, i32) {
    %c0_i32 = arith.constant 0 : i32
    %c0_i32_0 = arith.constant 0 : i32
    %c0_i32_1 = arith.constant 0 : i32
    return %c0_i32, %c0_i32_0 : i32, i32
  }
  func.func @transform_3(%arg0: i32) -> (i32, i32, i32) {
    %c0_i32 = arith.constant 0 : i32
    %c0_i32_0 = arith.constant 0 : i32
    %c0_i32_1 = arith.constant 0 : i32
    return %arg0, %c0_i32, %c0_i32_0 : i32, i32, i32
  }
  func.func @transform_4(%arg0: i32) -> (i32, i32, i32) {
    %c0_i32 = arith.constant 0 : i32
    %c0_i32_0 = arith.constant 0 : i32
    %c0_i32_1 = arith.constant 0 : i32
    return %arg0, %c0_i32, %c0_i32_0 : i32, i32, i32
  }
  func.func @transform_5(%arg0: i32) -> (i32, i32, i32, i32) {
    %c0_i32 = arith.constant 0 : i32
    %c0_i32_0 = arith.constant 0 : i32
    %c0_i32_1 = arith.constant 0 : i32
    %c0_i32_2 = arith.constant 0 : i32
    return %arg0, %c0_i32, %c0_i32_0, %c0_i32_1 : i32, i32, i32, i32
  }
  func.func @transform_6(%arg0: i32) -> (i32, i32, i32, i32) {
    %c0_i32 = arith.constant 0 : i32
    %c0_i32_0 = arith.constant 0 : i32
    %c0_i32_1 = arith.constant 0 : i32
    %c0_i32_2 = arith.constant 0 : i32
    return %arg0, %c0_i32, %c0_i32_0, %c0_i32_1 : i32, i32, i32, i32
  }
  func.func @transform_7(%arg0: i32) -> (i32, i32, i32) {
    %c0_i32 = arith.constant 0 : i32
    %c0_i32_0 = arith.constant 0 : i32
    %c0_i32_1 = arith.constant 0 : i32
    return %arg0, %c0_i32, %c0_i32_0 : i32, i32, i32
  }
  func.func @transform_8(%arg0: i32) -> (i32, i32, i32) {
    %c0_i32 = arith.constant 0 : i32
    %c0_i32_0 = arith.constant 0 : i32
    %c0_i32_1 = arith.constant 0 : i32
    return %arg0, %c0_i32, %c0_i32_0 : i32, i32, i32
  }
  func.func @transform_9(%arg0: i32) -> (i32, i32, i32) {
    %c0_i32 = arith.constant 0 : i32
    %c0_i32_0 = arith.constant 0 : i32
    %c0_i32_1 = arith.constant 0 : i32
    return %arg0, %c0_i32, %c0_i32_0 : i32, i32, i32
  }
  func.func @transform_10(%arg0: i32) -> (i32, i32, i32) {
    %c0_i32 = arith.constant 0 : i32
    %c0_i32_0 = arith.constant 0 : i32
    %c0_i32_1 = arith.constant 0 : i32
    return %arg0, %c0_i32, %c0_i32_0 : i32, i32, i32
  }
  func.func @transform_11(%arg0: i32) -> (i32, i32, i32) {
    %c0_i32 = arith.constant 0 : i32
    %c0_i32_0 = arith.constant 0 : i32
    %c0_i32_1 = arith.constant 0 : i32
    return %arg0, %c0_i32, %c0_i32_0 : i32, i32, i32
  }
  func.func @transform_12(%arg0: i32) -> (i32, i32, i32) {
    %c0_i32 = arith.constant 0 : i32
    %c0_i32_0 = arith.constant 0 : i32
    %c0_i32_1 = arith.constant 0 : i32
    return %arg0, %c0_i32, %c0_i32_0 : i32, i32, i32
  }
  func.func @transform_13(%arg0: i32) -> (i32, i32, i32) {
    %c0_i32 = arith.constant 0 : i32
    %c0_i32_0 = arith.constant 0 : i32
    %c0_i32_1 = arith.constant 0 : i32
    return %arg0, %c0_i32, %c0_i32_0 : i32, i32, i32
  }
  func.func @transform_14(%arg0: i32) -> (i32, i32) {
    %c0_i32 = arith.constant 0 : i32
    %c0_i32_0 = arith.constant 0 : i32
    %c0_i32_1 = arith.constant 0 : i32
    return %c0_i32, %c0_i32_0 : i32, i32
  }
  func.func @transform_15(%arg0: i32) -> (i32, i32) {
    %c0_i32 = arith.constant 0 : i32
    %c0_i32_0 = arith.constant 0 : i32
    %c0_i32_1 = arith.constant 0 : i32
    return %c0_i32, %c0_i32_0 : i32, i32
  }
  func.func @transform_16(%arg0: i32) -> (i32, i32) {
    %c0_i32 = arith.constant 0 : i32
    %c0_i32_0 = arith.constant 0 : i32
    %c0_i32_1 = arith.constant 0 : i32
    return %c0_i32, %c0_i32_0 : i32, i32
  }
  func.func @transform_17(%arg0: i32) -> (i32, i32) {
    %c0_i32 = arith.constant 0 : i32
    %c0_i32_0 = arith.constant 0 : i32
    %c0_i32_1 = arith.constant 0 : i32
    return %c0_i32, %c0_i32_0 : i32, i32
  }
  func.func @transform_18(%arg0: i32) -> (i32, i32) {
    %c0_i32 = arith.constant 0 : i32
    %c0_i32_0 = arith.constant 0 : i32
    %c0_i32_1 = arith.constant 0 : i32
    return %c0_i32, %c0_i32_0 : i32, i32
  }
}

</mosaic_0001>

<bundles_post_ra>
// kernel: vit_forward.1
= control target key start
LH: loop header
LB: loop body
LE: loop exit
PB: predicated region body
PF: predicated region fallthrough
CT: control target
= control target key end

     0   :  { %s10638_s0 = inlined_call_operand.vmem [shape: bf16[128,256], index: 0, kind: input, shape index: {}]   ;;  %s10639_s1 = inlined_call_operand.vmem [shape: f32[16,128], index: 1, kind: input, shape index: {}]   ;;  %s10640_s2 = inlined_call_operand.vmem [shape: bf16[256,128], index: 2, kind: input, shape index: {}]   ;;  %s10641_s3 = inlined_call_operand.vmem [shape: f32[2,1,128], index: 3, kind: input, shape index: {}]   ;;  %s10642_s4 = inlined_call_operand.vmem [shape: f32[2,1,128], index: 4, kind: input, shape index: {}]   ;;  %s10643_s5 = inlined_call_operand.vmem [shape: bf16[2,6,128,64], index: 5, kind: input, shape index: {}]   ;;  %s10644_s6 = inlined_call_operand.vmem [shape: bf16[2,2,64,128], index: 6, kind: input, shape index: {}]   ;;  %s10645_s7 = inlined_call_operand.vmem [shape: f32[2,1,128], index: 7, kind: input, shape index: {}]   ;;  %s10646_s8 = inlined_call_operand.vmem [shape: f32[2,1,128], index: 8, kind: input, shape index: {}]   ;;  %s10647_s9 = inlined_call_operand.vmem [shape: f32[2,1,128], index: 9, kind: input, shape index: {}]   ;;  %s10648_s10 = inlined_call_operand.vmem [shape: bf16[2,128,256], index: 10, kind: input, shape index: {}]   ;;  %s10649_s11 = inlined_call_operand.vmem [shape: f32[2,1,256], index: 11, kind: input, shape index: {}]   ;;  %s10650_s12 = inlined_call_operand.vmem [shape: bf16[2,256,128], index: 12, kind: input, shape index: {}]   ;;  %s10651_s13 = inlined_call_operand.vmem [shape: f32[2,1,128], index: 13, kind: input, shape index: {}]   ;;  %s10652_s14 = inlined_call_operand.vmem [shape: f32[1,128], index: 14, kind: input, shape index: {}]   ;;  %s10653_s15 = inlined_call_operand.vmem [shape: f32[1,128], index: 15, kind: input, shape index: {}]   ;;  %s10654_s16 = inlined_call_operand.vmem [shape: bf16[128,16], index: 16, kind: input, shape index: {}]   ;;  %s10655_s17 = inlined_call_operand.vmem [shape: f32[1,16], index: 17, kind: input, shape index: {}]   ;;  %s10656_s18 = inlined_call_operand.hbm [shape: f32[8,16], index: 18, kind: output, shape index: {}]  }
   0x1   :  { %10668 = sst [smem:[#allocation14_spill]] %s10638_s0 }
   0x2   :  { %10669 = sst [smem:[#allocation15_spill]] %s10639_s1 }
   0x3   :  { %10670 = sst [smem:[#allocation16_spill]] %s10640_s2 }
   0x4   :  { %10671 = sst [smem:[#allocation17_spill]] %s10644_s6 }
   0x5   :  { %10672 = sst [smem:[#allocation18_spill]] %s10652_s14 }
   0x6   :  { %10673 = sst [smem:[#allocation19_spill]] %s10653_s15 }
   0x7   :  { %10674 = sst [smem:[#allocation20_spill]] %s10655_s17 }
   0x8   :  { %10675 = sst [smem:[#allocation21_spill]] %s10656_s18 }
   0x9   :  { %23 = vsyncpa [#allocation4], 0  ;;  %s8886_s27 = smov 0  }
   0xa LB: > { %10676 = sst [smem:[#allocation6_spill]] %s8785_s27  ;;  %s8892_s28 = sadd.s32 4294967295, %s8785_s27   ;;  %s8785_s27 = sphi %s8886_s27, %s29_s27  }
   0xb   : > { %p7074_p0 = scmp.ge.s32.totalorder %s8785_s27, 1  ;;  %p595_p1 = scmp.lt.s32.totalorder %s8785_s27, 3 }
   0xd   : > { %p596_p2 = pnand %p7074_p0, %p595_p1 }
   0xf   : > { %599 = sbr.rel (%p596_p2) target bundleno = 3889 (0xf31), region = 92 }
  0x14   : > { %p681_p3 = scmp.lt.s32.totalorder %s8892_s28, 1  ;;  %s10677_s6 = sld [smem:[#allocation17_spill]] }
  0x15   : > { %p7083_p4 = scmp.ne.s32.totalorder %s8892_s28, 0 }
  0x16   : > { %s8898_s29 = scalar_select %p681_p3, %s8892_s28, 1 }
  0x17   : > { %s10678_s14 = sld [smem:[#allocation16_spill]] (!%p7083_p4) }
  0x18   : > { %s8314_s22 = smul.u32 384, %s8898_s29  ;;  %s7426_s2 = sshll.u32 %s8898_s29, 6 }
  0x19   : > { %s7427_s23 = sshll.u32 %s8898_s29, 7  ;;  %s7080_s26 = sshll.u32 %s8898_s29, 1 }
  0x1a   : > { %s8913_s25 = scalar_lea.vmem %s10677_s6, %s7426_s2  ;;  %s8922_s17 = scalar_lea.vmem %s10643_s5, %s8314_s22 }
  0x1b   : > { %s8936_s6 = scalar_lea.vmem %s10648_s10, %s7427_s23  ;;  %s8942_s18 = scalar_lea.vmem %s10649_s11, %s7080_s26 }
  0x1c   : > { %s8947_s15 = scalar_lea.vmem %s10650_s12, %s7427_s23  ;;  %s722_s20 = scalar_lea.vmem %s10651_s13, %s8898_s29 }
  0x1d   : > { %727 = sbr.rel (%p7083_p4) target bundleno = 295 (0x127), region = 96  ;;  %s10679_s24 = sld [smem:[#allocation14_spill]] (!%p7083_p4) }
  0x1e   : > { %s10680_s23 = sld [smem:[#allocation15_spill]] (!%p7083_p4) }
  0x22   : > { %v8333_v0 = vld [vmem:[%s10678_s14 + $0x78] sm:$0xff]   ;;  %v8335_v2 = vld [vmem:[%s10678_s14 + $0x70] sm:$0xff]   ;;  %v8337_v4 = vld [vmem:[%s10678_s14 + $0x68] sm:$0xff]  }
  0x23   : > { %v8334_v1 = vld [vmem:[%s10678_s14 + $0x38] sm:$0xff]   ;;  %7429 = vmatprep.subr.bf16.mxu0 %v8333_v0  ;;  %8298 = vmatprep.subr.bf16.mxu1 %v8333_v0  ;;  %v8336_v3 = vld [vmem:[%s10678_s14 + $0x30] sm:$0xff]   ;;  %v8338_v5 = vld [vmem:[%s10678_s14 + $0x28] sm:$0xff]  }
  0x24   : > { %7430 = vmatpush3.bf16.msra.mxu0 %v8334_v1  ;;  %8306 = vmatpush3.bf16.msra.mxu1 %v8334_v1  ;;  %v8339_v6 = vld [vmem:[%s10678_s14 + $0x60] sm:$0xff]   ;;  %v8341_v8 = vld [vmem:[%s10678_s14 + $0x58] sm:$0xff]   ;;  %v8343_v10 = vld [vmem:[%s10678_s14 + $0x50] sm:$0xff]  }
  0x25   : > { %7431 = vmatprep.subr.bf16.mxu0 %v8335_v2  ;;  %8299 = vmatprep.subr.bf16.mxu1 %v8335_v2  ;;  %v8340_v7 = vld [vmem:[%s10678_s14 + $0x20] sm:$0xff]   ;;  %v8342_v9 = vld [vmem:[%s10678_s14 + $0x18] sm:$0xff]   ;;  %v8344_v13 = vld [vmem:[%s10678_s14 + $0x10] sm:$0xff]  }
  0x26   : > { %v8351_v11 = vld [vmem:[%s10679_s24 + $0x4] ss:$8 sps:$4 sm:$0xff]   ;;  %v8349_v18 = vld [vmem:[%s10679_s24] ss:$8 sps:$4 sm:$0xff]   ;;  %v8355_v20 = vld [vmem:[%s10679_s24 + $0x14] ss:$8 sps:$4 sm:$0xff]  }
  0x27   : > { %v8354_v12 = vld [vmem:[%s10679_s24 + $0x44] ss:$8 sps:$4 sm:$0xff]   ;;  %984 = vmatprep.mubr.bf16.mxu0 %v8351_v11  ;;  %v8352_v19 = vld [vmem:[%s10679_s24 + $0x40] ss:$8 sps:$4 sm:$0xff]   ;;  %v8357_v21 = vld [vmem:[%s10679_s24 + $0x54] ss:$8 sps:$4 sm:$0xff]  }
  0x28   : > { %7432 = vmatpush3.bf16.msra.mxu0 %v8336_v3  ;;  %8307 = vmatpush3.bf16.msra.mxu1 %v8336_v3  ;;  %v8345_v14 = vld [vmem:[%s10678_s14 + $0x48] sm:$0xff]   ;;  %v8347_v16 = vld [vmem:[%s10678_s14 + $0x40] sm:$0xff]   ;;  %v8359_v22 = vld [vmem:[%s10679_s24 + $0x10] ss:$8 sps:$4 sm:$0xff]  }
  0x29   : > { %7433 = vmatprep.subr.bf16.mxu0 %v8337_v4  ;;  %8300 = vmatprep.subr.bf16.mxu1 %v8337_v4  ;;  %v8346_v15 = vld [vmem:[%s10678_s14 + $0x8] sm:$0xff]   ;;  %v8348_v17 = vld [vmem:[%s10678_s14] sm:$0xff]   ;;  %v8360_v23 = vld [vmem:[%s10679_s24 + $0x50] ss:$8 sps:$4 sm:$0xff]  }
  0x2a   : > { %1016 = vmatprep.mubr.bf16.mxu1 %v8354_v12  ;;  %v8361_v24 = vld [vmem:[%s10679_s24 + $0x24] ss:$8 sps:$4 sm:$0xff]   ;;  %v8365_v26 = vld [vmem:[%s10679_s24 + $0x20] ss:$8 sps:$4 sm:$0xff]   ;;  %v8367_v28 = vld [vmem:[%s10679_s24 + $0x34] ss:$8 sps:$4 sm:$0xff]  }
  0x2b   : > { %v8363_v25 = vld [vmem:[%s10679_s24 + $0x64] ss:$8 sps:$4 sm:$0xff]   ;;  %v8366_v27 = vld [vmem:[%s10679_s24 + $0x60] ss:$8 sps:$4 sm:$0xff]   ;;  %v8369_v29 = vld [vmem:[%s10679_s24 + $0x74] ss:$8 sps:$4 sm:$0xff]  }
  0x2c   : > { %7434 = vmatpush3.bf16.msra.mxu0 %v8338_v5  ;;  %8308 = vmatpush3.bf16.msra.mxu1 %v8338_v5  ;;  %v8371_v30 = vld [vmem:[%s10679_s24 + $0x30] ss:$8 sps:$4 sm:$0xff]   ;;  %v9053_v35 = vld [vmem:[%s10680_s23] sm:$0xff]  ;;  %v9060_v44 = vld [vmem:[%s10680_s23 + $0x8] sm:$0xff] }
  0x2d   : > { %7435 = vmatprep.subr.bf16.mxu0 %v8339_v6  ;;  %8301 = vmatprep.subr.bf16.mxu1 %v8339_v6  ;;  %v8372_v31 = vld [vmem:[%s10679_s24 + $0x70] ss:$8 sps:$4 sm:$0xff]  }
  0x30   : > { %7436 = vmatpush3.bf16.msra.mxu0 %v8340_v7  ;;  %8309 = vmatpush3.bf16.msra.mxu1 %v8340_v7 }
  0x31   : > { %7437 = vmatprep.subr.bf16.mxu0 %v8341_v8  ;;  %8302 = vmatprep.subr.bf16.mxu1 %v8341_v8 }
  0x34   : > { %7438 = vmatpush3.bf16.msra.mxu0 %v8342_v9  ;;  %8310 = vmatpush3.bf16.msra.mxu1 %v8342_v9 }
  0x35   : > { %7439 = vmatprep.subr.bf16.mxu0 %v8343_v10  ;;  %8303 = vmatprep.subr.bf16.mxu1 %v8343_v10 }
  0x38   : > { %7440 = vmatpush3.bf16.msra.mxu0 %v8344_v13  ;;  %8311 = vmatpush3.bf16.msra.mxu1 %v8344_v13 }
  0x39   : > { %7441 = vmatprep.subr.bf16.mxu0 %v8345_v14  ;;  %8304 = vmatprep.subr.bf16.mxu1 %v8345_v14 }
  0x3c   : > { %7442 = vmatpush3.bf16.msra.mxu0 %v8346_v15  ;;  %8312 = vmatpush3.bf16.msra.mxu1 %v8346_v15 }
  0x3d   : > { %7443 = vmatprep.subr.bf16.mxu0 %v8347_v16  ;;  %8305 = vmatprep.subr.bf16.mxu1 %v8347_v16 }
  0x40   : > { %7444 = vmatpush3.bf16.msra.mxu0 %v8348_v17  ;;  %8313 = vmatpush3.bf16.msra.mxu1 %v8348_v17 }
  0x43   : > { %985 = vmatmul.mubr.bf16.vlgmr.msra.gmra.mxu0 %v8349_v18  ;;  %1017 = vmatmul.mubr.bf16.vlgmr.msra.gmra.mxu1 %v8352_v19 }
  0x44   : > { %992 = vmatprep.mubr.bf16.mxu0 %v8355_v20  ;;  %1024 = vmatprep.mubr.bf16.mxu1 %v8357_v21 }
  0x4b   : > { %993 = vmatmul.mubr.bf16.gmra.mxu0 %v8359_v22  ;;  %1025 = vmatmul.mubr.bf16.gmra.mxu1 %v8360_v23 }
  0x4c   : > { %1000 = vmatprep.mubr.bf16.mxu0 %v8361_v24  ;;  %1032 = vmatprep.mubr.bf16.mxu1 %v8363_v25 }
  0x53   : > { %1001 = vmatmul.mubr.bf16.gmra.mxu0 %v8365_v26  ;;  %1033 = vmatmul.mubr.bf16.gmra.mxu1 %v8366_v27 }
  0x54   : > { %1008 = vmatprep.mubr.bf16.mxu0 %v8367_v28  ;;  %1040 = vmatprep.mubr.bf16.mxu1 %v8369_v29 }
  0x5b   : > { %1009 = vmatmul.mubr.bf16.gmra.mxu0 %v8371_v30  ;;  %1041 = vmatmul.mubr.bf16.gmra.mxu1 %v8372_v31 }
 0x103   : > { %v7445_v32 = vpop.f32.mrf.mxu0  ;;  %v7469_v33 = vpop.f32.mrf.mxu1 }
 0x105   : > { %v7446_v34 = vpop.f32.mrf.mxu0  ;;  %v7470_v36 = vpop.f32.mrf.mxu1 }
 0x106   : > { %v7447_v37 = vadd.f32 %v7446_v34, %v7445_v32  ;;  %v7471_v38 = vadd.f32 %v7470_v36, %v7469_v33 }
 0x107   : > { %v7448_v39 = vpop.f32.mrf.mxu0  ;;  %v7472_v40 = vpop.f32.mrf.mxu1 }
 0x108   : > { %v1051_v41 = vadd.f32 %v7447_v37, %v9053_v35  ;;  %v1059_v42 = vadd.f32 %v7471_v38, %v9053_v35 }
 0x109   : > { %v7449_v43 = vpop.f32.mrf.mxu0  ;;  %v7473_v45 = vpop.f32.mrf.mxu1 }
 0x10a   : > { %1067 = vst [vmem:[#allocation2] sm:$0xff] %v1051_v41  ;;  %1075 = vst [vmem:[#allocation2 + $0x40] sm:$0xff] %v1059_v42  ;;  %v7450_v46 = vadd.f32 %v7449_v43, %v7448_v39  ;;  %v7474_v47 = vadd.f32 %v7473_v45, %v7472_v40 }
 0x10b   : > { %v7451_v48 = vpop.f32.mrf.mxu0  ;;  %v7475_v49 = vpop.f32.mrf.mxu1 }
 0x10c   : > { %v1052_v50 = vadd.f32 %v7450_v46, %v9060_v44  ;;  %v1060_v51 = vadd.f32 %v7474_v47, %v9060_v44 }
 0x10d   : > { %v7452_v52 = vpop.f32.mrf.mxu0  ;;  %v7476_v53 = vpop.f32.mrf.mxu1 }
 0x10e   : > { %1068 = vst [vmem:[#allocation2 + $0x8] sm:$0xff] %v1052_v50  ;;  %1076 = vst [vmem:[#allocation2 + $0x48] sm:$0xff] %v1060_v51  ;;  %v7453_v54 = vadd.f32 %v7452_v52, %v7451_v48  ;;  %v7477_v55 = vadd.f32 %v7476_v53, %v7475_v49 }
 0x10f   : > { %v7454_v56 = vpop.f32.mrf.mxu0  ;;  %v7478_v57 = vpop.f32.mrf.mxu1 }
 0x110   : > { %v1053_v58 = vadd.f32 %v7453_v54, %v9053_v35  ;;  %v1061_v59 = vadd.f32 %v7477_v55, %v9053_v35 }
 0x111   : > { %v7455_v60 = vpop.f32.mrf.mxu0  ;;  %v7479_v61 = vpop.f32.mrf.mxu1 }
 0x112   : > { %1069 = vst [vmem:[#allocation2 + $0x10] sm:$0xff] %v1053_v58  ;;  %1077 = vst [vmem:[#allocation2 + $0x50] sm:$0xff] %v1061_v59  ;;  %v7456_v62 = vadd.f32 %v7455_v60, %v7454_v56  ;;  %v7480_v63 = vadd.f32 %v7479_v61, %v7478_v57 }
 0x113   : > { %v7457_v0 = vpop.f32.mrf.mxu0  ;;  %v7481_v1 = vpop.f32.mrf.mxu1 }
 0x114   : > { %v1054_v2 = vadd.f32 %v7456_v62, %v9060_v44  ;;  %v1062_v3 = vadd.f32 %v7480_v63, %v9060_v44 }
 0x115   : > { %v7458_v4 = vpop.f32.mrf.mxu0  ;;  %v7482_v5 = vpop.f32.mrf.mxu1 }
 0x116   : > { %1070 = vst [vmem:[#allocation2 + $0x18] sm:$0xff] %v1054_v2  ;;  %1078 = vst [vmem:[#allocation2 + $0x58] sm:$0xff] %v1062_v3  ;;  %v7459_v6 = vadd.f32 %v7458_v4, %v7457_v0  ;;  %v7483_v7 = vadd.f32 %v7482_v5, %v7481_v1 }
 0x117   : > { %v7460_v8 = vpop.f32.mrf.mxu0  ;;  %v7484_v9 = vpop.f32.mrf.mxu1 }
 0x118   : > { %v1055_v10 = vadd.f32 %v7459_v6, %v9053_v35  ;;  %v1063_v11 = vadd.f32 %v7483_v7, %v9053_v35 }
 0x119   : > { %v7461_v12 = vpop.f32.mrf.mxu0  ;;  %v7485_v13 = vpop.f32.mrf.mxu1 }
 0x11a   : > { %1071 = vst [vmem:[#allocation2 + $0x20] sm:$0xff] %v1055_v10  ;;  %1079 = vst [vmem:[#allocation2 + $0x60] sm:$0xff] %v1063_v11  ;;  %v7462_v14 = vadd.f32 %v7461_v12, %v7460_v8  ;;  %v7486_v15 = vadd.f32 %v7485_v13, %v7484_v9 }
 0x11b   : > { %v7463_v16 = vpop.f32.mrf.mxu0  ;;  %v7487_v17 = vpop.f32.mrf.mxu1 }
 0x11c   : > { %v1056_v18 = vadd.f32 %v7462_v14, %v9060_v44  ;;  %v1064_v19 = vadd.f32 %v7486_v15, %v9060_v44 }
 0x11d   : > { %v7464_v20 = vpop.f32.mrf.mxu0  ;;  %v7488_v21 = vpop.f32.mrf.mxu1 }
 0x11e   : > { %1072 = vst [vmem:[#allocation2 + $0x28] sm:$0xff] %v1056_v18  ;;  %1080 = vst [vmem:[#allocation2 + $0x68] sm:$0xff] %v1064_v19  ;;  %v7465_v22 = vadd.f32 %v7464_v20, %v7463_v16  ;;  %v7489_v23 = vadd.f32 %v7488_v21, %v7487_v17 }
 0x11f   : > { %v7466_v24 = vpop.f32.mrf.mxu0  ;;  %v7490_v25 = vpop.f32.mrf.mxu1 }
 0x120   : > { %v1057_v26 = vadd.f32 %v7465_v22, %v9053_v35  ;;  %v1065_v27 = vadd.f32 %v7489_v23, %v9053_v35 }
 0x121   : > { %v7467_v28 = vpop.f32.mrf.mxu0  ;;  %v7491_v29 = vpop.f32.mrf.mxu1 }
 0x122   : > { %1073 = vst [vmem:[#allocation2 + $0x30] sm:$0xff] %v1057_v26  ;;  %1081 = vst [vmem:[#allocation2 + $0x70] sm:$0xff] %v1065_v27  ;;  %v7468_v30 = vadd.f32 %v7467_v28, %v7466_v24  ;;  %v7492_v31 = vadd.f32 %v7491_v29, %v7490_v25 }
 0x124   : > { %v1058_v32 = vadd.f32 %v7468_v30, %v9060_v44  ;;  %v1066_v33 = vadd.f32 %v7492_v31, %v9060_v44 }
 0x126   : > { %1074 = vst [vmem:[#allocation2 + $0x38] sm:$0xff] %v1058_v32  ;;  %1082 = vst [vmem:[#allocation2 + $0x78] sm:$0xff] %v1066_v33 }
 0x127 PF: > { %v1083_v34 = vld [vmem:[#allocation2] sm:$0xff]  ;;  %v1085_v36 = vld [vmem:[#allocation2 + $0x10] sm:$0xff]  ;;  %v1084_v37 = vld [vmem:[#allocation2 + $0x8] sm:$0xff]  ;;  %s10681_s1 = scalar_lea.vmem %s10641_s3, %s8898_s29  ;;  %s10682_s0 = scalar_lea.vmem %s10642_s4, %s8898_s29  ;;  %vm1815_vm0 = vcmask 523264   ;;  %vm2528_vm1 = vcmask 130048  }
 0x128   : > { %1101 = vadd.xlane.f32.xlu0 %v1083_v34  ;;  %1105 = vadd.xlane.f32.xlu1 %v1085_v36  ;;  %v1086_v38 = vld [vmem:[#allocation2 + $0x18] sm:$0xff]  ;;  %v1087_v35 = vld [vmem:[#allocation2 + $0x20] sm:$0xff]  ;;  %v1088_v39 = vld [vmem:[#allocation2 + $0x28] sm:$0xff]  ;;  %s10684_s26 = scalar_lea.vmem %s10645_s7, %s8898_s29  ;;  %s10692_s27 = scalar_lea.vmem %s10646_s8, %s8898_s29 }
 0x129   : > { %v1089_v40 = vld [vmem:[#allocation2 + $0x30] sm:$0xff]  ;;  %v9076_v42 = vld [vmem:[#allocation2 + $0x40] sm:$0xff]  ;;  %v9078_v43 = vld [vmem:[#allocation2 + $0x48] sm:$0xff]  ;;  %p7410_p5 = scmp.ne.s32.totalorder %s8892_s28, 1 }
 0x12a   : > { %v9080_v44 = vld [vmem:[#allocation2 + $0x50] sm:$0xff]  ;;  %v9082_v45 = vld [vmem:[#allocation2 + $0x58] sm:$0xff]  ;;  %v9086_v46 = vld [vmem:[#allocation2 + $0x60] sm:$0xff]  ;;  %s10702_s21 = sld [smem:[#allocation18_spill]] (!%p7410_p5) }
 0x12b   : > { %v9088_v47 = vld [vmem:[#allocation2 + $0x68] sm:$0xff]  ;;  %v9092_v48 = vld [vmem:[#allocation2 + $0x70] sm:$0xff]  ;;  %v8373_v21 = vld [vmem:[%s8922_s17 + $0x38] sm:$0xff]  }
 0x12c   : > { %1103 = vadd.xlane.f32.xlu0 %v1084_v37  ;;  %1107 = vadd.xlane.f32.xlu1 %v1086_v38  ;;  %v8374_v22 = vld [vmem:[%s8922_s17 + $0xb8] sm:$0xff]   ;;  %v8375_v31 = vld [vmem:[%s8922_s17 + $0x30] sm:$0xff]  }
 0x12d   : > { %v1090_v41 = vld [vmem:[#allocation2 + $0x38] sm:$0xff]  ;;  %7814 = vmatprep.subr.bf16.mxu0 %v8373_v21  ;;  %7846 = vmatprep.subr.bf16.mxu1 %v8374_v22  ;;  %v8376_v32 = vld [vmem:[%s8922_s17 + $0xb0] sm:$0xff]  }
 0x12e   : > { %v9094_v49 = vld [vmem:[#allocation2 + $0x78] sm:$0xff]  ;;  %7815 = vmatpush3.bf16.msra.mxu0 %v8373_v21  ;;  %7847 = vmatpush3.bf16.msra.mxu1 %v8374_v22 }
 0x12f   : > { %7816 = vmatprep.subr.bf16.mxu0 %v8375_v31  ;;  %7848 = vmatprep.subr.bf16.mxu1 %v8376_v32 }
 0x130   : > { %1109 = vadd.xlane.f32.xlu0 %v1087_v35  ;;  %1111 = vadd.xlane.f32.xlu1 %v1088_v39 }
 0x132   : > { %7817 = vmatpush3.bf16.msra.mxu0 %v8375_v31  ;;  %7849 = vmatpush3.bf16.msra.mxu1 %v8376_v32 }
 0x134   : > { %1113 = vadd.xlane.f32.xlu0 %v1089_v40  ;;  %1115 = vadd.xlane.f32.xlu1 %v1090_v41 }
 0x138   : > { %1117 = vadd.xlane.f32.xlu0 %v9076_v42  ;;  %1119 = vadd.xlane.f32.xlu1 %v9078_v43 }
 0x13c   : > { %1121 = vadd.xlane.f32.xlu0 %v9080_v44  ;;  %1123 = vadd.xlane.f32.xlu1 %v9082_v45 }
 0x140   : > { %1125 = vadd.xlane.f32.xlu0 %v9086_v46  ;;  %1127 = vadd.xlane.f32.xlu1 %v9088_v47 }
 0x144   : > { %1129 = vadd.xlane.f32.xlu0 %v9092_v48  ;;  %1131 = vadd.xlane.f32.xlu1 %v9094_v49 }
 0x1b1   : > { %v1102_v50 = vpop.xlane.xlu0 %1101  ;;  %v1106_v51 = vpop.xlane.xlu1 %1105 }
 0x1b2   : > { %v1134_v52 = vmul.f32 0.0078125, %v1102_v50  ;;  %v1136_v53 = vmul.f32 0.0078125, %v1106_v51 }
 0x1b4   : > { %v9100_v54 = vsub.f32 %v1083_v34, %v1134_v52  ;;  %v9102_v55 = vsub.f32 %v1085_v36, %v1136_v53 }
 0x1b5   : > { %v1104_v56 = vpop.xlane.xlu0 %1103  ;;  %v1108_v57 = vpop.xlane.xlu1 %1107 }
 0x1b6   : > { %v1135_v58 = vmul.f32 0.0078125, %v1104_v56  ;;  %v1166_v59 = vmul.f32 %v9100_v54, %v9100_v54  ;;  %v1137_v60 = vmul.f32 0.0078125, %v1108_v57  ;;  %v1168_v61 = vmul.f32 %v9102_v55, %v9102_v55  ;;  %v8379_v57 = vld [vmem:[%s8922_s17 + $0x20] sm:$0xff]  }
 0x1b8   : > { %1182 = vadd.xlane.f32.xlu0 %v1166_v59  ;;  %v9108_v62 = vsub.f32 %v1084_v37, %v1135_v58  ;;  %v9110_v63 = vsub.f32 %v1086_v38, %v1137_v60  ;;  %v8380_v58 = vld [vmem:[%s8922_s17 + $0xa0] sm:$0xff]  }
 0x1b9   : > { %v1110_v0 = vpop.xlane.xlu0 %1109  ;;  %v1112_v1 = vpop.xlane.xlu1 %1111 }
 0x1ba   : > { %v1138_v2 = vmul.f32 0.0078125, %v1110_v0  ;;  %v1167_v3 = vmul.f32 %v9108_v62, %v9108_v62  ;;  %v1139_v4 = vmul.f32 0.0078125, %v1112_v1  ;;  %v1169_v5 = vmul.f32 %v9110_v63, %v9110_v63  ;;  %v8382_v0 = vld [vmem:[%s8922_s17 + $0x98] sm:$0xff]   ;;  %v8384_v1 = vld [vmem:[%s8922_s17 + $0x90] sm:$0xff]  }
 0x1bc   : > { %1186 = vadd.xlane.f32.xlu0 %v1168_v61  ;;  %1184 = vadd.xlane.f32.xlu1 %v1167_v3  ;;  %v9116_v6 = vsub.f32 %v1087_v35, %v1138_v2  ;;  %v9118_v7 = vsub.f32 %v1088_v39, %v1139_v4  ;;  %v8381_v61 = vld [vmem:[%s8922_s17 + $0x18] sm:$0xff]   ;;  %v8385_v2 = vld [vmem:[%s8922_s17 + $0x8] sm:$0xff]   ;;  %v8387_v4 = vld [vmem:[%s8922_s17] sm:$0xff]  }
 0x1bd   : > { %v1114_v8 = vpop.xlane.xlu0 %1113  ;;  %v1116_v9 = vpop.xlane.xlu1 %1115  ;;  %v8386_v3 = vld [vmem:[%s8922_s17 + $0x88] sm:$0xff]  }
 0x1be   : > { %v1140_v10 = vmul.f32 0.0078125, %v1114_v8  ;;  %v1170_v11 = vmul.f32 %v9116_v6, %v9116_v6  ;;  %v1141_v12 = vmul.f32 0.0078125, %v1116_v9  ;;  %v1171_v13 = vmul.f32 %v9118_v7, %v9118_v7  ;;  %v9189_v8 = vld [vmem:[%s8922_s17 + $0x138] sm:$0xff]  }
 0x1c0   : > { %1188 = vadd.xlane.f32.xlu1 %v1169_v5  ;;  %1190 = vadd.xlane.f32.xlu0 %v1170_v11  ;;  %v9124_v14 = vsub.f32 %v1089_v40, %v1140_v10  ;;  %v9126_v15 = vsub.f32 %v1090_v41, %v1141_v12  ;;  %v8377_v41 = vld [vmem:[%s8922_s17 + $0x28] sm:$0xff]   ;;  %v8388_v5 = vld [vmem:[%s8922_s17 + $0x80] sm:$0xff]  }
 0x1c1   : > { %v1118_v16 = vpop.xlane.xlu0 %1117  ;;  %v1120_v17 = vpop.xlane.xlu1 %1119  ;;  %7818 = vmatprep.subr.bf16.mxu0 %v8377_v41 }
 0x1c2   : > { %v1142_v18 = vmul.f32 0.0078125, %v1118_v16  ;;  %v1172_v19 = vmul.f32 %v9124_v14, %v9124_v14  ;;  %v1143_v20 = vmul.f32 0.0078125, %v1120_v17  ;;  %v1173_v23 = vmul.f32 %v9126_v15, %v9126_v15  ;;  %7819 = vmatpush3.bf16.msra.mxu0 %v8377_v41 }
 0x1c3   : > { %7820 = vmatprep.subr.bf16.mxu0 %v8379_v57 }
 0x1c4   : > { %1192 = vadd.xlane.f32.xlu1 %v1171_v13  ;;  %1194 = vadd.xlane.f32.xlu0 %v1172_v19  ;;  %v9135_v24 = vsub.f32 %v9076_v42, %v1142_v18  ;;  %v9138_v25 = vsub.f32 %v9078_v43, %v1143_v20  ;;  %v8378_v42 = vld [vmem:[%s8922_s17 + $0xa8] sm:$0xff]  }
 0x1c5   : > { %v1122_v26 = vpop.xlane.xlu0 %1121  ;;  %v1124_v27 = vpop.xlane.xlu1 %1123  ;;  %7850 = vmatprep.subr.bf16.mxu1 %v8378_v42 }
 0x1c6   : > { %v1144_v28 = vmul.f32 0.0078125, %v1122_v26  ;;  %v1174_v29 = vmul.f32 %v9135_v24, %v9135_v24  ;;  %v1145_v30 = vmul.f32 0.0078125, %v1124_v27  ;;  %v1175_v33 = vmul.f32 %v9138_v25, %v9138_v25  ;;  %7851 = vmatpush3.bf16.msra.mxu1 %v8378_v42  ;;  %7821 = vmatpush3.bf16.msra.mxu0 %v8379_v57 }
 0x1c7   : > { %7852 = vmatprep.subr.bf16.mxu1 %v8380_v58  ;;  %7822 = vmatprep.subr.bf16.mxu0 %v8381_v61 }
 0x1c8   : > { %1196 = vadd.xlane.f32.xlu1 %v1173_v23  ;;  %1198 = vadd.xlane.f32.xlu0 %v1174_v29  ;;  %v9147_v34 = vsub.f32 %v9080_v44, %v1144_v28  ;;  %v9150_v36 = vsub.f32 %v9082_v45, %v1145_v30 }
 0x1c9   : > { %v1126_v37 = vpop.xlane.xlu0 %1125  ;;  %v1128_v38 = vpop.xlane.xlu1 %1127 }
 0x1ca   : > { %v1146_v35 = vmul.f32 0.0078125, %v1126_v37  ;;  %v1176_v39 = vmul.f32 %v9147_v34, %v9147_v34  ;;  %v1147_v40 = vmul.f32 0.0078125, %v1128_v38  ;;  %v1177_v43 = vmul.f32 %v9150_v36, %v9150_v36  ;;  %7853 = vmatpush3.bf16.msra.mxu1 %v8380_v58  ;;  %7823 = vmatpush3.bf16.msra.mxu0 %v8381_v61 }
 0x1cb   : > { %7854 = vmatprep.subr.bf16.mxu1 %v8382_v0 }
 0x1cc   : > { %1200 = vadd.xlane.f32.xlu1 %v1175_v33  ;;  %1202 = vadd.xlane.f32.xlu0 %v1176_v39  ;;  %v9159_v44 = vsub.f32 %v9086_v46, %v1146_v35  ;;  %v9162_v45 = vsub.f32 %v9088_v47, %v1147_v40 }
 0x1cd   : > { %v1130_v50 = vpop.xlane.xlu0 %1129  ;;  %v1132_v51 = vpop.xlane.xlu1 %1131 }
 0x1ce   : > { %v1148_v52 = vmul.f32 0.0078125, %v1130_v50  ;;  %v1178_v53 = vmul.f32 %v9159_v44, %v9159_v44  ;;  %v1149_v56 = vmul.f32 0.0078125, %v1132_v51  ;;  %v1179_v46 = vmul.f32 %v9162_v45, %v9162_v45  ;;  %7855 = vmatpush3.bf16.msra.mxu1 %v8382_v0 }
 0x1cf   : > { %7856 = vmatprep.subr.bf16.mxu1 %v8384_v1 }
 0x1d0   : > { %1204 = vadd.xlane.f32.xlu1 %v1177_v43  ;;  %1206 = vadd.xlane.f32.xlu0 %v1178_v53  ;;  %v9171_v47 = vsub.f32 %v9092_v48, %v1148_v52  ;;  %v9174_v59 = vsub.f32 %v9094_v49, %v1149_v56  ;;  %v8383_v49 = vld [vmem:[%s8922_s17 + $0x10] sm:$0xff]   ;;  %v9198_v52 = vld [vmem:[%s10681_s1] ss:$0 sm:$0xff]  ;;  %s10693_s1 = scalar_lea.vmem %s10647_s9, %s8898_s29 }
 0x1d1   : > { %7824 = vmatprep.subr.bf16.mxu0 %v8383_v49 }
 0x1d2   : > { %v1180_v60 = vmul.f32 %v9171_v47, %v9171_v47  ;;  %v1181_v48 = vmul.f32 %v9174_v59, %v9174_v59  ;;  %7825 = vmatpush3.bf16.msra.mxu0 %v8383_v49  ;;  %7857 = vmatpush3.bf16.msra.mxu1 %v8384_v1 }
 0x1d3   : > { %7826 = vmatprep.subr.bf16.mxu0 %v8385_v2  ;;  %7858 = vmatprep.subr.bf16.mxu1 %v8386_v3 }
 0x1d4   : > { %1208 = vadd.xlane.f32.xlu1 %v1179_v46  ;;  %1210 = vadd.xlane.f32.xlu0 %v1180_v60 }
 0x1d6   : > { %7827 = vmatpush3.bf16.msra.mxu0 %v8385_v2  ;;  %7859 = vmatpush3.bf16.msra.mxu1 %v8386_v3 }
 0x1d7   : > { %7828 = vmatprep.subr.bf16.mxu0 %v8387_v4  ;;  %7860 = vmatprep.subr.bf16.mxu1 %v8388_v5 }
 0x1d8   : > { %1212 = vadd.xlane.f32.xlu1 %v1181_v48 }
 0x1da   : > { %7829 = vmatpush3.bf16.msra.mxu0 %v8387_v4  ;;  %7861 = vmatpush3.bf16.msra.mxu1 %v8388_v5  ;;  %v9209_v4 = vld [vmem:[%s10682_s0] ss:$0 sm:$0xff] }
 0x1db   : > { %7878 = vmatprep.subr.bf16.mxu0 %v9189_v8 }
 0x241   : > { %v1183_v9 = vpop.xlane.xlu0 %1182 }
 0x242   : > { %v1214_v10 = vmul.f32 0.0078125, %v1183_v9 }
 0x244   : > { %v1230_v11 = vadd.f32 1e-05, %v1214_v10 }
 0x245   : > { %v1185_v12 = vpop.xlane.xlu1 %1184  ;;  %v1187_v13 = vpop.xlane.xlu0 %1186 }
 0x246   : > { %8469 = vrsqrt.f32 %v1230_v11  ;;  %v1215_v16 = vmul.f32 0.0078125, %v1185_v12  ;;  %v1216_v17 = vmul.f32 0.0078125, %v1187_v13 }
 0x248   : > { %v1231_v18 = vadd.f32 1e-05, %v1215_v16  ;;  %v1232_v19 = vadd.f32 1e-05, %v1216_v17 }
 0x249   : > { %v1189_v20 = vpop.xlane.xlu1 %1188  ;;  %v1191_v21 = vpop.xlane.xlu0 %1190 }
 0x24a   : > { %8471 = vrsqrt.f32 %v1231_v18  ;;  %v1217_v22 = vmul.f32 0.0078125, %v1189_v20  ;;  %v1218_v23 = vmul.f32 0.0078125, %v1191_v21 }
 0x24b   : > { %8473 = vrsqrt.f32 %v1232_v19 }
 0x24c   : > { %v1233_v26 = vadd.f32 1e-05, %v1217_v22  ;;  %v1234_v27 = vadd.f32 1e-05, %v1218_v23 }
 0x24d   : > { %v1193_v28 = vpop.xlane.xlu1 %1192  ;;  %v1195_v29 = vpop.xlane.xlu0 %1194 }
 0x24e   : > { %8475 = vrsqrt.f32 %v1233_v26  ;;  %v1219_v30 = vmul.f32 0.0078125, %v1193_v28  ;;  %v1220_v31 = vmul.f32 0.0078125, %v1195_v29 }
 0x24f   : > { %8477 = vrsqrt.f32 %v1234_v27 }
 0x250   : > { %v1235_v32 = vadd.f32 1e-05, %v1219_v30  ;;  %v1236_v33 = vadd.f32 1e-05, %v1220_v31 }
 0x251   : > { %v1197_v37 = vpop.xlane.xlu1 %1196  ;;  %v1199_v38 = vpop.xlane.xlu0 %1198 }
 0x252   : > { %8479 = vrsqrt.f32 %v1235_v32  ;;  %v1221_v35 = vmul.f32 0.0078125, %v1197_v37  ;;  %v1222_v39 = vmul.f32 0.0078125, %v1199_v38 }
 0x253   : > { %v8470_v40 = vpop.eup %8469  ;;  %8481 = vrsqrt.f32 %v1236_v33 }
 0x254   : > { %v1237_v41 = vadd.f32 1e-05, %v1221_v35  ;;  %v1238_v42 = vadd.f32 1e-05, %v1222_v39  ;;  %v1262_v43 = vmul.f32 %v8470_v40, %v9100_v54  ;;  %v8390_v35 = vld [vmem:[%s8922_s17 + $0x130] sm:$0xff]  }
 0x255   : > { %v1201_v50 = vpop.xlane.xlu1 %1200  ;;  %v1203_v51 = vpop.xlane.xlu0 %1202 }
 0x256   : > { %8483 = vrsqrt.f32 %v1237_v41  ;;  %v1223_v53 = vmul.f32 0.0078125, %v1201_v50  ;;  %v1224_v56 = vmul.f32 0.0078125, %v1203_v51  ;;  %v1284_v54 = vmul.f32 %v9198_v52, %v1262_v43 }
 0x257   : > { %v8472_v57 = vpop.eup %8471  ;;  %8485 = vrsqrt.f32 %v1238_v42 }
 0x258   : > { %v8474_v58 = vpop.eup %8473  ;;  %v1263_v46 = vmul.f32 %v8472_v57, %v9108_v62  ;;  %v1239_v60 = vadd.f32 1e-05, %v1223_v53  ;;  %v1240_v61 = vadd.f32 1e-05, %v1224_v56  ;;  %v1306_v18 = vadd.f32 %v9209_v4, %v1284_v54  ;;  %v8391_v56 = vld [vmem:[%s8922_s17 + $0x128] sm:$0xff]  }
 0x259   : > { %v1264_v0 = vmul.f32 %v8474_v58, %v9102_v55  ;;  %v1205_v48 = vpop.xlane.xlu1 %1204  ;;  %v1207_v49 = vpop.xlane.xlu0 %1206 }
 0x25a   : > { %v1285_v1 = vmul.f32 %v9198_v52, %v1263_v46  ;;  %8487 = vrsqrt.f32 %v1239_v60  ;;  %v1225_v2 = vmul.f32 0.0078125, %v1205_v48  ;;  %v1226_v3 = vmul.f32 0.0078125, %v1207_v49 }
 0x25b   : > { %v8476_v62 = vpop.eup %8475  ;;  %v1286_v5 = vmul.f32 %v9198_v52, %v1264_v0  ;;  %8489 = vrsqrt.f32 %v1240_v61  ;;  %v8392_v0 = vld [vmem:[%s8922_s17 + $0x120] sm:$0xff]  }
 0x25c   : > { %v8478_v9 = vpop.eup %8477  ;;  %v1265_v55 = vmul.f32 %v8476_v62, %v9110_v63  ;;  %v1241_v10 = vadd.f32 1e-05, %v1225_v2  ;;  %v1242_v11 = vadd.f32 1e-05, %v1226_v3  ;;  %v1307_v12 = vadd.f32 %v9209_v4, %v1285_v1 }
 0x25d   : > { %v1266_v13 = vmul.f32 %v8478_v9, %v9116_v6  ;;  %v1209_v16 = vpop.xlane.xlu1 %1208  ;;  %v1211_v17 = vpop.xlane.xlu0 %1210  ;;  %v1308_v26 = vadd.f32 %v9209_v4, %v1286_v5  ;;  %v8393_v9 = vld [vmem:[%s8922_s17 + $0x118] sm:$0xff]  }
 0x25e   : > { %v1287_v19 = vmul.f32 %v9198_v52, %v1265_v55  ;;  %8491 = vrsqrt.f32 %v1241_v10  ;;  %v1227_v20 = vmul.f32 0.0078125, %v1209_v16  ;;  %v1228_v21 = vmul.f32 0.0078125, %v1211_v17 }
 0x25f   : > { %v8480_v22 = vpop.eup %8479  ;;  %v1288_v23 = vmul.f32 %v9198_v52, %v1266_v13  ;;  %8493 = vrsqrt.f32 %v1242_v11  ;;  %v9218_v63 = vpack.c.bf16 %v1307_v12, %v1306_v18  ;;  %v8394_v18 = vld [vmem:[%s8922_s17 + $0x110] sm:$0xff]  }
 0x260   : > { %v8482_v27 = vpop.eup %8481  ;;  %v1267_v6 = vmul.f32 %v8480_v22, %v9118_v7  ;;  %v1243_v28 = vadd.f32 1e-05, %v1227_v20  ;;  %v1244_v29 = vadd.f32 1e-05, %v1228_v21  ;;  %v1309_v30 = vadd.f32 %v9209_v4, %v1287_v19 }
 0x261   : > { %v1268_v31 = vmul.f32 %v8482_v27, %v9124_v14  ;;  %7830 = vmatprep.mubr.bf16.mxu0 %v9218_v63  ;;  %7862 = vmatprep.mubr.bf16.mxu1 %v9218_v63  ;;  %v1213_v32 = vpop.xlane.xlu1 %1212  ;;  %v1310_v7 = vadd.f32 %v9209_v4, %v1288_v23 }
 0x262   : > { %v1289_v33 = vmul.f32 %v9198_v52, %v1267_v6  ;;  %8495 = vrsqrt.f32 %v1243_v28  ;;  %v1229_v37 = vmul.f32 0.0078125, %v1213_v32  ;;  %v9227_v38 = vpack.c.bf16 %v1309_v30, %v1308_v26  ;;  %v8395_v26 = vld [vmem:[%s8922_s17 + $0x108] sm:$0xff]   ;;  %v8396_v28 = vld [vmem:[%s8922_s17 + $0x100] sm:$0xff]  }
 0x263   : > { %v8484_v39 = vpop.eup %8483  ;;  %8497 = vrsqrt.f32 %v1244_v29  ;;  %v1290_v14 = vmul.f32 %v9198_v52, %v1268_v31 }
 0x264   : > { %v8486_v40 = vpop.eup %8485  ;;  %v1269_v41 = vmul.f32 %v8484_v39, %v9126_v15  ;;  %v1245_v42 = vadd.f32 1e-05, %v1229_v37  ;;  %7831 = vmatmul.mubr.bf16.vlgmr.msra.gmra.mxu0 %v9227_v38  ;;  %7863 = vmatmul.mubr.bf16.vlgmr.msra.gmra.mxu1 %v9227_v38  ;;  %v1311_v43 = vadd.f32 %v9209_v4, %v1289_v33 }
 0x265   : > { %v1270_v50 = vmul.f32 %v8486_v40, %v9135_v24  ;;  %7879 = vmatpush3.bf16.msra.mxu0 %v9189_v8  ;;  %v1312_v24 = vadd.f32 %v9209_v4, %v1290_v14 }
 0x266   : > { %v1291_v51 = vmul.f32 %v9198_v52, %v1269_v41  ;;  %8499 = vrsqrt.f32 %v1245_v42  ;;  %v9239_v53 = vpack.c.bf16 %v1311_v43, %v1310_v7  ;;  %7880 = vmatprep.subr.bf16.mxu0 %v8390_v35 }
 0x267   : > { %v8488_v15 = vpop.eup %8487  ;;  %v1292_v57 = vmul.f32 %v9198_v52, %v1270_v50 }
 0x268   : > { %v8490_v58 = vpop.eup %8489  ;;  %v1271_v46 = vmul.f32 %v8488_v15, %v9138_v25  ;;  %7834 = vmatprep.mubr.bf16.mxu0 %v9239_v53  ;;  %7866 = vmatprep.mubr.bf16.mxu1 %v9239_v53  ;;  %v1313_v8 = vadd.f32 %v9209_v4, %v1291_v51 }
 0x269   : > { %v1272_v60 = vmul.f32 %v8490_v58, %v9147_v34  ;;  %7881 = vmatpush3.bf16.msra.mxu0 %v8390_v35  ;;  %v1314_v25 = vadd.f32 %v9209_v4, %v1292_v57 }
 0x26a   : > { %v1293_v61 = vmul.f32 %v9198_v52, %v1271_v46  ;;  %v9250_v54 = vpack.c.bf16 %v1313_v8, %v1312_v24  ;;  %7882 = vmatprep.subr.bf16.mxu0 %v8391_v56 }
 0x26b   : > { %v8492_v48 = vpop.eup %8491  ;;  %v1294_v1 = vmul.f32 %v9198_v52, %v1272_v60 }
 0x26c   : > { %v8494_v49 = vpop.eup %8493  ;;  %v1273_v2 = vmul.f32 %v8492_v48, %v9150_v36  ;;  %7835 = vmatmul.mubr.bf16.gmra.mxu0 %v9250_v54  ;;  %7867 = vmatmul.mubr.bf16.gmra.mxu1 %v9250_v54  ;;  %v1315_v34 = vadd.f32 %v9209_v4, %v1293_v61 }
 0x26d   : > { %v1274_v3 = vmul.f32 %v8494_v49, %v9159_v44  ;;  %7883 = vmatpush3.bf16.msra.mxu0 %v8391_v56  ;;  %v1316_v44 = vadd.f32 %v9209_v4, %v1294_v1 }
 0x26e   : > { %v1295_v62 = vmul.f32 %v9198_v52, %v1273_v2  ;;  %v9261_v5 = vpack.c.bf16 %v1315_v34, %v1314_v25  ;;  %7884 = vmatprep.subr.bf16.mxu0 %v8392_v0 }
 0x26f   : > { %v8496_v55 = vpop.eup %8495  ;;  %v1296_v10 = vmul.f32 %v9198_v52, %v1274_v3 }
 0x270   : > { %v8498_v36 = vpop.eup %8497  ;;  %v1275_v11 = vmul.f32 %v8496_v55, %v9162_v45  ;;  %7838 = vmatprep.mubr.bf16.mxu0 %v9261_v5  ;;  %7870 = vmatprep.mubr.bf16.mxu1 %v9261_v5  ;;  %v1317_v12 = vadd.f32 %v9209_v4, %v1295_v62 }
 0x271   : > { %v1276_v13 = vmul.f32 %v8498_v36, %v9171_v47  ;;  %7885 = vmatpush3.bf16.msra.mxu0 %v8392_v0  ;;  %v1318_v45 = vadd.f32 %v9209_v4, %v1296_v10 }
 0x272   : > { %v1297_v16 = vmul.f32 %v9198_v52, %v1275_v11  ;;  %v9272_v17 = vpack.c.bf16 %v1317_v12, %v1316_v44  ;;  %7886 = vmatprep.subr.bf16.mxu0 %v8393_v9 }
 0x273   : > { %v8500_v19 = vpop.eup %8499  ;;  %v1298_v20 = vmul.f32 %v9198_v52, %v1276_v13 }
 0x274   : > { %v1277_v21 = vmul.f32 %v8500_v19, %v9174_v59  ;;  %7839 = vmatmul.mubr.bf16.gmra.mxu0 %v9272_v17  ;;  %7871 = vmatmul.mubr.bf16.gmra.mxu1 %v9272_v17  ;;  %v1319_v47 = vadd.f32 %v9209_v4, %v1297_v16 }
 0x275   : > { %7887 = vmatpush3.bf16.msra.mxu0 %v8393_v9  ;;  %v1320_v59 = vadd.f32 %v9209_v4, %v1298_v20 }
 0x276   : > { %v1299_v22 = vmul.f32 %v9198_v52, %v1277_v21  ;;  %v9282_v23 = vpack.c.bf16 %v1319_v47, %v1318_v45  ;;  %7888 = vmatprep.subr.bf16.mxu0 %v8394_v18 }
 0x278   : > { %7842 = vmatprep.mubr.bf16.mxu0 %v9282_v23  ;;  %7874 = vmatprep.mubr.bf16.mxu1 %v9282_v23  ;;  %v1321_v27 = vadd.f32 %v9209_v4, %v1299_v22 }
 0x279   : > { %7889 = vmatpush3.bf16.msra.mxu0 %v8394_v18 }
 0x27a   : > { %v9289_v6 = vpack.c.bf16 %v1321_v27, %v1320_v59  ;;  %7890 = vmatprep.subr.bf16.mxu0 %v8395_v26 }
 0x27c   : > { %7843 = vmatmul.mubr.bf16.gmra.mxu0 %v9289_v6  ;;  %7875 = vmatmul.mubr.bf16.gmra.mxu1 %v9289_v6 }
 0x27d   : > { %7891 = vmatpush3.bf16.msra.mxu0 %v8395_v26  ;;  %7894 = vmatprep.mubr.bf16.mxu0 %v9218_v63 }
 0x27e   : > { %7892 = vmatprep.subr.bf16.mxu0 %v8396_v28 }
 0x281   : > { %7893 = vmatpush3.bf16.msra.mxu0 %v8396_v28 }
 0x284   : > { %7895 = vmatmul.mubr.bf16.vlgmr.msra.gmra.mxu0 %v9227_v38 }
 0x285   : > { %7898 = vmatprep.mubr.bf16.mxu0 %v9239_v53 }
 0x28c   : > { %7899 = vmatmul.mubr.bf16.gmra.mxu0 %v9250_v54 }
 0x28d   : > { %7902 = vmatprep.mubr.bf16.mxu0 %v9261_v5 }
 0x294   : > { %7903 = vmatmul.mubr.bf16.gmra.mxu0 %v9272_v17 }
 0x295   : > { %7906 = vmatprep.mubr.bf16.mxu0 %v9282_v23 }
 0x29c   : > { %7907 = vmatmul.mubr.bf16.gmra.mxu0 %v9289_v6 }
 0x324   : > { %v7832_v52 = vpop.f32.mrf.mxu0  ;;  %v7864_v4 = vpop.f32.mrf.mxu1 }
 0x326   : > { %v1428_v29 = vpop.f32.mrf.mxu0  ;;  %v1590_v30 = vpop.f32.mrf.mxu1 }
 0x327   : > { %7914 = vmatprep.mubr.msk.f32.mxu1 %vm1815_vm0, %v1428_v29 }
 0x328   : > { %v7833_v31 = vpop.f32.mrf.mxu0  ;;  %v7865_v32 = vpop.f32.mrf.mxu1 }
 0x32a   : > { %v1431_v33 = vpop.f32.mrf.mxu0  ;;  %v1593_v37 = vpop.f32.mrf.mxu1 }
 0x32b   : > { %7910 = vmatprep.subr.msk.mxu1 %vm1815_vm0, %v1593_v37 }
 0x32c   : > { %v7836_v35 = vpop.f32.mrf.mxu0  ;;  %v7868_v39 = vpop.f32.mrf.mxu1  ;;  %7911 = vmatpush3.xpose.msk.msra.mxu1 %vm1815_vm0, %v1593_v37 }
 0x32d   : > { %7912 = vmatprep.subr.msk.mxu1 %vm1815_vm0, %v1590_v30 }
 0x32e   : > { %v1444_v7 = vpop.f32.mrf.mxu0  ;;  %v1606_v40 = vpop.f32.mrf.mxu1 }
 0x330   : > { %v7837_v14 = vpop.f32.mrf.mxu0  ;;  %v7869_v41 = vpop.f32.mrf.mxu1  ;;  %7913 = vmatpush3.xpose.msk.msra.mxu1 %vm1815_vm0, %v1590_v30 }
 0x331   : > { %7917 = vmatprep.subr.msk.mxu1 %vm1815_vm0, %v7865_v32 }
 0x332   : > { %v1447_v42 = vpop.f32.mrf.mxu0  ;;  %v1609_v43 = vpop.f32.mrf.mxu1 }
 0x333   : > { %7915 = vmatmul.mubr.msk.f32.vlgmr.msra.gmra.mxu1 %vm1815_vm0, %v1431_v33 }
 0x334   : > { %v7840_v50 = vpop.f32.mrf.mxu0  ;;  %v7872_v51 = vpop.f32.mrf.mxu1  ;;  %7918 = vmatpush3.xpose.msk.msra.mxu1 %vm1815_vm0, %v7865_v32  ;;  %7921 = vmatprep.mubr.msk.f32.mxu1 %vm1815_vm0, %v7832_v52 }
 0x335   : > { %7919 = vmatprep.subr.msk.mxu1 %vm1815_vm0, %v7864_v4 }
 0x336   : > { %v1460_v56 = vpop.f32.mrf.mxu0  ;;  %v1622_v15 = vpop.f32.mrf.mxu1 }
 0x337   : > { %7942 = vmatprep.mubr.msk.f32.mxu0 %vm1815_vm0, %v1460_v56 }
 0x338   : > { %v7841_v57 = vpop.f32.mrf.mxu0  ;;  %v7873_v58 = vpop.f32.mrf.mxu1  ;;  %7920 = vmatpush3.xpose.msk.msra.mxu1 %vm1815_vm0, %v7864_v4 }
 0x339   : > { %7924 = vmatprep.subr.msk.mxu1 %vm1815_vm0, %v1609_v43 }
 0x33a   : > { %v1463_v46 = vpop.f32.mrf.mxu0  ;;  %v1625_v24 = vpop.f32.mrf.mxu1 }
 0x33b   : > { %7922 = vmatmul.mubr.msk.f32.vlgmr.msra.gmra.mxu1 %vm1815_vm0, %v7833_v31  ;;  %7938 = vmatprep.subr.msk.mxu0 %vm1815_vm0, %v1625_v24 }
 0x33c   : > { %v7844_v8 = vpop.f32.mrf.mxu0  ;;  %v7876_v60 = vpop.f32.mrf.mxu1  ;;  %7925 = vmatpush3.xpose.msk.msra.mxu1 %vm1815_vm0, %v1609_v43  ;;  %7928 = vmatprep.mubr.msk.f32.mxu1 %vm1815_vm0, %v1444_v7 }
 0x33d   : > { %7939 = vmatpush3.xpose.msk.msra.mxu0 %vm1815_vm0, %v1625_v24  ;;  %7926 = vmatprep.subr.msk.mxu1 %vm1815_vm0, %v1606_v40 }
 0x33e   : > { %7940 = vmatprep.subr.msk.mxu0 %vm1815_vm0, %v1622_v15  ;;  %v1476_v61 = vpop.f32.mrf.mxu0  ;;  %v1638_v0 = vpop.f32.mrf.mxu1 }
 0x340   : > { %v7845_v48 = vpop.f32.mrf.mxu0  ;;  %v7877_v25 = vpop.f32.mrf.mxu1  ;;  %7927 = vmatpush3.xpose.msk.msra.mxu1 %vm1815_vm0, %v1606_v40 }
 0x341   : > { %7941 = vmatpush3.xpose.msk.msra.mxu0 %vm1815_vm0, %v1622_v15  ;;  %7931 = vmatprep.subr.msk.mxu1 %vm1815_vm0, %v7869_v41 }
 0x342   : > { %v1479_v49 = vpop.f32.mrf.mxu0  ;;  %v1641_v1 = vpop.f32.mrf.mxu1 }
 0x343   : > { %7929 = vmatmul.mubr.msk.f32.vlgmr.msra.gmra.mxu1 %vm1815_vm0, %v1447_v42  ;;  %7952 = vmatprep.subr.msk.mxu0 %vm1815_vm0, %v1641_v1 }
 0x344   : > { %7943 = vmatmul.mubr.msk.f32.vlgmr.msra.gmra.mxu0 %vm1815_vm0, %v1463_v46  ;;  %v7896_v2 = vpop.f32.mrf.mxu0  ;;  %7932 = vmatpush3.xpose.msk.msra.mxu1 %vm1815_vm0, %v7869_v41 }
 0x345   : > { %7935 = vmatprep.mubr.msk.f32.mxu1 %vm1815_vm0, %v7836_v35  ;;  %7953 = vmatpush3.xpose.msk.msra.mxu0 %vm1815_vm0, %v1641_v1 }
 0x346   : > { %7956 = vmatprep.mubr.msk.f32.mxu0 %vm1815_vm0, %v1476_v61  ;;  %7933 = vmatprep.subr.msk.mxu1 %vm1815_vm0, %v7868_v39  ;;  %v1752_v34 = vpop.f32.mrf.mxu0 }
 0x347   : > { %7954 = vmatprep.subr.msk.mxu0 %vm1815_vm0, %v1638_v0 }
 0x348   : > { %v7897_v3 = vpop.f32.mrf.mxu0  ;;  %7934 = vmatpush3.xpose.msk.msra.mxu1 %vm1815_vm0, %v7868_v39 }
 0x349   : > { %7955 = vmatpush3.xpose.msk.msra.mxu0 %vm1815_vm0, %v1638_v0  ;;  %7945 = vmatprep.subr.msk.mxu1 %vm1815_vm0, %v7873_v58 }
 0x34a   : > { %v1755_v62 = vpop.f32.mrf.mxu0 }
 0x34b   : > { %7936 = vmatmul.mubr.msk.f32.vlgmr.msra.gmra.mxu1 %vm1815_vm0, %v7837_v14  ;;  %7966 = vmatprep.subr.mxu0 %v1755_v62 }
 0x34c   : > { %7957 = vmatmul.mubr.msk.f32.vlgmr.msra.gmra.mxu0 %vm1815_vm0, %v1479_v49  ;;  %v9339_v9 = vpop.f32.mrf.mxu0  ;;  %7946 = vmatpush3.xpose.msk.msra.mxu1 %vm1815_vm0, %v7873_v58 }
 0x34d   : > { %7949 = vmatprep.mubr.msk.f32.mxu1 %vm1815_vm0, %v7840_v50  ;;  %7967 = vmatpush3.msra.mxu0 %v1755_v62 }
 0x34e   : > { %7947 = vmatprep.subr.msk.mxu1 %vm1815_vm0, %v7872_v51  ;;  %7968 = vmatprep.subr.mxu0 %v1752_v34  ;;  %v9344_v55 = vpop.f32.mrf.mxu0 }
 0x34f   : > { %7969 = vmatpush3.msra.mxu0 %v1752_v34 }
 0x350   : > { %v9346_v10 = vpop.f32.mrf.mxu0  ;;  %7948 = vmatpush3.xpose.msk.msra.mxu1 %vm1815_vm0, %v7872_v51 }
 0x351   : > { %7959 = vmatprep.subr.msk.mxu1 %vm1815_vm0, %v7877_v25 }
 0x352   : > { %v9350_v36 = vpop.f32.mrf.mxu0 }
 0x353   : > { %7950 = vmatmul.mubr.msk.f32.vlgmr.msra.gmra.mxu1 %vm1815_vm0, %v7841_v57  ;;  %7980 = vmatprep.subr.mxu0 %v9350_v36 }
 0x354   : > { %7960 = vmatpush3.xpose.msk.msra.mxu1 %vm1815_vm0, %v7877_v25  ;;  %7963 = vmatprep.mubr.msk.f32.mxu1 %vm1815_vm0, %v7844_v8  ;;  %v9362_v13 = vpop.f32.mrf.mxu0 }
 0x355   : > { %7961 = vmatprep.subr.msk.mxu1 %vm1815_vm0, %v7876_v60 }
 0x356   : > { %v9366_v18 = vpop.f32.mrf.mxu0 }
 0x358   : > { %7962 = vmatpush3.xpose.msk.msra.mxu1 %vm1815_vm0, %v7876_v60  ;;  %v9374_v22 = vpop.f32.mrf.mxu0 }
 0x359   : > { %7973 = vmatprep.subr.mxu1 %v7897_v3 }
 0x35a   : > { %v9378_v59 = vpop.f32.mrf.mxu0 }
 0x35b   : > { %7964 = vmatmul.mubr.msk.f32.vlgmr.msra.gmra.mxu1 %vm1815_vm0, %v7845_v48 }
 0x35c   : > { %7974 = vmatpush3.msra.mxu1 %v7897_v3  ;;  %v9380_v28 = vpop.f32.mrf.mxu0 }
 0x35d   : > { %7975 = vmatprep.subr.mxu1 %v7896_v2 }
 0x35e   : > { %7976 = vmatpush3.msra.mxu1 %v7896_v2  ;;  %v9382_v4 = vpop.f32.mrf.mxu0 }
 0x35f   : > { %7987 = vmatprep.subr.mxu1 %v9346_v10 }
 0x360   : > { %v9392_v35 = vpop.f32.mrf.mxu0 }
 0x362   : > { %v9400_v14 = vpop.f32.mrf.mxu0 }
 0x3f3   : > { %v7916_v11 = vpop.f32.mrf.mxu1 }
 0x3f4   : > { %v9386_v32 = vmul.f32 0.125, %v7916_v11 }
 0x3f5   : > { %v1894_v44 = vpop.f32.mrf.mxu1 }
 0x3f6   : > { %v9360_v12 = vmul.f32 0.125, %v1894_v44  ;;  %v2532_v40 = vsel %vm2528_vm1, %v9386_v32, -inf }
 0x3f8   : > { %v2529_v16 = vsel %vm2528_vm1, %v9360_v12, -inf }
 0x3f9   : > { %2530 = vmax.xlane.f32.xlu1 %v2529_v16 }
 0x3fb   : > { %v7923_v19 = vpop.f32.mrf.mxu1 }
 0x3fc   : > { %v9368_v45 = vmul.f32 0.125, %v7923_v19 }
 0x3fd   : > { %v1981_v20 = vpop.f32.mrf.mxu1 }
 0x3fe   : > { %v9370_v21 = vmul.f32 0.125, %v1981_v20  ;;  %v2538_v47 = vsel %vm2528_vm1, %v9368_v45, -inf }
 0x3ff   : > { %2539 = vmax.xlane.f32.xlu1 %v2538_v47 }
 0x400   : > { %v2535_v26 = vsel %vm2528_vm1, %v9370_v21, -inf }
 0x401   : > { %2536 = vmax.xlane.f32.xlu0 %v2535_v26 }
 0x403   : > { %v7930_v27 = vpop.f32.mrf.mxu1 }
 0x404   : > { %v7944_v43 = vpop.f32.mrf.mxu0  ;;  %v9404_v51 = vmul.f32 0.125, %v7930_v27 }
 0x405   : > { %v2068_v52 = vpop.f32.mrf.mxu1  ;;  %v9412_v46 = vmul.f32 0.125, %v7944_v43 }
 0x406   : > { %v9396_v7 = vmul.f32 0.125, %v2068_v52  ;;  %v2242_v58 = vpop.f32.mrf.mxu0  ;;  %v2544_v24 = vsel %vm2528_vm1, %v9404_v51, -inf }
 0x407   : > { %v2556_v49 = vsel %vm2528_vm1, %v9412_v46, -inf  ;;  %v9430_v3 = vmul.f32 0.125, %v2242_v58 }
 0x408   : > { %v2541_v15 = vsel %vm2528_vm1, %v9396_v7, -inf }
 0x409   : > { %v2553_v16 = vsel %vm2528_vm1, %v9430_v3, -inf }
 0x40b   : > { %v7937_v29 = vpop.f32.mrf.mxu1 }
 0x40c   : > { %v9384_v30 = vmul.f32 0.125, %v7937_v29  ;;  %v7958_v60 = vpop.f32.mrf.mxu0 }
 0x40d   : > { %v2155_v31 = vpop.f32.mrf.mxu1  ;;  %v9418_v48 = vmul.f32 0.125, %v7958_v60 }
 0x40e   : > { %v9388_v33 = vmul.f32 0.125, %v2155_v31  ;;  %v2550_v37 = vsel %vm2528_vm1, %v9384_v30, -inf  ;;  %v2416_v11 = vpop.f32.mrf.mxu0 }
 0x40f   : > { %2551 = vmax.xlane.f32.xlu1 %v2550_v37  ;;  %v2568_v34 = vsel %vm2528_vm1, %v9418_v48, -inf  ;;  %v9434_v44 = vmul.f32 0.125, %v2416_v11 }
 0x410   : > { %v2547_v39 = vsel %vm2528_vm1, %v9388_v33, -inf }
 0x411   : > { %2548 = vmax.xlane.f32.xlu0 %v2547_v39  ;;  %v2565_v19 = vsel %vm2528_vm1, %v9434_v44, -inf }
 0x413   : > { %2533 = vmax.xlane.f32.xlu1 %v2532_v40  ;;  %v7951_v41 = vpop.f32.mrf.mxu1 }
 0x414   : > { %v9402_v42 = vmul.f32 0.125, %v7951_v41 }
 0x415   : > { %v2329_v50 = vpop.f32.mrf.mxu1 }
 0x416   : > { %v9406_v56 = vmul.f32 0.125, %v2329_v50  ;;  %v2562_v57 = vsel %vm2528_vm1, %v9402_v42, -inf }
 0x417   : > { %2542 = vmax.xlane.f32.xlu1 %v2541_v15  ;;  %2563 = vmax.xlane.f32.xlu0 %v2562_v57 }
 0x418   : > { %v2559_v8 = vsel %vm2528_vm1, %v9406_v56, -inf }
 0x41b   : > { %2545 = vmax.xlane.f32.xlu1 %v2544_v24  ;;  %2560 = vmax.xlane.f32.xlu0 %v2559_v8  ;;  %v7965_v61 = vpop.f32.mrf.mxu1 }
 0x41c   : > { %v9424_v1 = vmul.f32 0.125, %v7965_v61 }
 0x41d   : > { %v2503_v0 = vpop.f32.mrf.mxu1 }
 0x41e   : > { %v9420_v25 = vmul.f32 0.125, %v2503_v0  ;;  %v2574_v62 = vsel %vm2528_vm1, %v9424_v1, -inf }
 0x41f   : > { %2557 = vmax.xlane.f32.xlu1 %v2556_v49 }
 0x420   : > { %v2571_v2 = vsel %vm2528_vm1, %v9420_v25, -inf }
 0x421   : > { %2572 = vmax.xlane.f32.xlu0 %v2571_v2 }
 0x423   : > { %2569 = vmax.xlane.f32.xlu1 %v2568_v34 }
 0x425   : > { %2575 = vmax.xlane.f32.xlu0 %v2574_v62 }
 0x429   : > { %2554 = vmax.xlane.f32.xlu0 %v2553_v16 }
 0x42d   : > { %2566 = vmax.xlane.f32.xlu0 %v2565_v19 }
 0x482   : > { %v2531_v20 = vpop.xlane.xlu1 %2530 }
 0x483   : > { %v2577_v47 = vsub.f32 %v9360_v12, %v2531_v20 }
 0x485   : > { %v2593_v26 = vmul.f32 1.442695, %v2577_v47 }
 0x487   : > { %8501 = vpow2.f32 %v2593_v26 }
 0x488   : > { %v2540_v27 = vpop.xlane.xlu1 %2539 }
 0x489   : > { %v2580_v52 = vsub.f32 %v9368_v45, %v2540_v27 }
 0x48a   : > { %v2537_v29 = vpop.xlane.xlu0 %2536 }
 0x48b   : > { %v2599_v31 = vmul.f32 1.442695, %v2580_v52  ;;  %v2579_v37 = vsub.f32 %v9370_v21, %v2537_v29 }
 0x48d   : > { %8503 = vpow2.f32 %v2599_v31  ;;  %v2597_v39 = vmul.f32 1.442695, %v2579_v37 }
 0x48f   : > { %8505 = vpow2.f32 %v2597_v39 }
 0x494   : > { %v9443_v40 = vpop.eup %8501 }
 0x495   : > { %v2625_v41 = vsel %vm2528_vm1, %v9443_v40, 0.0 }
 0x496   : > { %2626 = vadd.xlane.f32.xlu1 %v2625_v41 }
 0x498   : > { %v2552_v43 = vpop.xlane.xlu1 %2551 }
 0x499   : > { %v2584_v12 = vsub.f32 %v9384_v30, %v2552_v43 }
 0x49a   : > { %v9448_v50 = vpop.eup %8503  ;;  %v2549_v15 = vpop.xlane.xlu0 %2548 }
 0x49b   : > { %v2607_v45 = vmul.f32 1.442695, %v2584_v12  ;;  %v2583_v57 = vsub.f32 %v9388_v33, %v2549_v15  ;;  %v2634_v21 = vsel %vm2528_vm1, %v9448_v50, 0.0 }
 0x49c   : > { %v9453_v58 = vpop.eup %8505  ;;  %v2534_v24 = vpop.xlane.xlu1 %2533  ;;  %2635 = vadd.xlane.f32.xlu1 %v2634_v21 }
 0x49d   : > { %8507 = vpow2.f32 %v2607_v45  ;;  %v2605_v8 = vmul.f32 1.442695, %v2583_v57  ;;  %v2578_v60 = vsub.f32 %v9386_v32, %v2534_v24  ;;  %v2631_v30 = vsel %vm2528_vm1, %v9453_v58, 0.0 }
 0x49e   : > { %2632 = vadd.xlane.f32.xlu0 %v2631_v30 }
 0x49f   : > { %8509 = vpow2.f32 %v2605_v8  ;;  %v2595_v61 = vmul.f32 1.442695, %v2578_v60 }
 0x4a0   : > { %v2543_v0 = vpop.xlane.xlu1 %2542  ;;  %v2564_v49 = vpop.xlane.xlu0 %2563 }
 0x4a1   : > { %8511 = vpow2.f32 %v2595_v61  ;;  %v2581_v33 = vsub.f32 %v9396_v7, %v2543_v0  ;;  %v2588_v2 = vsub.f32 %v9402_v42, %v2564_v49 }
 0x4a3   : > { %v2601_v34 = vmul.f32 1.442695, %v2581_v33  ;;  %v2615_v62 = vmul.f32 1.442695, %v2588_v2 }
 0x4a4   : > { %v2546_v11 = vpop.xlane.xlu1 %2545  ;;  %v2561_v16 = vpop.xlane.xlu0 %2560 }
 0x4a5   : > { %8513 = vpow2.f32 %v2601_v34  ;;  %v2582_v32 = vsub.f32 %v9404_v51, %v2546_v11  ;;  %v2587_v19 = vsub.f32 %v9406_v56, %v2561_v16 }
 0x4a6   : > { %8515 = vpow2.f32 %v2615_v62 }
 0x4a7   : > { %v2603_v20 = vmul.f32 1.442695, %v2582_v32  ;;  %v2613_v47 = vmul.f32 1.442695, %v2587_v19 }
 0x4a8   : > { %v2558_v26 = vpop.xlane.xlu1 %2557 }
 0x4a9   : > { %8517 = vpow2.f32 %v2603_v20  ;;  %v2586_v27 = vsub.f32 %v9412_v46, %v2558_v26 }
 0x4aa   : > { %v9463_v52 = vpop.eup %8507  ;;  %8519 = vpow2.f32 %v2613_v47  ;;  %v2573_v7 = vpop.xlane.xlu0 %2572 }
 0x4ab   : > { %v2611_v42 = vmul.f32 1.442695, %v2586_v27  ;;  %v2591_v29 = vsub.f32 %v9420_v25, %v2573_v7  ;;  %v2646_v31 = vsel %vm2528_vm1, %v9463_v52, 0.0 }
 0x4ac   : > { %v9468_v51 = vpop.eup %8509  ;;  %2647 = vadd.xlane.f32.xlu1 %v2646_v31  ;;  %v2570_v56 = vpop.xlane.xlu1 %2569 }
 0x4ad   : > { %8521 = vpow2.f32 %v2611_v42  ;;  %v2621_v37 = vmul.f32 1.442695, %v2591_v29  ;;  %v2590_v39 = vsub.f32 %v9418_v48, %v2570_v56  ;;  %v2643_v46 = vsel %vm2528_vm1, %v9468_v51, 0.0 }
 0x4ae   : > { %v9473_v41 = vpop.eup %8511  ;;  %v2576_v43 = vpop.xlane.xlu0 %2575  ;;  %2644 = vadd.xlane.f32.xlu0 %v2643_v46 }
 0x4af   : > { %8523 = vpow2.f32 %v2621_v37  ;;  %v2619_v25 = vmul.f32 1.442695, %v2590_v39  ;;  %v2592_v12 = vsub.f32 %v9424_v1, %v2576_v43  ;;  %v2628_v15 = vsel %vm2528_vm1, %v9473_v41, 0.0 }
 0x4b0   : > { %2629 = vadd.xlane.f32.xlu1 %v2628_v15 }
 0x4b1   : > { %8525 = vpow2.f32 %v2619_v25  ;;  %v2623_v45 = vmul.f32 1.442695, %v2592_v12 }
 0x4b2   : > { %v9478_v57 = vpop.eup %8513  ;;  %v2555_v48 = vpop.xlane.xlu0 %2554 }
 0x4b3   : > { %v9480_v21 = vpop.eup %8515  ;;  %8527 = vpow2.f32 %v2623_v45  ;;  %v2585_v24 = vsub.f32 %v9430_v3, %v2555_v48  ;;  %v2637_v8 = vsel %vm2528_vm1, %v9478_v57, 0.0 }
 0x4b4   : > { %2638 = vadd.xlane.f32.xlu1 %v2637_v8  ;;  %v2658_v1 = vsel %vm2528_vm1, %v9480_v21, 0.0 }
 0x4b5   : > { %v2609_v60 = vmul.f32 1.442695, %v2585_v24  ;;  %2659 = vadd.xlane.f32.xlu0 %v2658_v1 }
 0x4b6   : > { %v9487_v30 = vpop.eup %8517  ;;  %v2567_v61 = vpop.xlane.xlu0 %2566 }
 0x4b7   : > { %v9489_v0 = vpop.eup %8519  ;;  %8529 = vpow2.f32 %v2609_v60  ;;  %v2589_v49 = vsub.f32 %v9434_v44, %v2567_v61  ;;  %v2640_v3 = vsel %vm2528_vm1, %v9487_v30, 0.0 }
 0x4b8   : > { %2641 = vadd.xlane.f32.xlu1 %v2640_v3  ;;  %v2655_v33 = vsel %vm2528_vm1, %v9489_v0, 0.0 }
 0x4b9   : > { %v2617_v2 = vmul.f32 1.442695, %v2589_v49  ;;  %2656 = vadd.xlane.f32.xlu0 %v2655_v33 }
 0x4ba   : > { %v9496_v34 = vpop.eup %8521 }
 0x4bb   : > { %8531 = vpow2.f32 %v2617_v2  ;;  %v2652_v62 = vsel %vm2528_vm1, %v9496_v34, 0.0 }
 0x4bc   : > { %v9500_v11 = vpop.eup %8523  ;;  %2653 = vadd.xlane.f32.xlu1 %v2652_v62 }
 0x4bd   : > { %v2667_v44 = vsel %vm2528_vm1, %v9500_v11, 0.0 }
 0x4be   : > { %v9504_v16 = vpop.eup %8525  ;;  %2668 = vadd.xlane.f32.xlu0 %v2667_v44  ;;  %v8397_v44 = vld [vmem:[%s8922_s17 + $0xf8] sm:$0xff]  }
 0x4bf   : > { %v2664_v32 = vsel %vm2528_vm1, %v9504_v16, 0.0 }
 0x4c0   : > { %v9508_v19 = vpop.eup %8527  ;;  %2665 = vadd.xlane.f32.xlu1 %v2664_v32  ;;  %v8398_v32 = vld [vmem:[%s8922_s17 + $0xf0] sm:$0xff]  }
 0x4c1   : > { %v2670_v20 = vsel %vm2528_vm1, %v9508_v19, 0.0 }
 0x4c2   : > { %2671 = vadd.xlane.f32.xlu0 %v2670_v20 }
 0x4c4   : > { %v9512_v47 = vpop.eup %8529 }
 0x4c5   : > { %v2649_v26 = vsel %vm2528_vm1, %v9512_v47, 0.0 }
 0x4c6   : > { %2650 = vadd.xlane.f32.xlu0 %v2649_v26 }
 0x4c8   : > { %v9516_v27 = vpop.eup %8531 }
 0x4c9   : > { %v2661_v7 = vsel %vm2528_vm1, %v9516_v27, 0.0 }
 0x4ca   : > { %2662 = vadd.xlane.f32.xlu0 %v2661_v7  ;;  %v8400_v7 = vld [vmem:[%s8922_s17 + $0x78] sm:$0xff]  }
 0x51f   : > { %v2627_v42 = vpop.xlane.xlu1 %2626 }
 0x520   : > { %8533 = vrcp.f32 %v2627_v42 }
 0x525   : > { %v2636_v29 = vpop.xlane.xlu1 %2635 }
 0x526   : > { %8535 = vrcp.f32 %v2636_v29  ;;  %v8402_v29 = vld [vmem:[%s8922_s17 + $0x70] sm:$0xff]  }
 0x527   : > { %v2633_v31 = vpop.xlane.xlu0 %2632 }
 0x528   : > { %8537 = vrcp.f32 %v2633_v31  ;;  %v8407_v31 = vld [vmem:[%s8922_s17 + $0xc8] sm:$0xff]  }
 0x52d   : > { %v8534_v56 = vpop.eup %8533 }
 0x52e   : > { %v2689_v37 = vmul.f32 %v8534_v56, %v9443_v40  ;;  %v8408_v56 = vld [vmem:[%s8922_s17 + $0x58] sm:$0xff]  }
 0x530   : > { %7970 = vmatprep.mubr.msk.f32.mxu0 %vm2528_vm1, %v2689_v37  ;;  %v8409_v37 = vld [vmem:[%s8922_s17 + $0xc0] sm:$0xff]  }
 0x533   : > { %v8536_v39 = vpop.eup %8535 }
 0x534   : > { %v2692_v15 = vmul.f32 %v8536_v39, %v9448_v50  ;;  %v8410_v39 = vld [vmem:[%s8922_s17 + $0x50] sm:$0xff]  }
 0x535   : > { %v8538_v46 = vpop.eup %8537  ;;  %v2648_v43 = vpop.xlane.xlu1 %2647 }
 0x536   : > { %v2691_v25 = vmul.f32 %v8538_v46, %v9453_v58  ;;  %8539 = vrcp.f32 %v2648_v43  ;;  %v8411_v46 = vld [vmem:[%s8922_s17 + $0x48] sm:$0xff]   ;;  %v8412_v43 = vld [vmem:[%s8922_s17 + $0x40] sm:$0xff]  }
 0x537   : > { %v2645_v12 = vpop.xlane.xlu0 %2644 }
 0x538   : > { %8541 = vrcp.f32 %v2645_v12  ;;  %7977 = vmatprep.mubr.msk.f32.mxu1 %vm2528_vm1, %v2691_v25  ;;  %v8413_v25 = vld [vmem:[%s8922_s17 + $0x178] sm:$0xff]   ;;  %v8414_v12 = vld [vmem:[%s8922_s17 + $0x170] sm:$0xff]  }
 0x539   : > { %v2630_v45 = vpop.xlane.xlu1 %2629  ;;  %7978 = vmatmul.mubr.msk.f32.vlgmr.msra.gmra.mxu1 %vm2528_vm1, %v2692_v15  ;;  %v8415_v15 = vld [vmem:[%s8922_s17 + $0x168] sm:$0xff]  }
 0x53a   : > { %8543 = vrcp.f32 %v2630_v45  ;;  %7988 = vmatpush3.msra.mxu1 %v9346_v10  ;;  %v8416_v45 = vld [vmem:[%s8922_s17 + $0x160] sm:$0xff]  }
 0x53b   : > { %7989 = vmatprep.subr.mxu1 %v9339_v9 }
 0x53c   : > { %7990 = vmatpush3.msra.mxu1 %v9339_v9 }
 0x53d   : > { %8001 = vmatprep.subr.mxu1 %v9374_v22  ;;  %v2639_v40 = vpop.xlane.xlu1 %2638 }
 0x53e   : > { %8545 = vrcp.f32 %v2639_v40  ;;  %v2660_v58 = vpop.xlane.xlu0 %2659  ;;  %v8417_v40 = vld [vmem:[%s8922_s17 + $0x158] sm:$0xff]  }
 0x53f   : > { %8547 = vrcp.f32 %v2660_v58  ;;  %v8418_v58 = vld [vmem:[%s8922_s17 + $0x150] sm:$0xff]  }
 0x541   : > { %v2642_v50 = vpop.xlane.xlu1 %2641 }
 0x542   : > { %8549 = vrcp.f32 %v2642_v50  ;;  %v2657_v48 = vpop.xlane.xlu0 %2656  ;;  %v8419_v50 = vld [vmem:[%s8922_s17 + $0x148] sm:$0xff]  }
 0x543   : > { %8551 = vrcp.f32 %v2657_v48  ;;  %v8540_v24 = vpop.eup %8539  ;;  %v8420_v48 = vld [vmem:[%s8922_s17 + $0x140] sm:$0xff]  }
 0x544   : > { %v2696_v61 = vmul.f32 %v8540_v24, %v9463_v52 }
 0x545   : > { %v8542_v8 = vpop.eup %8541  ;;  %v2654_v49 = vpop.xlane.xlu1 %2653 }
 0x546   : > { %v2695_v1 = vmul.f32 %v8542_v8, %v9468_v51 }
 0x547   : > { %v8544_v60 = vpop.eup %8543  ;;  %v2669_v10 = vpop.xlane.xlu0 %2668 }
 0x548   : > { %8553 = vrcp.f32 %v2669_v10  ;;  %7991 = vmatprep.mubr.msk.f32.mxu1 %vm2528_vm1, %v2695_v1  ;;  %v2690_v9 = vmul.f32 %v8544_v60, %v9473_v41 }
 0x549   : > { %7992 = vmatmul.mubr.msk.f32.vlgmr.msra.gmra.mxu1 %vm2528_vm1, %v2696_v61  ;;  %v2666_v2 = vpop.xlane.xlu1 %2665 }
 0x54a   : > { %8002 = vmatpush3.msra.mxu1 %v9374_v22  ;;  %7971 = vmatmul.mubr.msk.f32.vlgmr.msra.gmra.mxu0 %vm2528_vm1, %v2690_v9 }
 0x54b   : > { %v8546_v3 = vpop.eup %8545  ;;  %7981 = vmatpush3.msra.mxu0 %v9350_v36  ;;  %8003 = vmatprep.subr.mxu1 %v9362_v13  ;;  %v2672_v51 = vpop.xlane.xlu0 %2671 }
 0x54c   : > { %7982 = vmatprep.subr.mxu0 %v9344_v55  ;;  %8004 = vmatpush3.msra.mxu1 %v9362_v13  ;;  %8555 = vrcp.f32 %v2672_v51  ;;  %v2693_v52 = vmul.f32 %v8546_v3, %v9478_v57  ;;  %v8548_v22 = vpop.eup %8547 }
 0x54d   : > { %7983 = vmatpush3.msra.mxu0 %v9344_v55  ;;  %8015 = vmatprep.subr.mxu1 %v9392_v35  ;;  %8557 = vrcp.f32 %v2654_v49  ;;  %v2700_v55 = vmul.f32 %v8548_v22, %v9480_v21 }
 0x54e   : > { %7994 = vmatprep.subr.mxu0 %v9378_v59  ;;  %7984 = vmatprep.mubr.msk.f32.mxu0 %vm2528_vm1, %v2693_v52 }
 0x54f   : > { %v8550_v36 = vpop.eup %8549  ;;  %v2651_v41 = vpop.xlane.xlu0 %2650 }
 0x550   : > { %v8552_v33 = vpop.eup %8551  ;;  %8559 = vrcp.f32 %v2651_v41  ;;  %v2694_v13 = vmul.f32 %v8550_v36, %v9487_v30 }
 0x551   : > { %v2699_v57 = vmul.f32 %v8552_v33, %v9489_v0  ;;  %8561 = vrcp.f32 %v2666_v2 }
 0x552   : > { %7985 = vmatmul.mubr.msk.f32.vlgmr.msra.gmra.mxu0 %vm2528_vm1, %v2694_v13 }
 0x553   : > { %7995 = vmatpush3.msra.mxu0 %v9378_v59  ;;  %8005 = vmatprep.mubr.msk.f32.mxu1 %vm2528_vm1, %v2699_v57  ;;  %v2663_v62 = vpop.xlane.xlu0 %2662 }
 0x554   : > { %7996 = vmatprep.subr.mxu0 %v9366_v18  ;;  %8006 = vmatmul.mubr.msk.f32.vlgmr.msra.gmra.mxu1 %vm2528_vm1, %v2700_v55  ;;  %8563 = vrcp.f32 %v2663_v62 }
 0x555   : > { %v8554_v30 = vpop.eup %8553  ;;  %8016 = vmatpush3.msra.mxu1 %v9392_v35  ;;  %7997 = vmatpush3.msra.mxu0 %v9366_v18 }
 0x556   : > { %8017 = vmatprep.subr.mxu1 %v9380_v28  ;;  %8008 = vmatprep.subr.mxu0 %v9400_v14  ;;  %v2703_v59 = vmul.f32 %v8554_v30, %v9500_v11 }
 0x557   : > { %8018 = vmatpush3.msra.mxu1 %v9380_v28  ;;  %v8399_v28 = vld [vmem:[%s8922_s17 + $0xe8] sm:$0xff]  }
 0x558   : > { %8019 = vmatprep.mubr.msk.f32.mxu1 %vm2528_vm1, %v2703_v59  ;;  %8054 = vmatprep.subr.bf16.mxu1 %v8397_v44 }
 0x559   : > { %v8556_v21 = vpop.eup %8555 }
 0x55a   : > { %v2704_v0 = vmul.f32 %v8556_v21, %v9508_v19  ;;  %v8558_v35 = vpop.eup %8557 }
 0x55b   : > { %v2698_v20 = vmul.f32 %v8558_v35, %v9496_v34 }
 0x55c   : > { %8020 = vmatmul.mubr.msk.f32.vlgmr.msra.gmra.mxu1 %vm2528_vm1, %v2704_v0 }
 0x55d   : > { %v8560_v18 = vpop.eup %8559  ;;  %8055 = vmatpush3.bf16.msra.mxu1 %v8397_v44  ;;  %8070 = vmatprep.mubr.bf16.mxu1 %v9218_v63 }
 0x55e   : > { %8056 = vmatprep.subr.bf16.mxu1 %v8398_v32  ;;  %v2697_v11 = vmul.f32 %v8560_v18, %v9512_v47  ;;  %v8562_v26 = vpop.eup %8561  ;;  %v8401_v47 = vld [vmem:[%s8922_s17 + $0xe0] sm:$0xff]  }
 0x55f   : > { %v2702_v34 = vmul.f32 %v8562_v26, %v9504_v16  ;;  %v8405_v16 = vld [vmem:[%s8922_s17 + $0xd0] sm:$0xff]  }
 0x560   : > { %7998 = vmatprep.mubr.msk.f32.mxu0 %vm2528_vm1, %v2697_v11 }
 0x561   : > { %v8564_v19 = vpop.eup %8563  ;;  %8057 = vmatpush3.bf16.msra.mxu1 %v8398_v32  ;;  %7999 = vmatmul.mubr.msk.f32.vlgmr.msra.gmra.mxu0 %vm2528_vm1, %v2698_v20 }
 0x562   : > { %8009 = vmatpush3.msra.mxu0 %v9400_v14  ;;  %8058 = vmatprep.subr.bf16.mxu1 %v8399_v28  ;;  %v2701_v42 = vmul.f32 %v8564_v19, %v9516_v27  ;;  %v8403_v14 = vld [vmem:[%s8922_s17 + $0xd8] sm:$0xff]   ;;  %v8406_v27 = vld [vmem:[%s8922_s17 + $0x60] sm:$0xff]  }
 0x563   : > { %8010 = vmatprep.subr.mxu0 %v9382_v4 }
 0x564   : > { %8011 = vmatpush3.msra.mxu0 %v9382_v4  ;;  %8012 = vmatprep.mubr.msk.f32.mxu0 %vm2528_vm1, %v2701_v42  ;;  %v8404_v4 = vld [vmem:[%s8922_s17 + $0x68] sm:$0xff]   ;;  %s10703_s17 = sld [smem:[#allocation19_spill]] (!%p7410_p5) }
 0x565   : > { %8022 = vmatprep.subr.bf16.mxu0 %v8400_v7  ;;  %8059 = vmatpush3.bf16.msra.mxu1 %v8399_v28 }
 0x566   : > { %8013 = vmatmul.mubr.msk.f32.vlgmr.msra.gmra.mxu0 %vm2528_vm1, %v2702_v34  ;;  %8060 = vmatprep.subr.bf16.mxu1 %v8401_v47 }
 0x567   : > { %8023 = vmatpush3.bf16.msra.mxu0 %v8400_v7  ;;  %8038 = vmatprep.mubr.bf16.mxu0 %v9218_v63 }
 0x568   : > { %8024 = vmatprep.subr.bf16.mxu0 %v8402_v29 }
 0x569   : > { %8061 = vmatpush3.bf16.msra.mxu1 %v8401_v47 }
 0x56a   : > { %8062 = vmatprep.subr.bf16.mxu1 %v8403_v14 }
 0x56b   : > { %8025 = vmatpush3.bf16.msra.mxu0 %v8402_v29 }
 0x56c   : > { %8026 = vmatprep.subr.bf16.mxu0 %v8404_v4 }
 0x56d   : > { %8063 = vmatpush3.bf16.msra.mxu1 %v8403_v14 }
 0x56e   : > { %8064 = vmatprep.subr.bf16.mxu1 %v8405_v16 }
 0x56f   : > { %8027 = vmatpush3.bf16.msra.mxu0 %v8404_v4 }
 0x570   : > { %8028 = vmatprep.subr.bf16.mxu0 %v8406_v27 }
 0x571   : > { %8065 = vmatpush3.bf16.msra.mxu1 %v8405_v16 }
 0x572   : > { %8066 = vmatprep.subr.bf16.mxu1 %v8407_v31 }
 0x573   : > { %8029 = vmatpush3.bf16.msra.mxu0 %v8406_v27 }
 0x574   : > { %8030 = vmatprep.subr.bf16.mxu0 %v8408_v56 }
 0x575   : > { %8067 = vmatpush3.bf16.msra.mxu1 %v8407_v31 }
 0x576   : > { %8068 = vmatprep.subr.bf16.mxu1 %v8409_v37 }
 0x577   : > { %8031 = vmatpush3.bf16.msra.mxu0 %v8408_v56 }
 0x578   : > { %8032 = vmatprep.subr.bf16.mxu0 %v8410_v39 }
 0x579   : > { %8069 = vmatpush3.bf16.msra.mxu1 %v8409_v37 }
 0x57b   : > { %8033 = vmatpush3.bf16.msra.mxu0 %v8410_v39 }
 0x57c   : > { %8071 = vmatmul.mubr.bf16.vlgmr.msra.gmra.mxu1 %v9227_v38  ;;  %8034 = vmatprep.subr.bf16.mxu0 %v8411_v46 }
 0x57d   : > { %8074 = vmatprep.mubr.bf16.mxu1 %v9239_v53 }
 0x57f   : > { %8035 = vmatpush3.bf16.msra.mxu0 %v8411_v46 }
 0x580   : > { %8036 = vmatprep.subr.bf16.mxu0 %v8412_v43 }
 0x583   : > { %8037 = vmatpush3.bf16.msra.mxu0 %v8412_v43 }
 0x584   : > { %8075 = vmatmul.mubr.bf16.gmra.mxu1 %v9250_v54  ;;  %8086 = vmatprep.subr.bf16.mxu0 %v8413_v25 }
 0x585   : > { %8078 = vmatprep.mubr.bf16.mxu1 %v9261_v5 }
 0x586   : > { %8039 = vmatmul.mubr.bf16.vlgmr.msra.gmra.mxu0 %v9227_v38 }
 0x587   : > { %8042 = vmatprep.mubr.bf16.mxu0 %v9239_v53  ;;  %8087 = vmatpush3.bf16.msra.mxu0 %v8413_v25 }
 0x588   : > { %8088 = vmatprep.subr.bf16.mxu0 %v8414_v12 }
 0x58b   : > { %8089 = vmatpush3.bf16.msra.mxu0 %v8414_v12 }
 0x58c   : > { %8079 = vmatmul.mubr.bf16.gmra.mxu1 %v9272_v17  ;;  %8090 = vmatprep.subr.bf16.mxu0 %v8415_v15 }
 0x58d   : > { %8082 = vmatprep.mubr.bf16.mxu1 %v9282_v23 }
 0x58e   : > { %8043 = vmatmul.mubr.bf16.gmra.mxu0 %v9250_v54 }
 0x58f   : > { %8046 = vmatprep.mubr.bf16.mxu0 %v9261_v5  ;;  %8091 = vmatpush3.bf16.msra.mxu0 %v8415_v15 }
 0x590   : > { %8092 = vmatprep.subr.bf16.mxu0 %v8416_v45 }
 0x593   : > { %8093 = vmatpush3.bf16.msra.mxu0 %v8416_v45 }
 0x594   : > { %8083 = vmatmul.mubr.bf16.gmra.mxu1 %v9289_v6  ;;  %8094 = vmatprep.subr.bf16.mxu0 %v8417_v40 }
 0x596   : > { %8047 = vmatmul.mubr.bf16.gmra.mxu0 %v9272_v17 }
 0x597   : > { %8050 = vmatprep.mubr.bf16.mxu0 %v9282_v23  ;;  %8095 = vmatpush3.bf16.msra.mxu0 %v8417_v40 }
 0x598   : > { %8096 = vmatprep.subr.bf16.mxu0 %v8418_v58 }
 0x59b   : > { %8097 = vmatpush3.bf16.msra.mxu0 %v8418_v58 }
 0x59c   : > { %8098 = vmatprep.subr.bf16.mxu0 %v8419_v50 }
 0x59e   : > { %8051 = vmatmul.mubr.bf16.gmra.mxu0 %v9289_v6 }
 0x59f   : > { %8099 = vmatpush3.bf16.msra.mxu0 %v8419_v50  ;;  %8102 = vmatprep.mubr.bf16.mxu0 %v9218_v63 }
 0x5a0   : > { %8100 = vmatprep.subr.bf16.mxu0 %v8420_v48 }
 0x5a3   : > { %8101 = vmatpush3.bf16.msra.mxu0 %v8420_v48 }
 0x5a6   : > { %8103 = vmatmul.mubr.bf16.vlgmr.msra.gmra.mxu0 %v9227_v38 }
 0x5a7   : > { %8106 = vmatprep.mubr.bf16.mxu0 %v9239_v53 }
 0x5ae   : > { %8107 = vmatmul.mubr.bf16.gmra.mxu0 %v9250_v54 }
 0x5af   : > { %8110 = vmatprep.mubr.bf16.mxu0 %v9261_v5 }
 0x5b6   : > { %8111 = vmatmul.mubr.bf16.gmra.mxu0 %v9272_v17 }
 0x5b7   : > { %8114 = vmatprep.mubr.bf16.mxu0 %v9282_v23 }
 0x5be   : > { %8115 = vmatmul.mubr.bf16.gmra.mxu0 %v9289_v6 }
 0x5f9   : > { %v9622_v24 = vpop.f32.mrf.mxu1 }
 0x5fb   : > { %v9624_v8 = vpop.f32.mrf.mxu1 }
 0x5fc   : > { %v3354_v63 = vpack.c.bf16 %v9622_v24, %v9624_v8  ;;  %v8427_v24 = vld [vmem:[%s8913_s25 + $0x28] sm:$0xff]   ;;  %v8428_v8 = vld [vmem:[%s8913_s25 + $0x20] sm:$0xff]  }
 0x609   : > { %v9628_v38 = vpop.f32.mrf.mxu1 }
 0x60a   : > { %v9630_v53 = vpop.f32.mrf.mxu0 }
 0x60b   : > { %v9632_v54 = vpop.f32.mrf.mxu1 }
 0x60c   : > { %v3356_v5 = vpack.c.bf16 %v9628_v38, %v9632_v54  ;;  %v9636_v17 = vpop.f32.mrf.mxu0 }
 0x60d   : > { %v3353_v23 = vpack.c.bf16 %v9630_v53, %v9636_v17  ;;  %v8426_v53 = vld [vmem:[%s8913_s25 + $0x30] sm:$0xff]  }
 0x612   : > { %v9640_v6 = vpop.f32.mrf.mxu0 }
 0x614   : > { %v9642_v1 = vpop.f32.mrf.mxu1  ;;  %v9644_v60 = vpop.f32.mrf.mxu0 }
 0x615   : > { %v3355_v10 = vpack.c.bf16 %v9640_v6, %v9644_v60 }
 0x616   : > { %v9648_v61 = vpop.f32.mrf.mxu1 }
 0x617   : > { %v3358_v9 = vpack.c.bf16 %v9642_v1, %v9648_v61 }
 0x61c   : > { %v9652_v49 = vpop.f32.mrf.mxu1 }
 0x61e   : > { %v9654_v3 = vpop.f32.mrf.mxu1 }
 0x621   : > { %v9658_v52 = vpop.f32.mrf.mxu0 }
 0x623   : > { %v9660_v22 = vpop.f32.mrf.mxu0 }
 0x624   : > { %v3357_v36 = vpack.c.bf16 %v9658_v52, %v9660_v22 }
 0x626   : > { %v9664_v41 = vpop.f32.mrf.mxu0 }
 0x628   : > { %v9666_v33 = vpop.f32.mrf.mxu0 }
 0x629   : > { %v3359_v2 = vpack.c.bf16 %v9664_v41, %v9666_v33 }
 0x63c   : > { %v8072_v13 = vpop.f32.mrf.mxu1 }
 0x63e   : > { %v3630_v57 = vpop.f32.mrf.mxu1 }
 0x640   : > { %v8073_v55 = vpop.f32.mrf.mxu1 }
 0x642   : > { %v3633_v62 = vpop.f32.mrf.mxu1 }
 0x643   : > { %8118 = vmatprep.subr.msk.mxu1 %vm1815_vm0, %v3633_v62 }
 0x644   : > { %v8076_v44 = vpop.f32.mrf.mxu1  ;;  %8119 = vmatpush3.xpose.msk.msra.mxu1 %vm1815_vm0, %v3633_v62 }
 0x645   : > { %8120 = vmatprep.subr.msk.mxu1 %vm1815_vm0, %v3630_v57 }
 0x646   : > { %v8040_v30 = vpop.f32.mrf.mxu0  ;;  %v3646_v59 = vpop.f32.mrf.mxu1 }
 0x648   : > { %v3468_v21 = vpop.f32.mrf.mxu0  ;;  %v8077_v0 = vpop.f32.mrf.mxu1  ;;  %8121 = vmatpush3.xpose.msk.msra.mxu1 %vm1815_vm0, %v3630_v57 }
 0x649   : > { %8122 = vmatprep.mubr.msk.f32.mxu1 %vm1815_vm0, %v3468_v21  ;;  %8125 = vmatprep.subr.msk.mxu1 %vm1815_vm0, %v8073_v55 }
 0x64a   : > { %v8041_v32 = vpop.f32.mrf.mxu0  ;;  %v3649_v35 = vpop.f32.mrf.mxu1 }
 0x64c   : > { %v3471_v18 = vpop.f32.mrf.mxu0  ;;  %v8080_v11 = vpop.f32.mrf.mxu1 }
 0x64d   : > { %8123 = vmatmul.mubr.msk.f32.vlgmr.msra.gmra.mxu1 %vm1815_vm0, %v3471_v18 }
 0x64e   : > { %8126 = vmatpush3.xpose.msk.msra.mxu1 %vm1815_vm0, %v8073_v55  ;;  %v8044_v28 = vpop.f32.mrf.mxu0  ;;  %8129 = vmatprep.mubr.msk.f32.mxu1 %vm1815_vm0, %v8040_v30  ;;  %v3662_v20 = vpop.f32.mrf.mxu1 }
 0x64f   : > { %8127 = vmatprep.subr.msk.mxu1 %vm1815_vm0, %v8072_v13 }
 0x650   : > { %v3484_v26 = vpop.f32.mrf.mxu0  ;;  %v8081_v19 = vpop.f32.mrf.mxu1 }
 0x652   : > { %8128 = vmatpush3.xpose.msk.msra.mxu1 %vm1815_vm0, %v8072_v13  ;;  %v8045_v7 = vpop.f32.mrf.mxu0  ;;  %v3665_v42 = vpop.f32.mrf.mxu1 }
 0x653   : > { %8132 = vmatprep.subr.msk.mxu1 %vm1815_vm0, %v3649_v35  ;;  %8146 = vmatprep.subr.msk.mxu0 %vm1815_vm0, %v3665_v42 }
 0x654   : > { %v3487_v47 = vpop.f32.mrf.mxu0  ;;  %v8084_v34 = vpop.f32.mrf.mxu1  ;;  %8147 = vmatpush3.xpose.msk.msra.mxu0 %vm1815_vm0, %v3665_v42 }
 0x655   : > { %8130 = vmatmul.mubr.msk.f32.vlgmr.msra.gmra.mxu1 %vm1815_vm0, %v8041_v32  ;;  %8148 = vmatprep.subr.msk.mxu0 %vm1815_vm0, %v3662_v20 }
 0x656   : > { %8133 = vmatpush3.xpose.msk.msra.mxu1 %vm1815_vm0, %v3649_v35  ;;  %8136 = vmatprep.mubr.msk.f32.mxu1 %vm1815_vm0, %v3484_v26  ;;  %v8048_v29 = vpop.f32.mrf.mxu0  ;;  %v3678_v14 = vpop.f32.mrf.mxu1 }
 0x657   : > { %8134 = vmatprep.subr.msk.mxu1 %vm1815_vm0, %v3646_v59 }
 0x658   : > { %v3500_v4 = vpop.f32.mrf.mxu0  ;;  %v8085_v16 = vpop.f32.mrf.mxu1  ;;  %8149 = vmatpush3.xpose.msk.msra.mxu0 %vm1815_vm0, %v3662_v20 }
 0x659   : > { %8150 = vmatprep.mubr.msk.f32.mxu0 %vm1815_vm0, %v3500_v4 }
 0x65a   : > { %8135 = vmatpush3.xpose.msk.msra.mxu1 %vm1815_vm0, %v3646_v59  ;;  %v8049_v27 = vpop.f32.mrf.mxu0  ;;  %v3681_v31 = vpop.f32.mrf.mxu1 }
 0x65b   : > { %8139 = vmatprep.subr.msk.mxu1 %vm1815_vm0, %v8077_v0  ;;  %8160 = vmatprep.subr.msk.mxu0 %vm1815_vm0, %v3681_v31 }
 0x65c   : > { %v3503_v56 = vpop.f32.mrf.mxu0 }
 0x65d   : > { %8137 = vmatmul.mubr.msk.f32.vlgmr.msra.gmra.mxu1 %vm1815_vm0, %v3487_v47  ;;  %8151 = vmatmul.mubr.msk.f32.vlgmr.msra.gmra.mxu0 %vm1815_vm0, %v3503_v56 }
 0x65e   : > { %8140 = vmatpush3.xpose.msk.msra.mxu1 %vm1815_vm0, %v8077_v0  ;;  %8143 = vmatprep.mubr.msk.f32.mxu1 %vm1815_vm0, %v8044_v28  ;;  %v8052_v37 = vpop.f32.mrf.mxu0 }
 0x65f   : > { %8161 = vmatpush3.xpose.msk.msra.mxu0 %vm1815_vm0, %v3681_v31  ;;  %8141 = vmatprep.subr.msk.mxu1 %vm1815_vm0, %v8076_v44 }
 0x660   : > { %8162 = vmatprep.subr.msk.mxu0 %vm1815_vm0, %v3678_v14  ;;  %v3516_v39 = vpop.f32.mrf.mxu0 }
 0x661   : > { %8164 = vmatprep.mubr.msk.f32.mxu0 %vm1815_vm0, %v3516_v39 }
 0x662   : > { %8142 = vmatpush3.xpose.msk.msra.mxu1 %vm1815_vm0, %v8076_v44  ;;  %v8053_v46 = vpop.f32.mrf.mxu0 }
 0x663   : > { %8163 = vmatpush3.xpose.msk.msra.mxu0 %vm1815_vm0, %v3678_v14  ;;  %8153 = vmatprep.subr.msk.mxu1 %vm1815_vm0, %v8081_v19 }
 0x664   : > { %v3519_v43 = vpop.f32.mrf.mxu0 }
 0x665   : > { %8144 = vmatmul.mubr.msk.f32.vlgmr.msra.gmra.mxu1 %vm1815_vm0, %v8045_v7 }
 0x666   : > { %8154 = vmatpush3.xpose.msk.msra.mxu1 %vm1815_vm0, %v8081_v19  ;;  %8157 = vmatprep.mubr.msk.f32.mxu1 %vm1815_vm0, %v8048_v29  ;;  %v8104_v25 = vpop.f32.mrf.mxu0 }
 0x667   : > { %8165 = vmatmul.mubr.msk.f32.vlgmr.msra.gmra.mxu0 %vm1815_vm0, %v3519_v43  ;;  %8155 = vmatprep.subr.msk.mxu1 %vm1815_vm0, %v8080_v11 }
 0x668   : > { %v3792_v12 = vpop.f32.mrf.mxu0 }
 0x66a   : > { %8156 = vmatpush3.xpose.msk.msra.mxu1 %vm1815_vm0, %v8080_v11  ;;  %v8105_v15 = vpop.f32.mrf.mxu0 }
 0x66b   : > { %8167 = vmatprep.subr.msk.mxu1 %vm1815_vm0, %v8085_v16 }
 0x66c   : > { %v3795_v45 = vpop.f32.mrf.mxu0 }
 0x66d   : > { %8158 = vmatmul.mubr.msk.f32.vlgmr.msra.gmra.mxu1 %vm1815_vm0, %v8049_v27  ;;  %8174 = vmatprep.subr.mxu0 %v3795_v45 }
 0x66e   : > { %8168 = vmatpush3.xpose.msk.msra.mxu1 %vm1815_vm0, %v8085_v16  ;;  %8171 = vmatprep.mubr.msk.f32.mxu1 %vm1815_vm0, %v8052_v37  ;;  %v9715_v40 = vpop.f32.mrf.mxu0 }
 0x66f   : > { %8169 = vmatprep.subr.msk.mxu1 %vm1815_vm0, %v8084_v34  ;;  %8175 = vmatpush3.msra.mxu0 %v3795_v45 }
 0x670   : > { %8176 = vmatprep.subr.mxu0 %v3792_v12  ;;  %v9718_v58 = vpop.f32.mrf.mxu0 }
 0x671   : > { %8177 = vmatpush3.msra.mxu0 %v3792_v12 }
 0x672   : > { %8170 = vmatpush3.xpose.msk.msra.mxu1 %vm1815_vm0, %v8084_v34  ;;  %v9721_v50 = vpop.f32.mrf.mxu0 }
 0x673   : > { %8181 = vmatprep.subr.mxu1 %v8105_v15 }
 0x674   : > { %v9723_v48 = vpop.f32.mrf.mxu0 }
 0x675   : > { %8172 = vmatmul.mubr.msk.f32.vlgmr.msra.gmra.mxu1 %vm1815_vm0, %v8053_v46  ;;  %8188 = vmatprep.subr.mxu0 %v9723_v48 }
 0x676   : > { %8182 = vmatpush3.msra.mxu1 %v8105_v15  ;;  %v9728_v13 = vpop.f32.mrf.mxu0 }
 0x677   : > { %8183 = vmatprep.subr.mxu1 %v8104_v25 }
 0x678   : > { %8184 = vmatpush3.msra.mxu1 %v8104_v25  ;;  %v9730_v57 = vpop.f32.mrf.mxu0 }
 0x679   : > { %8195 = vmatprep.subr.mxu1 %v9721_v50 }
 0x67a   : > { %v9732_v55 = vpop.f32.mrf.mxu0 }
 0x67c   : > { %v9740_v0 = vpop.f32.mrf.mxu0 }
 0x67e   : > { %v9744_v35 = vpop.f32.mrf.mxu0 }
 0x680   : > { %v9752_v19 = vpop.f32.mrf.mxu0 }
 0x682   : > { %v9756_v42 = vpop.f32.mrf.mxu0 }
 0x684   : > { %v9764_v16 = vpop.f32.mrf.mxu0 }
 0x70d   : > { %v8124_v62 = vpop.f32.mrf.mxu1 }
 0x70e   : > { %v9734_v44 = vmul.f32 0.125, %v8124_v62 }
 0x70f   : > { %v3933_v30 = vpop.f32.mrf.mxu1 }
 0x710   : > { %v9736_v59 = vmul.f32 0.125, %v3933_v30  ;;  %v4570_v21 = vsel %vm2528_vm1, %v9734_v44, -inf }
 0x711   : > { %4571 = vmax.xlane.f32.xlu1 %v4570_v21 }
 0x712   : > { %v4567_v32 = vsel %vm2528_vm1, %v9736_v59, -inf }
 0x713   : > { %4568 = vmax.xlane.f32.xlu0 %v4567_v32 }
 0x715   : > { %v8131_v18 = vpop.f32.mrf.mxu1 }
 0x716   : > { %v9746_v11 = vmul.f32 0.125, %v8131_v18 }
 0x717   : > { %v4020_v28 = vpop.f32.mrf.mxu1 }
 0x718   : > { %v9748_v20 = vmul.f32 0.125, %v4020_v28  ;;  %v4576_v26 = vsel %vm2528_vm1, %v9746_v11, -inf }
 0x719   : > { %4577 = vmax.xlane.f32.xlu1 %v4576_v26 }
 0x71a   : > { %v4573_v7 = vsel %vm2528_vm1, %v9748_v20, -inf }
 0x71b   : > { %4574 = vmax.xlane.f32.xlu0 %v4573_v7 }
 0x71d   : > { %v8138_v47 = vpop.f32.mrf.mxu1  ;;  %v8152_v31 = vpop.f32.mrf.mxu0 }
 0x71e   : > { %v9758_v34 = vmul.f32 0.125, %v8138_v47  ;;  %v9770_v43 = vmul.f32 0.125, %v8152_v31 }
 0x71f   : > { %v4107_v29 = vpop.f32.mrf.mxu1  ;;  %v4281_v39 = vpop.f32.mrf.mxu0 }
 0x720   : > { %v9760_v14 = vmul.f32 0.125, %v4107_v29  ;;  %v4582_v4 = vsel %vm2528_vm1, %v9758_v34, -inf  ;;  %v9776_v15 = vmul.f32 0.125, %v4281_v39  ;;  %v4594_v30 = vsel %vm2528_vm1, %v9770_v43, -inf }
 0x721   : > { %4583 = vmax.xlane.f32.xlu1 %v4582_v4 }
 0x722   : > { %v4579_v27 = vsel %vm2528_vm1, %v9760_v14, -inf  ;;  %v4591_v18 = vsel %vm2528_vm1, %v9776_v15, -inf }
 0x723   : > { %4580 = vmax.xlane.f32.xlu0 %v4579_v27 }
 0x725   : > { %v8145_v56 = vpop.f32.mrf.mxu1 }
 0x726   : > { %v9768_v37 = vmul.f32 0.125, %v8145_v56 }
 0x727   : > { %v4194_v46 = vpop.f32.mrf.mxu1  ;;  %v8166_v62 = vpop.f32.mrf.mxu0 }
 0x728   : > { %v9772_v25 = vmul.f32 0.125, %v4194_v46  ;;  %v4588_v12 = vsel %vm2528_vm1, %v9768_v37, -inf  ;;  %v9786_v7 = vmul.f32 0.125, %v8166_v62 }
 0x729   : > { %4589 = vmax.xlane.f32.xlu1 %v4588_v12  ;;  %v4455_v28 = vpop.f32.mrf.mxu0 }
 0x72a   : > { %v4585_v45 = vsel %vm2528_vm1, %v9772_v25, -inf  ;;  %v9792_v4 = vmul.f32 0.125, %v4455_v28  ;;  %v4606_v31 = vsel %vm2528_vm1, %v9786_v7, -inf }
 0x72b   : > { %4586 = vmax.xlane.f32.xlu0 %v4585_v45 }
 0x72c   : > { %v4603_v46 = vsel %vm2528_vm1, %v9792_v4, -inf }
 0x72d   : > { %v8159_v21 = vpop.f32.mrf.mxu1  ;;  %4595 = vmax.xlane.f32.xlu1 %v4594_v30 }
 0x72e   : > { %v9782_v32 = vmul.f32 0.125, %v8159_v21 }
 0x72f   : > { %v4368_v26 = vpop.f32.mrf.mxu1  ;;  %4592 = vmax.xlane.f32.xlu0 %v4591_v18 }
 0x730   : > { %v9788_v47 = vmul.f32 0.125, %v4368_v26  ;;  %v4600_v29 = vsel %vm2528_vm1, %v9782_v32, -inf }
 0x731   : > { %4601 = vmax.xlane.f32.xlu1 %v4600_v29 }
 0x732   : > { %v4597_v27 = vsel %vm2528_vm1, %v9788_v47, -inf }
 0x733   : > { %4598 = vmax.xlane.f32.xlu0 %v4597_v27 }
 0x735   : > { %v8173_v56 = vpop.f32.mrf.mxu1  ;;  %4607 = vmax.xlane.f32.xlu1 %v4606_v31 }
 0x736   : > { %v9798_v39 = vmul.f32 0.125, %v8173_v56 }
 0x737   : > { %v4542_v12 = vpop.f32.mrf.mxu1  ;;  %4604 = vmax.xlane.f32.xlu0 %v4603_v46 }
 0x738   : > { %v9802_v45 = vmul.f32 0.125, %v4542_v12  ;;  %v4612_v62 = vsel %vm2528_vm1, %v9798_v39, -inf }
 0x739   : > { %4613 = vmax.xlane.f32.xlu1 %v4612_v62 }
 0x73a   : > { %v4609_v30 = vsel %vm2528_vm1, %v9802_v45, -inf }
 0x73b   : > { %4610 = vmax.xlane.f32.xlu0 %v4609_v30 }
 0x79a   : > { %v4572_v21 = vpop.xlane.xlu1 %4571 }
 0x79b   : > { %v4616_v18 = vsub.f32 %v9734_v44, %v4572_v21 }
 0x79c   : > { %v4569_v28 = vpop.xlane.xlu0 %4568 }
 0x79d   : > { %v4633_v26 = vmul.f32 1.442695, %v4616_v18  ;;  %v4615_v29 = vsub.f32 %v9736_v59, %v4569_v28 }
 0x79f   : > { %8565 = vpow2.f32 %v4633_v26  ;;  %v4631_v27 = vmul.f32 1.442695, %v4615_v29 }
 0x7a1   : > { %8567 = vpow2.f32 %v4631_v27 }
 0x7a2   : > { %v4578_v31 = vpop.xlane.xlu1 %4577 }
 0x7a3   : > { %v4618_v56 = vsub.f32 %v9746_v11, %v4578_v31 }
 0x7a4   : > { %v4575_v46 = vpop.xlane.xlu0 %4574 }
 0x7a5   : > { %v4637_v12 = vmul.f32 1.442695, %v4618_v56  ;;  %v4617_v62 = vsub.f32 %v9748_v20, %v4575_v46 }
 0x7a7   : > { %8569 = vpow2.f32 %v4637_v12  ;;  %v4635_v51 = vmul.f32 1.442695, %v4617_v62 }
 0x7a9   : > { %8571 = vpow2.f32 %v4635_v51 }
 0x7aa   : > { %v4584_v30 = vpop.xlane.xlu1 %4583 }
 0x7ab   : > { %v4620_v44 = vsub.f32 %v9758_v34, %v4584_v30 }
 0x7ac   : > { %v9813_v21 = vpop.eup %8565  ;;  %v4581_v18 = vpop.xlane.xlu0 %4580 }
 0x7ad   : > { %v4641_v59 = vmul.f32 1.442695, %v4620_v44  ;;  %v4619_v28 = vsub.f32 %v9760_v14, %v4581_v18  ;;  %v4666_v26 = vsel %vm2528_vm1, %v9813_v21, 0.0 }
 0x7ae   : > { %v9818_v11 = vpop.eup %8567  ;;  %4667 = vadd.xlane.f32.xlu1 %v4666_v26 }
 0x7af   : > { %8573 = vpow2.f32 %v4641_v59  ;;  %v4639_v20 = vmul.f32 1.442695, %v4619_v28  ;;  %v4663_v51 = vsel %vm2528_vm1, %v9818_v11, 0.0 }
 0x7b0   : > { %4664 = vadd.xlane.f32.xlu0 %v4663_v51 }
 0x7b1   : > { %8575 = vpow2.f32 %v4639_v20 }
 0x7b2   : > { %v4590_v34 = vpop.xlane.xlu1 %4589 }
 0x7b3   : > { %v4622_v29 = vsub.f32 %v9768_v37, %v4590_v34 }
 0x7b4   : > { %v9823_v27 = vpop.eup %8569  ;;  %v4587_v31 = vpop.xlane.xlu0 %4586 }
 0x7b5   : > { %v4645_v14 = vmul.f32 1.442695, %v4622_v29  ;;  %v4621_v56 = vsub.f32 %v9772_v25, %v4587_v31  ;;  %v4672_v46 = vsel %vm2528_vm1, %v9823_v27, 0.0 }
 0x7b6   : > { %v9828_v12 = vpop.eup %8571  ;;  %v4596_v62 = vpop.xlane.xlu1 %4595  ;;  %4673 = vadd.xlane.f32.xlu1 %v4672_v46 }
 0x7b7   : > { %8577 = vpow2.f32 %v4645_v14  ;;  %v4643_v30 = vmul.f32 1.442695, %v4621_v56  ;;  %v4624_v44 = vsub.f32 %v9770_v43, %v4596_v62  ;;  %v4669_v37 = vsel %vm2528_vm1, %v9828_v12, 0.0 }
 0x7b8   : > { %v4593_v18 = vpop.xlane.xlu0 %4592  ;;  %4670 = vadd.xlane.f32.xlu0 %v4669_v37 }
 0x7b9   : > { %8579 = vpow2.f32 %v4643_v30  ;;  %v4649_v59 = vmul.f32 1.442695, %v4624_v44  ;;  %v4623_v25 = vsub.f32 %v9776_v15, %v4593_v18 }
 0x7ba   : > { %v4602_v28 = vpop.xlane.xlu1 %4601 }
 0x7bb   : > { %8581 = vpow2.f32 %v4649_v59  ;;  %v4647_v26 = vmul.f32 1.442695, %v4623_v25  ;;  %v4626_v20 = vsub.f32 %v9782_v32, %v4602_v28 }
 0x7bc   : > { %v9835_v51 = vpop.eup %8573  ;;  %v4599_v34 = vpop.xlane.xlu0 %4598 }
 0x7bd   : > { %8583 = vpow2.f32 %v4647_v26  ;;  %v4653_v29 = vmul.f32 1.442695, %v4626_v20  ;;  %v4625_v43 = vsub.f32 %v9788_v47, %v4599_v34  ;;  %v4678_v31 = vsel %vm2528_vm1, %v9835_v51, 0.0 }
 0x7be   : > { %v9840_v14 = vpop.eup %8575  ;;  %4679 = vadd.xlane.f32.xlu1 %v4678_v31  ;;  %v4608_v56 = vpop.xlane.xlu1 %4607 }
 0x7bf   : > { %8585 = vpow2.f32 %v4653_v29  ;;  %v4651_v15 = vmul.f32 1.442695, %v4625_v43  ;;  %v4628_v46 = vsub.f32 %v9786_v7, %v4608_v56  ;;  %v4675_v32 = vsel %vm2528_vm1, %v9840_v14, 0.0 }
 0x7c0   : > { %4676 = vadd.xlane.f32.xlu0 %v4675_v32  ;;  %v4605_v62 = vpop.xlane.xlu0 %4604 }
 0x7c1   : > { %8587 = vpow2.f32 %v4651_v15  ;;  %v4657_v30 = vmul.f32 1.442695, %v4628_v46  ;;  %v4627_v47 = vsub.f32 %v9792_v4, %v4605_v62 }
 0x7c2   : > { %v4614_v44 = vpop.xlane.xlu1 %4613 }
 0x7c3   : > { %8589 = vpow2.f32 %v4657_v30  ;;  %v4655_v37 = vmul.f32 1.442695, %v4627_v47  ;;  %v4630_v18 = vsub.f32 %v9798_v39, %v4614_v44 }
 0x7c4   : > { %v9847_v59 = vpop.eup %8577  ;;  %v4611_v25 = vpop.xlane.xlu0 %4610 }
 0x7c5   : > { %8591 = vpow2.f32 %v4655_v37  ;;  %v4661_v28 = vmul.f32 1.442695, %v4630_v18  ;;  %v4629_v7 = vsub.f32 %v9802_v45, %v4611_v25  ;;  %v4684_v26 = vsel %vm2528_vm1, %v9847_v59, 0.0 }
 0x7c6   : > { %v9852_v20 = vpop.eup %8579  ;;  %4685 = vadd.xlane.f32.xlu1 %v4684_v26 }
 0x7c7   : > { %8593 = vpow2.f32 %v4661_v28  ;;  %v4659_v4 = vmul.f32 1.442695, %v4629_v7  ;;  %v4681_v34 = vsel %vm2528_vm1, %v9852_v20, 0.0 }
 0x7c8   : > { %v9856_v29 = vpop.eup %8581  ;;  %4682 = vadd.xlane.f32.xlu0 %v4681_v34 }
 0x7c9   : > { %8595 = vpow2.f32 %v4659_v4  ;;  %v4690_v39 = vsel %vm2528_vm1, %v9856_v29, 0.0 }
 0x7ca   : > { %v9860_v43 = vpop.eup %8583  ;;  %4691 = vadd.xlane.f32.xlu1 %v4690_v39 }
 0x7cb   : > { %v4687_v45 = vsel %vm2528_vm1, %v9860_v43, 0.0 }
 0x7cc   : > { %v9864_v31 = vpop.eup %8585  ;;  %4688 = vadd.xlane.f32.xlu0 %v4687_v45 }
 0x7cd   : > { %v4696_v56 = vsel %vm2528_vm1, %v9864_v31, 0.0 }
 0x7ce   : > { %v9868_v15 = vpop.eup %8587  ;;  %4697 = vadd.xlane.f32.xlu1 %v4696_v56 }
 0x7cf   : > { %v4693_v46 = vsel %vm2528_vm1, %v9868_v15, 0.0 }
 0x7d0   : > { %v9872_v32 = vpop.eup %8589  ;;  %4694 = vadd.xlane.f32.xlu0 %v4693_v46 }
 0x7d1   : > { %v4702_v62 = vsel %vm2528_vm1, %v9872_v32, 0.0 }
 0x7d2   : > { %v9876_v30 = vpop.eup %8591  ;;  %4703 = vadd.xlane.f32.xlu1 %v4702_v62 }
 0x7d3   : > { %v4699_v47 = vsel %vm2528_vm1, %v9876_v30, 0.0 }
 0x7d4   : > { %v9880_v44 = vpop.eup %8593  ;;  %4700 = vadd.xlane.f32.xlu0 %v4699_v47 }
 0x7d5   : > { %v4708_v37 = vsel %vm2528_vm1, %v9880_v44, 0.0 }
 0x7d6   : > { %v9884_v18 = vpop.eup %8595  ;;  %4709 = vadd.xlane.f32.xlu1 %v4708_v37 }
 0x7d7   : > { %v4705_v25 = vsel %vm2528_vm1, %v9884_v18, 0.0 }
 0x7d8   : > { %4706 = vadd.xlane.f32.xlu0 %v4705_v25 }
 0x837   : > { %v4668_v28 = vpop.xlane.xlu1 %4667 }
 0x838   : > { %8597 = vrcp.f32 %v4668_v28 }
 0x839   : > { %v4665_v7 = vpop.xlane.xlu0 %4664 }
 0x83a   : > { %8599 = vrcp.f32 %v4665_v7 }
 0x83f   : > { %v4674_v26 = vpop.xlane.xlu1 %4673 }
 0x840   : > { %8601 = vrcp.f32 %v4674_v26 }
 0x841   : > { %v4671_v4 = vpop.xlane.xlu0 %4670 }
 0x842   : > { %8603 = vrcp.f32 %v4671_v4 }
 0x845   : > { %v8598_v34 = vpop.eup %8597 }
 0x846   : > { %v4728_v62 = vmul.f32 %v8598_v34, %v9813_v21 }
 0x847   : > { %v8600_v39 = vpop.eup %8599  ;;  %v4680_v45 = vpop.xlane.xlu1 %4679 }
 0x848   : > { %v4727_v56 = vmul.f32 %v8600_v39, %v9818_v11  ;;  %8605 = vrcp.f32 %v4680_v45 }
 0x849   : > { %v4677_v46 = vpop.xlane.xlu0 %4676 }
 0x84a   : > { %8607 = vrcp.f32 %v4677_v46  ;;  %8178 = vmatprep.mubr.msk.f32.mxu0 %vm2528_vm1, %v4727_v56 }
 0x84b   : > { %8179 = vmatmul.mubr.msk.f32.vlgmr.msra.gmra.mxu0 %vm2528_vm1, %v4728_v62 }
 0x84c   : > { %8189 = vmatpush3.msra.mxu0 %v9723_v48 }
 0x84d   : > { %8190 = vmatprep.subr.mxu0 %v9718_v58  ;;  %v8602_v47 = vpop.eup %8601 }
 0x84e   : > { %8191 = vmatpush3.msra.mxu0 %v9718_v58  ;;  %v4730_v28 = vmul.f32 %v8602_v47, %v9823_v27 }
 0x84f   : > { %v8604_v37 = vpop.eup %8603  ;;  %v4686_v25 = vpop.xlane.xlu1 %4685  ;;  %8202 = vmatprep.subr.mxu0 %v9740_v0 }
 0x850   : > { %v4729_v11 = vmul.f32 %v8604_v37, %v9828_v12  ;;  %8609 = vrcp.f32 %v4686_v25  ;;  %v8425_v37 = vld [vmem:[%s8913_s25 + $0x38] sm:$0xff]  }
 0x851   : > { %v4683_v21 = vpop.xlane.xlu0 %4682  ;;  %v8421_v25 = vld [vmem:[%s8913_s25 + $0x18] sm:$0xff]  }
 0x852   : > { %8611 = vrcp.f32 %v4683_v21  ;;  %8185 = vmatprep.mubr.msk.f32.mxu1 %vm2528_vm1, %v4729_v11 }
 0x853   : > { %v4692_v7 = vpop.xlane.xlu1 %4691  ;;  %8186 = vmatmul.mubr.msk.f32.vlgmr.msra.gmra.mxu1 %vm2528_vm1, %v4730_v28 }
 0x854   : > { %8196 = vmatpush3.msra.mxu1 %v9721_v50  ;;  %8613 = vrcp.f32 %v4692_v7 }
 0x855   : > { %8197 = vmatprep.subr.mxu1 %v9715_v40  ;;  %v4689_v58 = vpop.xlane.xlu0 %4688  ;;  %v8606_v48 = vpop.eup %8605 }
 0x856   : > { %8198 = vmatpush3.msra.mxu1 %v9715_v40  ;;  %8615 = vrcp.f32 %v4689_v58  ;;  %v4732_v34 = vmul.f32 %v8606_v48, %v9835_v51 }
 0x857   : > { %v8608_v12 = vpop.eup %8607  ;;  %8209 = vmatprep.subr.mxu1 %v9732_v55  ;;  %v4698_v27 = vpop.xlane.xlu1 %4697 }
 0x858   : > { %v4731_v26 = vmul.f32 %v8608_v12, %v9840_v14  ;;  %8617 = vrcp.f32 %v4698_v27 }
 0x859   : > { %v4695_v4 = vpop.xlane.xlu0 %4694 }
 0x85a   : > { %8619 = vrcp.f32 %v4695_v4  ;;  %8192 = vmatprep.mubr.msk.f32.mxu0 %vm2528_vm1, %v4731_v26 }
 0x85b   : > { %v4704_v50 = vpop.xlane.xlu1 %4703  ;;  %8193 = vmatmul.mubr.msk.f32.vlgmr.msra.gmra.mxu0 %vm2528_vm1, %v4732_v34 }
 0x85c   : > { %8203 = vmatpush3.msra.mxu0 %v9740_v0  ;;  %8621 = vrcp.f32 %v4704_v50 }
 0x85d   : > { %8204 = vmatprep.subr.mxu0 %v9730_v57  ;;  %v4701_v40 = vpop.xlane.xlu0 %4700  ;;  %v8610_v39 = vpop.eup %8609 }
 0x85e   : > { %8205 = vmatpush3.msra.mxu0 %v9730_v57  ;;  %8623 = vrcp.f32 %v4701_v40  ;;  %v4734_v46 = vmul.f32 %v8610_v39, %v9847_v59 }
 0x85f   : > { %v8612_v14 = vpop.eup %8611  ;;  %8216 = vmatprep.subr.mxu0 %v9764_v16  ;;  %v4710_v51 = vpop.xlane.xlu1 %4709 }
 0x860   : > { %v4733_v45 = vmul.f32 %v8612_v14, %v9852_v20  ;;  %8625 = vrcp.f32 %v4710_v51 }
 0x861   : > { %v4707_v56 = vpop.xlane.xlu0 %4706  ;;  %v8614_v0 = vpop.eup %8613 }
 0x862   : > { %8627 = vrcp.f32 %v4707_v56  ;;  %8199 = vmatprep.mubr.msk.f32.mxu1 %vm2528_vm1, %v4733_v45  ;;  %v4736_v20 = vmul.f32 %v8614_v0, %v9856_v29  ;;  %v8725_v45 = vld [vmem:[#allocation2] sm:$0xff] }
 0x863   : > { %v8616_v62 = vpop.eup %8615  ;;  %8200 = vmatmul.mubr.msk.f32.vlgmr.msra.gmra.mxu1 %vm2528_vm1, %v4734_v46 }
 0x864   : > { %8210 = vmatpush3.msra.mxu1 %v9732_v55  ;;  %v4735_v57 = vmul.f32 %v8616_v62, %v9860_v43  ;;  %v9995_v62 = vld [vmem:[%s10684_s26] ss:$0 sm:$0xff] }
 0x865   : > { %8211 = vmatprep.subr.mxu1 %v9728_v13  ;;  %v8618_v47 = vpop.eup %8617 }
 0x866   : > { %8212 = vmatpush3.msra.mxu1 %v9728_v13  ;;  %8206 = vmatprep.mubr.msk.f32.mxu0 %vm2528_vm1, %v4735_v57  ;;  %v4738_v29 = vmul.f32 %v8618_v47, %v9864_v31  ;;  %v8726_v57 = vld [vmem:[#allocation2 + $0x10] sm:$0xff] }
 0x867   : > { %v8620_v59 = vpop.eup %8619  ;;  %8223 = vmatprep.subr.mxu1 %v9756_v42  ;;  %8207 = vmatmul.mubr.msk.f32.vlgmr.msra.gmra.mxu0 %vm2528_vm1, %v4736_v20 }
 0x868   : > { %8217 = vmatpush3.msra.mxu0 %v9764_v16  ;;  %v4737_v55 = vmul.f32 %v8620_v59, %v9868_v15 }
 0x869   : > { %8218 = vmatprep.subr.mxu0 %v9752_v19  ;;  %v8622_v43 = vpop.eup %8621 }
 0x86a   : > { %8219 = vmatpush3.msra.mxu0 %v9752_v19  ;;  %8213 = vmatprep.mubr.msk.f32.mxu1 %vm2528_vm1, %v4737_v55  ;;  %v4740_v15 = vmul.f32 %v8622_v43, %v9872_v32  ;;  %v8424_v32 = vld [vmem:[%s8913_s25] sm:$0xff]   ;;  %v8727_v55 = vld [vmem:[#allocation2 + $0x8] sm:$0xff] }
 0x86b   : > { %v8624_v13 = vpop.eup %8623  ;;  %8214 = vmatmul.mubr.msk.f32.vlgmr.msra.gmra.mxu1 %vm2528_vm1, %v4738_v29  ;;  %8230 = vmatprep.subr.bf16.mxu0 %v8425_v37 }
 0x86c   : > { %8224 = vmatpush3.msra.mxu1 %v9756_v42  ;;  %v4739_v16 = vmul.f32 %v8624_v13, %v9876_v30  ;;  %v8422_v30 = vld [vmem:[%s8913_s25 + $0x10] sm:$0xff]   ;;  %v8728_v13 = vld [vmem:[#allocation2 + $0x18] sm:$0xff] }
 0x86d   : > { %8225 = vmatprep.subr.mxu1 %v9744_v35  ;;  %v8626_v31 = vpop.eup %8625 }
 0x86e   : > { %8226 = vmatpush3.msra.mxu1 %v9744_v35  ;;  %8220 = vmatprep.mubr.msk.f32.mxu0 %vm2528_vm1, %v4739_v16  ;;  %v4742_v42 = vmul.f32 %v8626_v31, %v9880_v44  ;;  %v8423_v35 = vld [vmem:[%s8913_s25 + $0x8] sm:$0xff]  }
 0x86f   : > { %v8628_v19 = vpop.eup %8627  ;;  %8221 = vmatmul.mubr.msk.f32.vlgmr.msra.gmra.mxu0 %vm2528_vm1, %v4740_v15  ;;  %8254 = vmatprep.subr.bf16.mxu1 %v8421_v25 }
 0x870   : > { %v4741_v11 = vmul.f32 %v8628_v19, %v9884_v18  ;;  %8231 = vmatpush3.bf16.msra.mxu0 %v8425_v37 }
 0x871   : > { %8232 = vmatprep.subr.bf16.mxu0 %v8426_v53 }
 0x872   : > { %8227 = vmatprep.mubr.msk.f32.mxu1 %vm2528_vm1, %v4741_v11 }
 0x873   : > { %8228 = vmatmul.mubr.msk.f32.vlgmr.msra.gmra.mxu1 %vm2528_vm1, %v4742_v42 }
 0x874   : > { %8255 = vmatpush3.bf16.msra.mxu1 %v8421_v25  ;;  %8262 = vmatprep.mubr.msk.bf16.mxu1 %vm1815_vm0, %v3353_v23 }
 0x875   : > { %8256 = vmatprep.subr.bf16.mxu1 %v8422_v30  ;;  %8233 = vmatpush3.bf16.msra.mxu0 %v8426_v53 }
 0x876   : > { %8234 = vmatprep.subr.bf16.mxu0 %v8427_v24 }
 0x878   : > { %8257 = vmatpush3.bf16.msra.mxu1 %v8422_v30 }
 0x879   : > { %8258 = vmatprep.subr.bf16.mxu1 %v8423_v35  ;;  %8235 = vmatpush3.bf16.msra.mxu0 %v8427_v24  ;;  %v8729_v24 = vld [vmem:[#allocation2 + $0x20] sm:$0xff] }
 0x87a   : > { %8236 = vmatprep.subr.bf16.mxu0 %v8428_v8 }
 0x87c   : > { %8259 = vmatpush3.bf16.msra.mxu1 %v8423_v35 }
 0x87d   : > { %8260 = vmatprep.subr.bf16.mxu1 %v8424_v32  ;;  %8237 = vmatpush3.bf16.msra.mxu0 %v8428_v8 }
 0x880   : > { %8261 = vmatpush3.bf16.msra.mxu1 %v8424_v32 }
 0x883   : > { %8263 = vmatmul.mubr.msk.bf16.vlgmr.msra.gmra.mxu1 %vm1815_vm0, %v3354_v63  ;;  %v10683_v63 = vpack.c.bf16 %v9652_v49, %v9654_v3 }
 0x884   : > { %8266 = vmatprep.mubr.msk.bf16.mxu1 %vm1815_vm0, %v3355_v10 }
 0x88b   : > { %8267 = vmatmul.mubr.msk.bf16.gmra.mxu1 %vm1815_vm0, %v3356_v5 }
 0x88c   : > { %8270 = vmatprep.mubr.msk.bf16.mxu1 %vm1815_vm0, %v3357_v36 }
 0x893   : > { %8271 = vmatmul.mubr.msk.bf16.gmra.mxu1 %vm1815_vm0, %v3358_v9 }
 0x894   : > { %8274 = vmatprep.mubr.msk.bf16.mxu1 %vm1815_vm0, %v3359_v2 }
 0x89b   : > { %8275 = vmatmul.mubr.msk.bf16.gmra.mxu1 %vm1815_vm0, %v10683_v63 }
 0x90b   : > { %v8180_v38 = vpop.f32.mrf.mxu0 }
 0x90d   : > { %v4815_v54 = vpop.f32.mrf.mxu0 }
 0x90e   : > { %v5391_v5 = vpack.c.bf16 %v8180_v38, %v4815_v54  ;;  %v8730_v38 = vld [vmem:[#allocation2 + $0x30] sm:$0xff] }
 0x910   : > { %8238 = vmatprep.mubr.msk.bf16.mxu0 %vm1815_vm0, %v5391_v5 }
 0x913   : > { %v8187_v17 = vpop.f32.mrf.mxu1 }
 0x915   : > { %v4896_v23 = vpop.f32.mrf.mxu1 }
 0x916   : > { %v5392_v6 = vpack.c.bf16 %v8187_v17, %v4896_v23 }
 0x918   : > { %8239 = vmatmul.mubr.msk.bf16.vlgmr.msra.gmra.mxu0 %vm1815_vm0, %v5392_v6 }
 0x91b   : > { %v8194_v1 = vpop.f32.mrf.mxu0 }
 0x91d   : > { %v4977_v60 = vpop.f32.mrf.mxu0 }
 0x91e   : > { %v5393_v10 = vpack.c.bf16 %v8194_v1, %v4977_v60  ;;  %v8731_v60 = vld [vmem:[#allocation2 + $0x28] sm:$0xff] }
 0x920   : > { %8242 = vmatprep.mubr.msk.bf16.mxu0 %vm1815_vm0, %v5393_v10 }
 0x923   : > { %v8201_v61 = vpop.f32.mrf.mxu1 }
 0x925   : > { %v5058_v9 = vpop.f32.mrf.mxu1 }
 0x926   : > { %v5394_v49 = vpack.c.bf16 %v8201_v61, %v5058_v9 }
 0x927   : > { %v8208_v3 = vpop.f32.mrf.mxu0 }
 0x928   : > { %8243 = vmatmul.mubr.msk.bf16.gmra.mxu0 %vm1815_vm0, %v5394_v49 }
 0x929   : > { %v5139_v52 = vpop.f32.mrf.mxu0 }
 0x92a   : > { %v5395_v22 = vpack.c.bf16 %v8208_v3, %v5139_v52  ;;  %v8732_v3 = vld [vmem:[#allocation2 + $0x38] sm:$0xff] }
 0x92b   : > { %v8215_v36 = vpop.f32.mrf.mxu1 }
 0x92c   : > { %8246 = vmatprep.mubr.msk.bf16.mxu0 %vm1815_vm0, %v5395_v22 }
 0x92d   : > { %v5220_v41 = vpop.f32.mrf.mxu1 }
 0x92e   : > { %v5396_v33 = vpack.c.bf16 %v8215_v36, %v5220_v41 }
 0x92f   : > { %v8222_v2 = vpop.f32.mrf.mxu0 }
 0x930   : > { %8247 = vmatmul.mubr.msk.bf16.gmra.mxu0 %vm1815_vm0, %v5396_v33 }
 0x931   : > { %v5301_v44 = vpop.f32.mrf.mxu0 }
 0x932   : > { %v5397_v18 = vpack.c.bf16 %v8222_v2, %v5301_v44  ;;  %v8733_v2 = vld [vmem:[#allocation2 + $0x40] sm:$0xff] }
 0x933   : > { %v8229_v21 = vpop.f32.mrf.mxu1 }
 0x934   : > { %8250 = vmatprep.mubr.msk.bf16.mxu0 %vm1815_vm0, %v5397_v18 }
 0x935   : > { %v5382_v28 = vpop.f32.mrf.mxu1 }
 0x936   : > { %v5398_v7 = vpack.c.bf16 %v8229_v21, %v5382_v28 }
 0x938   : > { %8251 = vmatmul.mubr.msk.bf16.gmra.mxu0 %vm1815_vm0, %v5398_v7  ;;  %v8734_v7 = vld [vmem:[#allocation2 + $0x50] sm:$0xff] }
 0x943   : > { %v8264_v58 = vpop.f32.mrf.mxu1 }
 0x945   : > { %v5635_v48 = vpop.f32.mrf.mxu1 }
 0x947   : > { %v8265_v12 = vpop.f32.mrf.mxu1 }
 0x949   : > { %v5638_v27 = vpop.f32.mrf.mxu1 }
 0x94b   : > { %v8268_v26 = vpop.f32.mrf.mxu1 }
 0x94d   : > { %v5651_v4 = vpop.f32.mrf.mxu1 }
 0x94f   : > { %v8269_v50 = vpop.f32.mrf.mxu1 }
 0x951   : > { %v5654_v46 = vpop.f32.mrf.mxu1 }
 0x953   : > { %v8272_v43 = vpop.f32.mrf.mxu1 }
 0x955   : > { %v5667_v31 = vpop.f32.mrf.mxu1 }
 0x957   : > { %v8273_v42 = vpop.f32.mrf.mxu1 }
 0x959   : > { %v5670_v63 = vpop.f32.mrf.mxu1 }
 0x95b   : > { %v8276_v61 = vpop.f32.mrf.mxu1 }
 0x95d   : > { %v5683_v18 = vpop.f32.mrf.mxu1 }
 0x9d8   : > { %v8240_v34 = vpop.f32.mrf.mxu0 }
 0x9d9   : > { %v5644_v39 = vadd.f32 %v8264_v58, %v8240_v34 }
 0x9da   : > { %v5490_v40 = vpop.f32.mrf.mxu0 }
 0x9db   : > { %v5636_v14 = vadd.f32 %v5635_v48, %v5490_v40  ;;  %v5700_v20 = vadd.f32 %v8726_v57, %v5644_v39  ;;  %v8736_v40 = vld [vmem:[#allocation2 + $0x58] sm:$0xff]  ;;  %v8737_v57 = vld [vmem:[#allocation2 + $0x60] sm:$0xff] }
 0x9dc   : > { %v8241_v51 = vpop.f32.mrf.mxu0 }
 0x9dd   : > { %v5698_v56 = vadd.f32 %v8725_v45, %v5636_v14  ;;  %v5647_v47 = vadd.f32 %v8265_v12, %v8241_v51  ;;  %v10005_v15 = vadd.f32 %v9995_v62, %v5700_v20 }
 0x9de   : > { %v5493_v0 = vpop.f32.mrf.mxu0 }
 0x9df   : > { %v5639_v59 = vadd.f32 %v5638_v27, %v5493_v0  ;;  %v9998_v37 = vadd.f32 %v9995_v62, %v5698_v56  ;;  %v5701_v25 = vadd.f32 %v8728_v13, %v5647_v47 }
 0x9e1   : > { %v5699_v29 = vadd.f32 %v8727_v55, %v5639_v59  ;;  %5739 = vadd.xlane.f32.xlu0 %v9998_v37  ;;  %v10010_v19 = vadd.f32 %v9995_v62, %v5701_v25 }
 0x9e3   : > { %v10002_v16 = vadd.f32 %v9995_v62, %v5699_v29  ;;  %v8738_v29 = vld [vmem:[#allocation2 + $0x70] sm:$0xff] }
 0x9e5   : > { %5741 = vadd.xlane.f32.xlu1 %v10002_v16  ;;  %5743 = vadd.xlane.f32.xlu0 %v10005_v15 }
 0x9e8   : > { %v8244_v11 = vpop.f32.mrf.mxu0 }
 0x9e9   : > { %5745 = vadd.xlane.f32.xlu1 %v10010_v19  ;;  %v5660_v30 = vadd.f32 %v8268_v26, %v8244_v11  ;;  %v8739_v11 = vld [vmem:[#allocation2 + $0x68] sm:$0xff] }
 0x9ea   : > { %v5506_v35 = vpop.f32.mrf.mxu0 }
 0x9eb   : > { %v5652_v32 = vadd.f32 %v5651_v4, %v5506_v35  ;;  %v5704_v54 = vadd.f32 %v8730_v38, %v5660_v30  ;;  %v8735_v4 = vld [vmem:[#allocation2 + $0x48] sm:$0xff]  ;;  %v8740_v30 = vld [vmem:[#allocation2 + $0x78] sm:$0xff] }
 0x9ec   : > { %v8245_v53 = vpop.f32.mrf.mxu0 }
 0x9ed   : > { %v5702_v8 = vadd.f32 %v8729_v24, %v5652_v32  ;;  %v5663_v17 = vadd.f32 %v8269_v50, %v8245_v53  ;;  %v10018_v49 = vadd.f32 %v9995_v62, %v5704_v54  ;;  %v8277_v50 = vpop.f32.mrf.mxu1 }
 0x9ee   : > { %v5509_v5 = vpop.f32.mrf.mxu0 }
 0x9ef   : > { %v5655_v23 = vadd.f32 %v5654_v46, %v5509_v5  ;;  %v10014_v6 = vadd.f32 %v9995_v62, %v5702_v8  ;;  %v5705_v52 = vadd.f32 %v8732_v3, %v5663_v17  ;;  %v5686_v47 = vpop.f32.mrf.mxu1  ;;  %v8429_v8 = vld [vmem:[%s8936_s6 + $0x70] ss:$8 sps:$4 sm:$0xff]  }
 0x9f0   : > { %v8248_v1 = vpop.f32.mrf.mxu0 }
 0x9f1   : > { %v5703_v10 = vadd.f32 %v8731_v60, %v5655_v23  ;;  %5747 = vadd.xlane.f32.xlu0 %v10014_v6  ;;  %v5676_v22 = vadd.f32 %v8272_v43, %v8248_v1  ;;  %v10026_v12 = vadd.f32 %v9995_v62, %v5705_v52 }
 0x9f2   : > { %v5522_v9 = vpop.f32.mrf.mxu0 }
 0x9f3   : > { %v5668_v36 = vadd.f32 %v5667_v31, %v5522_v9  ;;  %v10021_v41 = vadd.f32 %v9995_v62, %v5703_v10  ;;  %v5708_v58 = vadd.f32 %v8734_v7, %v5676_v22 }
 0x9f4   : > { %v8249_v33 = vpop.f32.mrf.mxu0 }
 0x9f5   : > { %v5706_v44 = vadd.f32 %v8733_v2, %v5668_v36  ;;  %5749 = vadd.xlane.f32.xlu1 %v10021_v41  ;;  %5751 = vadd.xlane.f32.xlu0 %v10018_v49  ;;  %v5679_v21 = vadd.f32 %v8273_v42, %v8249_v33  ;;  %v10037_v46 = vadd.f32 %v9995_v62, %v5708_v58 }
 0x9f6   : > { %v5525_v28 = vpop.f32.mrf.mxu0 }
 0x9f7   : > { %v5671_v48 = vadd.f32 %v5670_v63, %v5525_v28  ;;  %v10029_v27 = vadd.f32 %v9995_v62, %v5706_v44  ;;  %v5709_v39 = vadd.f32 %v8736_v40, %v5679_v21  ;;  %10686 = vst [vmem:[#allocation8_spill] sm:$0xff] %v10037_v46  ;;  %v8431_v63 = vld [vmem:[%s8936_s6 + $0x74] ss:$8 sps:$4 sm:$0xff]   ;;  %v8432_v28 = vld [vmem:[%s8936_s6 + $0x60] ss:$8 sps:$4 sm:$0xff]  }
 0x9f8   : > { %v8252_v26 = vpop.f32.mrf.mxu0  ;;  %6075 = vmatprep.subr.bf16.mxu0 %v8431_v63 }
 0x9f9   : > { %v5707_v34 = vadd.f32 %v8735_v4, %v5671_v48  ;;  %5753 = vadd.xlane.f32.xlu1 %v10026_v12  ;;  %5755 = vadd.xlane.f32.xlu0 %v10029_v27  ;;  %v5692_v51 = vadd.f32 %v8276_v61, %v8252_v26  ;;  %v10042_v55 = vadd.f32 %v9995_v62, %v5709_v39  ;;  %v8435_v39 = vld [vmem:[%s8936_s6 + $0x50] ss:$8 sps:$4 sm:$0xff]  }
 0x9fa   : > { %v5538_v14 = vpop.f32.mrf.mxu0  ;;  %6076 = vmatpush1.bf16.msra.mxu0 %v8429_v8  ;;  %v8443_v8 = vld [vmem:[%s8936_s6 + $0x34] ss:$8 sps:$4 sm:$0xff]  }
 0x9fb   : > { %v5684_v45 = vadd.f32 %v5683_v18, %v5538_v14  ;;  %v10034_v56 = vadd.f32 %v9995_v62, %v5707_v34  ;;  %10687 = vst [vmem:[#allocation9_spill] sm:$0xff] %v10042_v55  ;;  %v5712_v43 = vadd.f32 %v8738_v29, %v5692_v51  ;;  %v8434_v18 = vld [vmem:[%s8936_s6 + $0x64] ss:$8 sps:$4 sm:$0xff]   ;;  %v8437_v34 = vld [vmem:[%s8936_s6 + $0x54] ss:$8 sps:$4 sm:$0xff]  }
 0x9fc   : > { %v8253_v0 = vpop.f32.mrf.mxu0  ;;  %6077 = vmatprep.subr.bf16.mxu0 %v8434_v18 }
 0x9fd   : > { %10685 = vst [vmem:[#allocation7_spill] sm:$0xff] %v10034_v56  ;;  %v5710_v20 = vadd.f32 %v8737_v57, %v5684_v45  ;;  %5757 = vadd.xlane.f32.xlu1 %v10034_v56  ;;  %5759 = vadd.xlane.f32.xlu0 %v10037_v46  ;;  %v5695_v13 = vadd.f32 %v8277_v50, %v8253_v0 }
 0x9fe   : > { %v5541_v59 = vpop.f32.mrf.mxu0  ;;  %v10053_v53 = vadd.f32 %v9995_v62, %v5712_v43  ;;  %6078 = vmatpush1.bf16.msra.mxu0 %v8432_v28  ;;  %v8438_v43 = vld [vmem:[%s8936_s6 + $0x40] ss:$8 sps:$4 sm:$0xff]  }
 0x9ff   : > { %v5687_v25 = vadd.f32 %v5686_v47, %v5541_v59  ;;  %v10045_v31 = vadd.f32 %v9995_v62, %v5710_v20  ;;  %v5713_v35 = vadd.f32 %v8740_v30, %v5695_v13  ;;  %6079 = vmatprep.subr.bf16.mxu0 %v8437_v34  ;;  %v8440_v47 = vld [vmem:[%s8936_s6 + $0x44] ss:$8 sps:$4 sm:$0xff]   ;;  %v8447_v34 = vld [vmem:[%s8936_s6 + $0x10] ss:$8 sps:$4 sm:$0xff]  }
 0xa00   : > { %10690 = vst [vmem:[#allocation12_spill] sm:$0xff] %v10053_v53 }
 0xa01   : > { %10688 = vst [vmem:[#allocation10_spill] sm:$0xff] %v10045_v31  ;;  %v5711_v42 = vadd.f32 %v8739_v11, %v5687_v25  ;;  %5761 = vadd.xlane.f32.xlu1 %v10042_v55  ;;  %5763 = vadd.xlane.f32.xlu0 %v10045_v31  ;;  %v10058_v24 = vadd.f32 %v9995_v62, %v5713_v35 }
 0xa02   : > { %6080 = vmatpush1.bf16.msra.mxu0 %v8435_v39 }
 0xa03   : > { %v10050_v32 = vadd.f32 %v9995_v62, %v5711_v42  ;;  %10691 = vst [vmem:[#allocation13_spill] sm:$0xff] %v10058_v24  ;;  %6081 = vmatprep.subr.bf16.mxu0 %v8440_v47 }
 0xa05   : > { %10689 = vst [vmem:[#allocation11_spill] sm:$0xff] %v10050_v32  ;;  %5765 = vadd.xlane.f32.xlu1 %v10050_v32  ;;  %5767 = vadd.xlane.f32.xlu0 %v10053_v53 }
 0xa06   : > { %6082 = vmatpush1.bf16.msra.mxu0 %v8438_v43  ;;  %v8787_v43 = vmov 0  }
 0xa07   : > { %6083 = vmatprep.subr.bf16.mxu0 %v8443_v8  ;;  %6107 = vmatprep.mubr.bf16.mxu0 %v8787_v43 }
 0xa09   : > { %5769 = vadd.xlane.f32.xlu1 %v10058_v24 }
 0xa6a   : > { %v5740_v38 = vpop.xlane.xlu0 %5739 }
 0xa6b   : > { %v5771_v54 = vmul.f32 0.0078125, %v5740_v38 }
 0xa6d   : > { %v10064_v5 = vsub.f32 %v9998_v37, %v5771_v54  ;;  %v8441_v54 = vld [vmem:[%s8936_s6 + $0x30] ss:$8 sps:$4 sm:$0xff]  }
 0xa6e   : > { %v5742_v17 = vpop.xlane.xlu1 %5741  ;;  %v5744_v23 = vpop.xlane.xlu0 %5743  ;;  %6084 = vmatpush1.bf16.msra.mxu0 %v8441_v54 }
 0xa6f   : > { %v5772_v1 = vmul.f32 0.0078125, %v5742_v17  ;;  %v5773_v60 = vmul.f32 0.0078125, %v5744_v23  ;;  %v5803_v62 = vmul.f32 %v10064_v5, %v10064_v5 }
 0xa71   : > { %v10069_v10 = vsub.f32 %v10002_v16, %v5772_v1  ;;  %v10072_v61 = vsub.f32 %v10005_v15, %v5773_v60  ;;  %5819 = vadd.xlane.f32.xlu0 %v5803_v62 }
 0xa72   : > { %v5746_v9 = vpop.xlane.xlu1 %5745 }
 0xa73   : > { %v5774_v3 = vmul.f32 0.0078125, %v5746_v9  ;;  %v5804_v52 = vmul.f32 %v10069_v10, %v10069_v10  ;;  %v5805_v22 = vmul.f32 %v10072_v61, %v10072_v61 }
 0xa75   : > { %v10079_v36 = vsub.f32 %v10010_v19, %v5774_v3  ;;  %5821 = vadd.xlane.f32.xlu1 %v5804_v52  ;;  %5823 = vadd.xlane.f32.xlu0 %v5805_v22  ;;  %v8446_v3 = vld [vmem:[%s8936_s6 + $0x24] ss:$8 sps:$4 sm:$0xff]  }
 0xa76   : > { %6085 = vmatprep.subr.bf16.mxu0 %v8446_v3 }
 0xa77   : > { %v5806_v33 = vmul.f32 %v10079_v36, %v10079_v36 }
 0xa79   : > { %5825 = vadd.xlane.f32.xlu1 %v5806_v33  ;;  %v8444_v33 = vld [vmem:[%s8936_s6 + $0x20] ss:$8 sps:$4 sm:$0xff]  }
 0xa7a   : > { %v5748_v2 = vpop.xlane.xlu0 %5747  ;;  %6086 = vmatpush1.bf16.msra.mxu0 %v8444_v33 }
 0xa7b   : > { %v5775_v44 = vmul.f32 0.0078125, %v5748_v2 }
 0xa7d   : > { %v10085_v21 = vsub.f32 %v10014_v6, %v5775_v44 }
 0xa7e   : > { %v5750_v7 = vpop.xlane.xlu1 %5749  ;;  %v5752_v58 = vpop.xlane.xlu0 %5751 }
 0xa7f   : > { %v5776_v48 = vmul.f32 0.0078125, %v5750_v7  ;;  %v5777_v26 = vmul.f32 0.0078125, %v5752_v58  ;;  %v5807_v4 = vmul.f32 %v10085_v21, %v10085_v21 }
 0xa81   : > { %v10092_v50 = vsub.f32 %v10021_v41, %v5776_v48  ;;  %v10095_v40 = vsub.f32 %v10018_v49, %v5777_v26  ;;  %5827 = vadd.xlane.f32.xlu0 %v5807_v4  ;;  %v8449_v48 = vld [vmem:[%s8936_s6 + $0x14] ss:$8 sps:$4 sm:$0xff]  }
 0xa82   : > { %v5754_v14 = vpop.xlane.xlu1 %5753  ;;  %v5756_v51 = vpop.xlane.xlu0 %5755  ;;  %6087 = vmatprep.subr.bf16.mxu0 %v8449_v48 }
 0xa83   : > { %v5778_v45 = vmul.f32 0.0078125, %v5754_v14  ;;  %v5779_v0 = vmul.f32 0.0078125, %v5756_v51  ;;  %v5808_v57 = vmul.f32 %v10092_v50, %v10092_v50  ;;  %v5809_v20 = vmul.f32 %v10095_v40, %v10095_v40  ;;  %6088 = vmatpush1.bf16.msra.mxu0 %v8447_v34 }
 0xa85   : > { %v10104_v59 = vsub.f32 %v10026_v12, %v5778_v45  ;;  %v10107_v29 = vsub.f32 %v10029_v27, %v5779_v0  ;;  %5829 = vadd.xlane.f32.xlu1 %v5808_v57  ;;  %5831 = vadd.xlane.f32.xlu0 %v5809_v20  ;;  %v8452_v0 = vld [vmem:[%s8936_s6 + $0x4] ss:$8 sps:$4 sm:$0xff]   ;;  %v8450_v20 = vld [vmem:[%s8936_s6] ss:$8 sps:$4 sm:$0xff]   ;;  %s10704_s6 = sld [smem:[#allocation20_spill]] (!%p7410_p5) }
 0xa86   : > { %v5758_v13 = vpop.xlane.xlu1 %5757  ;;  %v5760_v25 = vpop.xlane.xlu0 %5759  ;;  %6089 = vmatprep.subr.bf16.mxu0 %v8452_v0 }
 0xa87   : > { %v5780_v11 = vmul.f32 0.0078125, %v5758_v13  ;;  %v5781_v42 = vmul.f32 0.0078125, %v5760_v25  ;;  %v5810_v30 = vmul.f32 %v10104_v59, %v10104_v59  ;;  %v5811_v35 = vmul.f32 %v10107_v29, %v10107_v29  ;;  %6090 = vmatpush1.bf16.msra.mxu0 %v8450_v20 }
 0xa89   : > { %v10116_v63 = vsub.f32 %v10034_v56, %v5780_v11  ;;  %v10119_v38 = vsub.f32 %v10037_v46, %v5781_v42  ;;  %5833 = vadd.xlane.f32.xlu1 %v5810_v30  ;;  %5835 = vadd.xlane.f32.xlu0 %v5811_v35 }
 0xa8a   : > { %v5762_v17 = vpop.xlane.xlu1 %5761  ;;  %v5764_v23 = vpop.xlane.xlu0 %5763 }
 0xa8b   : > { %v5782_v1 = vmul.f32 0.0078125, %v5762_v17  ;;  %v5783_v60 = vmul.f32 0.0078125, %v5764_v23  ;;  %v5812_v62 = vmul.f32 %v10116_v63, %v10116_v63  ;;  %v5813_v9 = vmul.f32 %v10119_v38, %v10119_v38 }
 0xa8d   : > { %v10128_v52 = vsub.f32 %v10042_v55, %v5782_v1  ;;  %v10131_v22 = vsub.f32 %v10045_v31, %v5783_v60  ;;  %5837 = vadd.xlane.f32.xlu1 %v5812_v62  ;;  %5839 = vadd.xlane.f32.xlu0 %v5813_v9 }
 0xa8e   : > { %v5766_v2 = vpop.xlane.xlu1 %5765  ;;  %v5768_v44 = vpop.xlane.xlu0 %5767 }
 0xa8f   : > { %v5784_v18 = vmul.f32 0.0078125, %v5766_v2  ;;  %v5785_v28 = vmul.f32 0.0078125, %v5768_v44  ;;  %v5814_v7 = vmul.f32 %v10128_v52, %v10128_v52  ;;  %v5815_v58 = vmul.f32 %v10131_v22, %v10131_v22  ;;  %v10164_v44 = vld [vmem:[%s10692_s27] ss:$0 sm:$0xff] }
 0xa91   : > { %v10140_v26 = vsub.f32 %v10050_v32, %v5784_v18  ;;  %v10143_v4 = vsub.f32 %v10053_v53, %v5785_v28  ;;  %5841 = vadd.xlane.f32.xlu1 %v5814_v7  ;;  %5843 = vadd.xlane.f32.xlu0 %v5815_v58 }
 0xa92   : > { %v5770_v39 = vpop.xlane.xlu1 %5769 }
 0xa93   : > { %v5786_v14 = vmul.f32 0.0078125, %v5770_v39  ;;  %v5816_v51 = vmul.f32 %v10140_v26, %v10140_v26  ;;  %v5817_v45 = vmul.f32 %v10143_v4, %v10143_v4 }
 0xa95   : > { %v10152_v57 = vsub.f32 %v10058_v24, %v5786_v14  ;;  %5845 = vadd.xlane.f32.xlu1 %v5816_v51  ;;  %5847 = vadd.xlane.f32.xlu0 %v5817_v45  ;;  %v10173_v45 = vld [vmem:[%s10693_s1] ss:$0 sm:$0xff] }
 0xa97   : > { %v5818_v47 = vmul.f32 %v10152_v57, %v10152_v57 }
 0xa99   : > { %5849 = vadd.xlane.f32.xlu1 %v5818_v47 }
 0xafa   : > { %v5820_v13 = vpop.xlane.xlu0 %5819 }
 0xafb   : > { %v5851_v25 = vmul.f32 0.0078125, %v5820_v13 }
 0xafd   : > { %v5867_v11 = vadd.f32 1e-05, %v5851_v25 }
 0xafe   : > { %v5822_v42 = vpop.xlane.xlu1 %5821  ;;  %v5824_v30 = vpop.xlane.xlu0 %5823 }
 0xaff   : > { %8629 = vrsqrt.f32 %v5867_v11  ;;  %v5852_v35 = vmul.f32 0.0078125, %v5822_v42  ;;  %v5853_v8 = vmul.f32 0.0078125, %v5824_v30 }
 0xb01   : > { %v5868_v54 = vadd.f32 1e-05, %v5852_v35  ;;  %v5869_v17 = vadd.f32 1e-05, %v5853_v8 }
 0xb02   : > { %v5826_v23 = vpop.xlane.xlu1 %5825 }
 0xb03   : > { %8631 = vrsqrt.f32 %v5868_v54  ;;  %v5854_v1 = vmul.f32 0.0078125, %v5826_v23 }
 0xb04   : > { %8633 = vrsqrt.f32 %v5869_v17 }
 0xb05   : > { %v5870_v60 = vadd.f32 1e-05, %v5854_v1 }
 0xb07   : > { %8635 = vrsqrt.f32 %v5870_v60 }
 0xb0a   : > { %v5828_v62 = vpop.xlane.xlu0 %5827 }
 0xb0b   : > { %v5855_v9 = vmul.f32 0.0078125, %v5828_v62 }
 0xb0c   : > { %v8630_v3 = vpop.eup %8629 }
 0xb0d   : > { %v5899_v33 = vmul.f32 %v8630_v3, %v10064_v5  ;;  %v5871_v2 = vadd.f32 1e-05, %v5855_v9 }
 0xb0e   : > { %v5830_v18 = vpop.xlane.xlu1 %5829  ;;  %v5832_v28 = vpop.xlane.xlu0 %5831 }
 0xb0f   : > { %8637 = vrsqrt.f32 %v5871_v2  ;;  %v5856_v7 = vmul.f32 0.0078125, %v5830_v18  ;;  %v5857_v58 = vmul.f32 0.0078125, %v5832_v28  ;;  %v5921_v34 = vmul.f32 %v10164_v44, %v5899_v33 }
 0xb10   : > { %v8632_v48 = vpop.eup %8631 }
 0xb11   : > { %v8634_v39 = vpop.eup %8633  ;;  %v5900_v14 = vmul.f32 %v8632_v48, %v10069_v10  ;;  %v5872_v51 = vadd.f32 1e-05, %v5856_v7  ;;  %v5873_v5 = vadd.f32 1e-05, %v5857_v58  ;;  %v5943_v42 = vadd.f32 %v10173_v45, %v5921_v34 }
 0xb12   : > { %v5834_v0 = vpop.xlane.xlu1 %5833  ;;  %v5836_v20 = vpop.xlane.xlu0 %5835  ;;  %v5901_v10 = vmul.f32 %v8634_v39, %v10072_v61 }
 0xb13   : > { %8639 = vrsqrt.f32 %v5872_v51  ;;  %v5858_v47 = vmul.f32 0.0078125, %v5834_v0  ;;  %v5922_v13 = vmul.f32 %v10164_v44, %v5900_v14  ;;  %v5859_v11 = vmul.f32 0.0078125, %v5836_v20 }
 0xb14   : > { %v8636_v25 = vpop.eup %8635  ;;  %8641 = vrsqrt.f32 %v5873_v5  ;;  %v5923_v3 = vmul.f32 %v10164_v44, %v5901_v10 }
 0xb15   : > { %v5874_v30 = vadd.f32 1e-05, %v5858_v47  ;;  %v5944_v35 = vadd.f32 %v10173_v45, %v5922_v13  ;;  %v5902_v8 = vmul.f32 %v8636_v25, %v10079_v36  ;;  %v5875_v60 = vadd.f32 1e-05, %v5859_v11 }
 0xb16   : > { %v5838_v54 = vpop.xlane.xlu1 %5837  ;;  %v5840_v9 = vpop.xlane.xlu0 %5839  ;;  %v5945_v28 = vadd.f32 %v10173_v45, %v5923_v3 }
 0xb17   : > { %8643 = vrsqrt.f32 %v5874_v30  ;;  %v5860_v17 = vmul.f32 0.0078125, %v5838_v54  ;;  %v5959_v23 = vpack.c.bf16 %v5944_v35, %v5943_v42  ;;  %v5924_v1 = vmul.f32 %v10164_v44, %v5902_v8 }
 0xb18   : > { %v5861_v18 = vmul.f32 0.0078125, %v5840_v9 }
 0xb19   : > { %v5876_v62 = vadd.f32 1e-05, %v5860_v17  ;;  %6108 = vmatmul.mubr.bf16.vlgmr.msra.gmra.mxu0 %v5959_v23  ;;  %v5946_v2 = vadd.f32 %v10173_v45, %v5924_v1 }
 0xb1a   : > { %v5842_v33 = vpop.xlane.xlu1 %5841  ;;  %6117 = vmatprep.mubr.bf16.mxu0 %v8787_v43  ;;  %v5877_v39 = vadd.f32 1e-05, %v5861_v18  ;;  %v5844_v51 = vpop.xlane.xlu0 %5843 }
 0xb1b   : > { %8645 = vrsqrt.f32 %v5876_v62  ;;  %v5862_v61 = vmul.f32 0.0078125, %v5842_v33  ;;  %v5960_v48 = vpack.c.bf16 %v5946_v2, %v5945_v28 }
 0xb1c   : > { %v8638_v36 = vpop.eup %8637  ;;  %8647 = vrsqrt.f32 %v5875_v60 }
 0xb1d   : > { %v5903_v7 = vmul.f32 %v8638_v36, %v10085_v21  ;;  %v5878_v58 = vadd.f32 1e-05, %v5862_v61  ;;  %v5863_v21 = vmul.f32 0.0078125, %v5844_v51 }
 0xb1e   : > { %v5846_v14 = vpop.xlane.xlu1 %5845  ;;  %v5848_v62 = vpop.xlane.xlu0 %5847 }
 0xb1f   : > { %v5925_v0 = vmul.f32 %v10164_v44, %v5903_v7  ;;  %8649 = vrsqrt.f32 %v5878_v58  ;;  %v5864_v47 = vmul.f32 0.0078125, %v5846_v14  ;;  %v5879_v23 = vadd.f32 1e-05, %v5863_v21 }
 0xb20   : > { %v8640_v34 = vpop.eup %8639  ;;  %8651 = vrsqrt.f32 %v5877_v39  ;;  %v5865_v3 = vmul.f32 0.0078125, %v5848_v62  ;;  %v8456_v62 = vld [vmem:[%s8947_s15 + $0x30] sm:$0xff]  }
 0xb21   : > { %6118 = vmatmul.mubr.bf16.gmra.mxu0 %v5960_v48  ;;  %v5904_v5 = vmul.f32 %v8640_v34, %v10092_v50  ;;  %v8642_v20 = vpop.eup %8641  ;;  %v5947_v11 = vadd.f32 %v10173_v45, %v5925_v0  ;;  %v5880_v30 = vadd.f32 1e-05, %v5864_v47 }
 0xb22   : > { %6127 = vmatprep.mubr.bf16.mxu0 %v8787_v43  ;;  %v5905_v10 = vmul.f32 %v8642_v20, %v10095_v40  ;;  %v5850_v17 = vpop.xlane.xlu1 %5849  ;;  %v5881_v58 = vadd.f32 1e-05, %v5865_v3  ;;  %v8463_v3 = vld [vmem:[%s8947_s15 + $0x50] sm:$0xff]  }
 0xb23   : > { %v5926_v13 = vmul.f32 %v10164_v44, %v5904_v5  ;;  %8653 = vrsqrt.f32 %v5880_v30  ;;  %v5866_v9 = vmul.f32 0.0078125, %v5850_v17 }
 0xb24   : > { %v8644_v25 = vpop.eup %8643  ;;  %v5927_v1 = vmul.f32 %v10164_v44, %v5905_v10  ;;  %8655 = vrsqrt.f32 %v5879_v23 }
 0xb25   : > { %v5948_v42 = vadd.f32 %v10173_v45, %v5926_v13  ;;  %v5906_v50 = vmul.f32 %v8644_v25, %v10104_v59  ;;  %v5882_v2 = vadd.f32 1e-05, %v5866_v9  ;;  %v8460_v9 = vld [vmem:[%s8947_s15 + $0x20] sm:$0xff]  }
 0xb26   : > { %v5949_v33 = vadd.f32 %v10173_v45, %v5927_v1  ;;  %v8453_v1 = vld [vmem:[%s8947_s15 + $0x78] sm:$0xff]  }
 0xb27   : > { %v5961_v35 = vpack.c.bf16 %v5948_v42, %v5947_v11  ;;  %v5928_v8 = vmul.f32 %v10164_v44, %v5906_v50  ;;  %8657 = vrsqrt.f32 %v5882_v2  ;;  %7741 = vmatprep.subr.bf16.mxu1 %v8453_v1  ;;  %v8466_v2 = vld [vmem:[%s8947_s15 + $0x8] sm:$0xff]  }
 0xb28   : > { %v8646_v54 = vpop.eup %8645  ;;  %8659 = vrsqrt.f32 %v5881_v58 }
 0xb29   : > { %6128 = vmatmul.mubr.bf16.gmra.mxu0 %v5961_v35  ;;  %v8648_v60 = vpop.eup %8647  ;;  %v5950_v40 = vadd.f32 %v10173_v45, %v5928_v8  ;;  %v5908_v59 = vmul.f32 %v8646_v54, %v10116_v63 }
 0xb2a   : > { %6137 = vmatprep.mubr.bf16.mxu0 %v8787_v43  ;;  %v5907_v61 = vmul.f32 %v8648_v60, %v10107_v29  ;;  %v8455_v60 = vld [vmem:[%s8947_s15 + $0x70] sm:$0xff]  }
 0xb2b   : > { %v5962_v36 = vpack.c.bf16 %v5950_v40, %v5949_v33  ;;  %v5930_v18 = vmul.f32 %v10164_v44, %v5908_v59  ;;  %v8461_v40 = vld [vmem:[%s8947_s15 + $0x58] sm:$0xff]   ;;  %v8464_v33 = vld [vmem:[%s8947_s15 + $0x10] sm:$0xff]  }
 0xb2c   : > { %v8650_v28 = vpop.eup %8649  ;;  %v5929_v48 = vmul.f32 %v10164_v44, %v5907_v61  ;;  %v8462_v59 = vld [vmem:[%s8947_s15 + $0x18] sm:$0xff]   ;;  %v8465_v61 = vld [vmem:[%s8947_s15 + $0x48] sm:$0xff]  }
 0xb2d   : > { %v8652_v7 = vpop.eup %8651  ;;  %v5952_v63 = vadd.f32 %v10173_v45, %v5930_v18  ;;  %v5910_v34 = vmul.f32 %v8650_v28, %v10128_v52  ;;  %v8468_v18 = vld [vmem:[%s8947_s15] sm:$0xff]   ;;  %v5985_v28 = vlaneseq }
 0xb2e   : > { %v5951_v29 = vadd.f32 %v10173_v45, %v5929_v48  ;;  %v5909_v39 = vmul.f32 %v8652_v7, %v10119_v38  ;;  %v5983_v48 = vld [vmem:[%s8942_s18] sm:$0x3] }
 0xb2f   : > { %v5932_v51 = vmul.f32 %v10164_v44, %v5910_v34  ;;  %v5986_v7 = vshrl.u32 %v5985_v28, 7 }
 0xb30   : > { %v5963_v14 = vpack.c.bf16 %v5952_v63, %v5951_v29  ;;  %v8654_v5 = vpop.eup %8653  ;;  %v5931_v0 = vmul.f32 %v10164_v44, %v5909_v39 }
 0xb31   : > { %6138 = vmatmul.mubr.bf16.gmra.mxu0 %v5962_v36  ;;  %v8656_v20 = vpop.eup %8655  ;;  %v5954_v47 = vadd.f32 %v10173_v45, %v5932_v51  ;;  %v5912_v13 = vmul.f32 %v8654_v5, %v10140_v26  ;;  %v8467_v36 = vld [vmem:[%s8947_s15 + $0x40] sm:$0xff]   ;;  %v5987_v58 = vsub.s32 0, %v5986_v7  ;;  %v5991_v63 = vsub.s32 1, %v5986_v7 }
 0xb32   : > { %6147 = vmatprep.mubr.bf16.mxu0 %v8787_v43  ;;  %v5953_v52 = vadd.f32 %v10173_v45, %v5931_v0  ;;  %v5911_v25 = vmul.f32 %v8656_v20, %v10131_v22 }
 0xb33   : > { %v5934_v38 = vmul.f32 %v10164_v44, %v5912_v13  ;;  %v10244_v34 = vrot.slane %v5983_v48, %v5987_v58  ;;  %v10246_v29 = vrot.slane %v5983_v48, %v5991_v63 }
 0xb34   : > { %v5964_v21 = vpack.c.bf16 %v5954_v47, %v5953_v52  ;;  %v8658_v11 = vpop.eup %8657  ;;  %v5933_v42 = vmul.f32 %v10164_v44, %v5911_v25 }
 0xb35   : > { %v8660_v10 = vpop.eup %8659  ;;  %v5956_v50 = vadd.f32 %v10173_v45, %v5934_v38  ;;  %v5914_v26 = vmul.f32 %v8658_v11, %v10152_v57 }
 0xb36   : > { %v5955_v30 = vadd.f32 %v10173_v45, %v5933_v42  ;;  %v5913_v22 = vmul.f32 %v8660_v10, %v10143_v4  ;;  %v8454_v4 = vld [vmem:[%s8947_s15 + $0x38] sm:$0xff]  }
 0xb37   : > { %v5936_v8 = vmul.f32 %v10164_v44, %v5914_v26  ;;  %7742 = vmatpush3.bf16.msra.mxu1 %v8454_v4 }
 0xb38   : > { %v5965_v35 = vpack.c.bf16 %v5956_v50, %v5955_v30  ;;  %v5935_v54 = vmul.f32 %v10164_v44, %v5913_v22  ;;  %7743 = vmatprep.subr.bf16.mxu1 %v8455_v60  ;;  %v8458_v44 = vld [vmem:[%s8947_s15 + $0x28] sm:$0xff]  }
 0xb39   : > { %6148 = vmatmul.mubr.bf16.gmra.mxu0 %v5963_v14  ;;  %v5958_v17 = vadd.f32 %v10173_v45, %v5936_v8 }
 0xb3a   : > { %6157 = vmatprep.mubr.bf16.mxu0 %v8787_v43  ;;  %v5957_v57 = vadd.f32 %v10173_v45, %v5935_v54  ;;  %v8459_v45 = vld [vmem:[%s8947_s15 + $0x60] sm:$0xff]  }
 0xb3b   : > { %7744 = vmatpush3.bf16.msra.mxu1 %v8456_v62 }
 0xb3c   : > { %v5966_v23 = vpack.c.bf16 %v5958_v17, %v5957_v57 }
 0xb41   : > { %6158 = vmatmul.mubr.bf16.gmra.mxu0 %v5964_v21 }
 0xb42   : > { %6167 = vmatprep.mubr.bf16.mxu0 %v8787_v43 }
 0xb49   : > { %6168 = vmatmul.mubr.bf16.gmra.mxu0 %v5965_v35 }
 0xb4a   : > { %6177 = vmatprep.mubr.bf16.mxu0 %v8787_v43  ;;  %v8457_v43 = vld [vmem:[%s8947_s15 + $0x68] sm:$0xff]  }
 0xb4b   : > { %7745 = vmatprep.subr.bf16.mxu1 %v8457_v43 }
 0xb4c   : > { %7746 = vmatpush3.bf16.msra.mxu1 %v8458_v44 }
 0xb4d   : > { %7747 = vmatprep.subr.bf16.mxu1 %v8459_v45 }
 0xb50   : > { %7748 = vmatpush3.bf16.msra.mxu1 %v8460_v9 }
 0xb51   : > { %6178 = vmatmul.mubr.bf16.gmra.mxu0 %v5966_v23  ;;  %7749 = vmatprep.subr.bf16.mxu1 %v8461_v40 }
 0xb54   : > { %7750 = vmatpush3.bf16.msra.mxu1 %v8462_v59 }
 0xb55   : > { %7751 = vmatprep.subr.bf16.mxu1 %v8463_v3 }
 0xb58   : > { %7752 = vmatpush3.bf16.msra.mxu1 %v8464_v33 }
 0xb59   : > { %7753 = vmatprep.subr.bf16.mxu1 %v8465_v61 }
 0xb5c   : > { %7754 = vmatpush3.bf16.msra.mxu1 %v8466_v2 }
 0xb5d   : > { %7755 = vmatprep.subr.bf16.mxu1 %v8467_v36 }
 0xb60   : > { %7756 = vmatpush3.bf16.msra.mxu1 %v8468_v18 }
 0xbd9   : > { %v6109_v39 = vpop.f32.mrf.mxu0 }
 0xbda   : > { %v10249_v14 = vadd.f32 %v6109_v39, %v10244_v34 }
 0xbdb   : > { %v6111_v51 = vpop.f32.mrf.mxu0 }
 0xbdc   : > { %v6188_v5 = vmul.f32 %v10249_v14, %v10249_v14  ;;  %v10254_v0 = vadd.f32 %v6111_v51, %v10246_v29 }
 0xbdd   : > { %v6113_v20 = vpop.f32.mrf.mxu0 }
 0xbde   : > { %v6220_v47 = vmul.f32 %v6188_v5, %v10249_v14  ;;  %v6189_v13 = vmul.f32 %v10254_v0, %v10254_v0  ;;  %v10260_v52 = vadd.f32 %v6113_v20, %v10244_v34 }
 0xbdf   : > { %v6115_v25 = vpop.f32.mrf.mxu0 }
 0xbe0   : > { %v6252_v21 = vmul.f32 0.044715, %v6220_v47  ;;  %v6221_v38 = vmul.f32 %v6189_v13, %v10254_v0  ;;  %v6190_v11 = vmul.f32 %v10260_v52, %v10260_v52  ;;  %v10266_v42 = vadd.f32 %v6115_v25, %v10246_v29 }
 0xbe1   : > { %v6119_v10 = vpop.f32.mrf.mxu0 }
 0xbe2   : > { %v6284_v50 = vadd.f32 %v6252_v21, %v10249_v14  ;;  %v6253_v26 = vmul.f32 0.044715, %v6221_v38  ;;  %v6222_v30 = vmul.f32 %v6190_v11, %v10260_v52  ;;  %v6191_v22 = vmul.f32 %v10266_v42, %v10266_v42 }
 0xbe3   : > { %v10273_v35 = vadd.f32 %v6119_v10, %v10244_v34  ;;  %v6121_v8 = vpop.f32.mrf.mxu0 }
 0xbe4   : > { %v6316_v54 = vmul.f32 0.7978846, %v6284_v50  ;;  %v6254_v17 = vmul.f32 0.044715, %v6222_v30  ;;  %v6223_v57 = vmul.f32 %v6191_v22, %v10266_v42  ;;  %v6285_v23 = vadd.f32 %v6253_v26, %v10254_v0 }
 0xbe5   : > { %v6192_v1 = vmul.f32 %v10273_v35, %v10273_v35  ;;  %v10280_v4 = vadd.f32 %v6121_v8, %v10246_v29  ;;  %v6123_v60 = vpop.f32.mrf.mxu0 }
 0xbe6   : > { %8661 = vtanh.f32 %v6316_v54  ;;  %v6286_v62 = vadd.f32 %v6254_v17, %v10260_v52  ;;  %v6255_v43 = vmul.f32 0.044715, %v6223_v57  ;;  %v10287_v9 = vadd.f32 %v6123_v60, %v10244_v34 }
 0xbe7   : > { %v6224_v44 = vmul.f32 %v6192_v1, %v10273_v35  ;;  %v6193_v45 = vmul.f32 %v10280_v4, %v10280_v4  ;;  %v6125_v40 = vpop.f32.mrf.mxu0  ;;  %v6317_v61 = vmul.f32 0.7978846, %v6285_v23 }
 0xbe8   : > { %v6318_v59 = vmul.f32 0.7978846, %v6286_v62  ;;  %v6287_v3 = vadd.f32 %v6255_v43, %v10266_v42  ;;  %v10291_v33 = vadd.f32 %v6125_v40, %v10246_v29  ;;  %v6194_v18 = vmul.f32 %v10287_v9, %v10287_v9 }
 0xbe9   : > { %v6256_v2 = vmul.f32 0.044715, %v6224_v44  ;;  %v6225_v36 = vmul.f32 %v6193_v45, %v10280_v4  ;;  %v6129_v28 = vpop.f32.mrf.mxu0 }
 0xbea   : > { %8663 = vtanh.f32 %v6318_v59  ;;  %v6195_v7 = vmul.f32 %v10291_v33, %v10291_v33  ;;  %v10299_v58 = vadd.f32 %v6129_v28, %v10244_v34  ;;  %v6319_v48 = vmul.f32 0.7978846, %v6287_v3 }
 0xbeb   : > { %v6288_v63 = vadd.f32 %v6256_v2, %v10273_v35  ;;  %v6257_v39 = vmul.f32 0.044715, %v6225_v36  ;;  %v6226_v51 = vmul.f32 %v6194_v18, %v10287_v9  ;;  %v6131_v5 = vpop.f32.mrf.mxu0  ;;  %8665 = vtanh.f32 %v6317_v61 }
 0xbec   : > { %v6227_v20 = vmul.f32 %v6195_v7, %v10291_v33  ;;  %v6196_v47 = vmul.f32 %v10299_v58, %v10299_v58  ;;  %v10307_v13 = vadd.f32 %v6131_v5, %v10246_v29  ;;  %8667 = vtanh.f32 %v6319_v48 }
 0xbed   : > { %v6320_v25 = vmul.f32 0.7978846, %v6288_v63  ;;  %v6289_v21 = vadd.f32 %v6257_v39, %v10280_v4  ;;  %v6258_v38 = vmul.f32 0.044715, %v6226_v51  ;;  %v6133_v11 = vpop.f32.mrf.mxu0 }
 0xbee   : > { %v6259_v10 = vmul.f32 0.044715, %v6227_v20  ;;  %v6228_v50 = vmul.f32 %v6196_v47, %v10299_v58  ;;  %v6197_v26 = vmul.f32 %v10307_v13, %v10307_v13  ;;  %v10314_v30 = vadd.f32 %v6133_v11, %v10244_v34 }
 0xbef   : > { %v6321_v22 = vmul.f32 0.7978846, %v6289_v21  ;;  %v6290_v8 = vadd.f32 %v6258_v38, %v10287_v9  ;;  %v6135_v54 = vpop.f32.mrf.mxu0  ;;  %8669 = vtanh.f32 %v6320_v25 }
 0xbf0   : > { %v6291_v17 = vadd.f32 %v6259_v10, %v10291_v33  ;;  %v6260_v57 = vmul.f32 0.044715, %v6228_v50  ;;  %v6229_v23 = vmul.f32 %v6197_v26, %v10307_v13  ;;  %v6198_v1 = vmul.f32 %v10314_v30, %v10314_v30 }
 0xbf1   : > { %v6322_v60 = vmul.f32 0.7978846, %v6290_v8  ;;  %v10322_v62 = vadd.f32 %v6135_v54, %v10246_v29  ;;  %v6139_v43 = vpop.f32.mrf.mxu0  ;;  %8671 = vtanh.f32 %v6321_v22 }
 0xbf2   : > { %v6323_v44 = vmul.f32 0.7978846, %v6291_v17  ;;  %v6292_v45 = vadd.f32 %v6260_v57, %v10299_v58  ;;  %v6261_v40 = vmul.f32 0.044715, %v6229_v23  ;;  %v6230_v59 = vmul.f32 %v6198_v1, %v10314_v30 }
 0xbf3   : > { %v8662_v3 = vpop.eup %8661  ;;  %v6199_v61 = vmul.f32 %v10322_v62, %v10322_v62  ;;  %v10329_v2 = vadd.f32 %v6139_v43, %v10244_v34  ;;  %v6141_v36 = vpop.f32.mrf.mxu0  ;;  %8673 = vtanh.f32 %v6322_v60 }
 0xbf4   : > { %v6380_v18 = vadd.f32 1.0, %v8662_v3  ;;  %v6324_v28 = vmul.f32 0.7978846, %v6292_v45  ;;  %v6293_v7 = vadd.f32 %v6261_v40, %v10307_v13  ;;  %v6262_v48 = vmul.f32 0.044715, %v6230_v59 }
 0xbf5   : > { %v6231_v63 = vmul.f32 %v6199_v61, %v10322_v62  ;;  %v6200_v39 = vmul.f32 %v10329_v2, %v10329_v2  ;;  %v10336_v51 = vadd.f32 %v6141_v36, %v10246_v29  ;;  %v6143_v5 = vpop.f32.mrf.mxu0  ;;  %8675 = vtanh.f32 %v6323_v44 }
 0xbf6   : > { %v6412_v20 = vmul.f32 0.5, %v6380_v18  ;;  %v10339_v47 = vadd.f32 %v6143_v5, %v10244_v34  ;;  %v6294_v21 = vadd.f32 %v6262_v48, %v10314_v30  ;;  %8677 = vtanh.f32 %v6324_v28 }
 0xbf7   : > { %v8664_v25 = vpop.eup %8663  ;;  %v6263_v38 = vmul.f32 0.044715, %v6231_v63  ;;  %v6232_v11 = vmul.f32 %v6200_v39, %v10329_v2  ;;  %v6201_v10 = vmul.f32 %v10336_v51, %v10336_v51  ;;  %v6145_v50 = vpop.f32.mrf.mxu0  ;;  %v6325_v22 = vmul.f32 0.7978846, %v6293_v7 }
 0xbf8   : > { %v6382_v26 = vadd.f32 1.0, %v8664_v25  ;;  %v6202_v8 = vmul.f32 %v10339_v47, %v10339_v47  ;;  %v6326_v54 = vmul.f32 0.7978846, %v6294_v21  ;;  %v8666_v60 = vpop.eup %8665  ;;  %v10351_v45 = vadd.f32 %v6145_v50, %v10246_v29 }
 0xbf9   : > { %v6295_v17 = vadd.f32 %v6263_v38, %v10322_v62  ;;  %v6264_v57 = vmul.f32 0.044715, %v6232_v11  ;;  %v6233_v23 = vmul.f32 %v6201_v10, %v10336_v51  ;;  %v6149_v1 = vpop.f32.mrf.mxu0  ;;  %v10357_v59 = vmul.f32 %v6412_v20, %v10249_v14  ;;  %v8668_v28 = vpop.eup %8667 }
 0xbfa   : > { %v6414_v43 = vmul.f32 0.5, %v6382_v26  ;;  %v6234_v44 = vmul.f32 %v6202_v8, %v10339_v47  ;;  %v10354_v40 = vadd.f32 %v6149_v1, %v10244_v34  ;;  %v6203_v63 = vmul.f32 %v10351_v45, %v10351_v45 }
 0xbfb   : > { %v6327_v3 = vmul.f32 0.7978846, %v6295_v17  ;;  %v6296_v61 = vadd.f32 %v6264_v57, %v10329_v2  ;;  %v6265_v36 = vmul.f32 0.044715, %v6233_v23  ;;  %v6151_v18 = vpop.f32.mrf.mxu0  ;;  %8679 = vtanh.f32 %v6325_v22 }
 0xbfc   : > { %v10361_v7 = vmul.f32 %v6414_v43, %v10260_v52  ;;  %v6266_v48 = vmul.f32 0.044715, %v6234_v44  ;;  %v6204_v39 = vmul.f32 %v10354_v40, %v10354_v40  ;;  %v10369_v20 = vadd.f32 %v6151_v18, %v10246_v29  ;;  %v10371_v21 = vpop.eup %8669 }
 0xbfd   : > { %v6328_v5 = vmul.f32 0.7978846, %v6296_v61  ;;  %v6297_v14 = vadd.f32 %v6265_v36, %v10336_v51  ;;  %v6153_v25 = vpop.f32.mrf.mxu0  ;;  %8681 = vtanh.f32 %v6326_v54  ;;  %v6235_v38 = vmul.f32 %v6203_v63, %v10351_v45 }
 0xbfe   : > { %v6298_v52 = vadd.f32 %v6266_v48, %v10339_v47  ;;  %v6236_v11 = vmul.f32 %v6204_v39, %v10354_v40  ;;  %8683 = vtanh.f32 %v6327_v3  ;;  %v6205_v50 = vmul.f32 %v10369_v20, %v10369_v20  ;;  %v10383_v8 = vpop.eup %8671 }
 0xbff   : > { %v10381_v26 = vadd.f32 %v6153_v25, %v10244_v34  ;;  %v6155_v22 = vpop.f32.mrf.mxu0  ;;  %v6329_v54 = vmul.f32 0.7978846, %v6297_v14  ;;  %v6267_v17 = vmul.f32 0.044715, %v6235_v38  ;;  %8685 = vtanh.f32 %v6328_v5 }
 0xc00   : > { %v6268_v57 = vmul.f32 0.044715, %v6236_v11  ;;  %v10386_v23 = vadd.f32 %v6155_v22, %v10246_v29  ;;  %v10388_v1 = vpop.eup %8673  ;;  %v6237_v43 = vmul.f32 %v6205_v50, %v10369_v20  ;;  %v6381_v61 = vadd.f32 1.0, %v8666_v60 }
 0xc01   : > { %v6206_v44 = vmul.f32 %v10381_v26, %v10381_v26  ;;  %v6159_v3 = vpop.f32.mrf.mxu0  ;;  %v6330_v36 = vmul.f32 0.7978846, %v6298_v52  ;;  %v6299_v18 = vadd.f32 %v6267_v17, %v10351_v45  ;;  %v6383_v38 = vadd.f32 1.0, %v8668_v28 }
 0xc02   : > { %v6300_v48 = vadd.f32 %v6268_v57, %v10354_v40  ;;  %v6207_v63 = vmul.f32 %v10386_v23, %v10386_v23  ;;  %v8676_v39 = vpop.eup %8675  ;;  %v6269_v14 = vmul.f32 0.044715, %v6237_v43  ;;  %v10399_v5 = vadd.f32 %v6159_v3, %v10244_v34 }
 0xc03   : > { %v6238_v25 = vmul.f32 %v6206_v44, %v10381_v26  ;;  %v6161_v11 = vpop.f32.mrf.mxu0  ;;  %8687 = vtanh.f32 %v6329_v54  ;;  %v6331_v50 = vmul.f32 0.7978846, %v6299_v18  ;;  %v6413_v52 = vmul.f32 0.5, %v6381_v61  ;;  %v10402_v22 = vpop.eup %8677 }
 0xc04   : > { %v6239_v60 = vmul.f32 %v6207_v63, %v10386_v23  ;;  %v6301_v17 = vadd.f32 %v6269_v14, %v10369_v20  ;;  %v6208_v43 = vmul.f32 %v10399_v5, %v10399_v5  ;;  %v6415_v10 = vmul.f32 0.5, %v6383_v38 }
 0xc05   : > { %v6270_v57 = vmul.f32 0.044715, %v6238_v25  ;;  %v6163_v44 = vpop.f32.mrf.mxu0  ;;  %8689 = vtanh.f32 %v6330_v36  ;;  %v6332_v3 = vmul.f32 0.7978846, %v6300_v48  ;;  %v10408_v28 = vadd.f32 %v6161_v11, %v10246_v29 }
 0xc06   : > { %v6271_v24 = vmul.f32 0.044715, %v6239_v60  ;;  %v6333_v54 = vmul.f32 0.7978846, %v6301_v17  ;;  %v6240_v61 = vmul.f32 %v6208_v43, %v10399_v5  ;;  %v6445_v63 = vmul.f32 %v6413_v52, %v10254_v0 }
 0xc07   : > { %v6302_v18 = vadd.f32 %v6270_v57, %v10381_v26  ;;  %v6165_v14 = vpop.f32.mrf.mxu0  ;;  %v6447_v53 = vmul.f32 %v6415_v10, %v10266_v42  ;;  %v6209_v36 = vmul.f32 %v10408_v28, %v10408_v28  ;;  %v10418_v48 = vadd.f32 %v6163_v44, %v10244_v34 }
 0xc08   : > { %v6303_v25 = vadd.f32 %v6271_v24, %v10386_v23  ;;  %8691 = vtanh.f32 %v6331_v50  ;;  %v6272_v11 = vmul.f32 0.044715, %v6240_v61  ;;  %v10421_v60 = vadd.f32 %v6165_v14, %v10246_v29  ;;  %v10423_v57 = vpop.eup %8679 }
 0xc09   : > { %v6334_v38 = vmul.f32 0.7978846, %v6302_v18  ;;  %v6169_v17 = vpop.f32.mrf.mxu0  ;;  %8693 = vtanh.f32 %v6332_v3  ;;  %v6477_v0 = vpack.c.bf16 %v6447_v53, %v6445_v63  ;;  %v6241_v24 = vmul.f32 %v6209_v36, %v10408_v28 }
 0xc0a   : > { %v6210_v42 = vmul.f32 %v10418_v48, %v10418_v48  ;;  %v10428_v10 = vpop.eup %8681  ;;  %8695 = vtanh.f32 %v6333_v54  ;;  %v6304_v50 = vadd.f32 %v6272_v11, %v10399_v5  ;;  %v6211_v52 = vmul.f32 %v10421_v60, %v10421_v60 }
 0xc0b   : > { %v10434_v43 = vadd.f32 %v6169_v17, %v10244_v34  ;;  %v6171_v44 = vpop.f32.mrf.mxu0  ;;  %v8684_v18 = vpop.eup %8683  ;;  %v6335_v3 = vmul.f32 0.7978846, %v6303_v25  ;;  %6652 = vmatprep.mubr.bf16.mxu1 %v6477_v0  ;;  %v6273_v53 = vmul.f32 0.044715, %v6241_v24  ;;  %v6385_v63 = vadd.f32 1.0, %v10383_v8 }
 0xc0c   : > { %v6242_v61 = vmul.f32 %v6210_v42, %v10418_v48  ;;  %8697 = vtanh.f32 %v6334_v38  ;;  %v10694_v54 = vpack.c.bf16 %v10361_v7, %v10357_v59  ;;  %v6243_v14 = vmul.f32 %v6211_v52, %v10421_v60  ;;  %v10444_v32 = vpop.eup %8685 }
 0xc0d   : > { %v6212_v36 = vmul.f32 %v10434_v43, %v10434_v43  ;;  %v6387_v11 = vadd.f32 1.0, %v8676_v39  ;;  %v6173_v17 = vpop.f32.mrf.mxu0  ;;  %v6336_v25 = vmul.f32 0.7978846, %v6304_v50  ;;  %v6305_v0 = vadd.f32 %v6273_v53, %v10408_v28 }
 0xc0e   : > { %6653 = vmatmul.mubr.bf16.vlgmr.msra.gmra.mxu1 %v10694_v54  ;;  %v6417_v24 = vmul.f32 0.5, %v6385_v63  ;;  %v10448_v8 = vadd.f32 %v6171_v44, %v10246_v29  ;;  %v6274_v38 = vmul.f32 0.044715, %v6242_v61  ;;  %v6275_v42 = vmul.f32 0.044715, %v6243_v14 }
 0xc0f   : > { %v6244_v59 = vmul.f32 %v6212_v36, %v10434_v43  ;;  %v6419_v7 = vmul.f32 0.5, %v6387_v11  ;;  %v6175_v52 = vpop.f32.mrf.mxu0  ;;  %8699 = vtanh.f32 %v6335_v3  ;;  %v6337_v54 = vmul.f32 0.7978846, %v6305_v0 }
 0xc10   : > { %v6213_v39 = vmul.f32 %v10448_v8, %v10448_v8  ;;  %v10453_v31 = vpop.eup %8687  ;;  %v6307_v50 = vadd.f32 %v6275_v42, %v10421_v60  ;;  %v6449_v53 = vmul.f32 %v6417_v24, %v10280_v4  ;;  %v6384_v61 = vadd.f32 1.0, %v10371_v21 }
 0xc11   : > { %v6451_v44 = vmul.f32 %v6419_v7, %v10291_v33  ;;  %v6179_v63 = vpop.f32.mrf.mxu0  ;;  %8701 = vtanh.f32 %v6336_v25  ;;  %v6386_v3 = vadd.f32 1.0, %v10388_v1  ;;  %v6306_v11 = vadd.f32 %v6274_v38, %v10418_v48 }
 0xc12   : > { %v6245_v14 = vmul.f32 %v6213_v39, %v10448_v8  ;;  %v10461_v36 = vpop.eup %8689  ;;  %v6276_v0 = vmul.f32 0.044715, %v6244_v59  ;;  %v6416_v46 = vmul.f32 0.5, %v6384_v61  ;;  %v6339_v42 = vmul.f32 0.7978846, %v6307_v50 }
 0xc13   : > { %v6479_v55 = vpack.c.bf16 %v6451_v44, %v6449_v53  ;;  %v6418_v4 = vmul.f32 0.5, %v6386_v3  ;;  %v10465_v33 = vadd.f32 %v6173_v17, %v10244_v34  ;;  %v6181_v21 = vpop.f32.mrf.mxu0  ;;  %8703 = vtanh.f32 %v6337_v54 }
 0xc14   : > { %v6277_v56 = vmul.f32 0.044715, %v6245_v14  ;;  %v6448_v25 = vmul.f32 %v6416_v46, %v10273_v35  ;;  %v10469_v1 = vadd.f32 %v6175_v52, %v10246_v29  ;;  %v10476_v39 = vadd.f32 %v6179_v63, %v10244_v34 }
 0xc15   : > { %6660 = vmatprep.mubr.bf16.mxu1 %v6479_v55  ;;  %v8692_v24 = vpop.eup %8691  ;;  %v6450_v59 = vmul.f32 %v6418_v4, %v10287_v9  ;;  %v6214_v7 = vmul.f32 %v10465_v33, %v10465_v33  ;;  %v6338_v54 = vmul.f32 0.7978846, %v6306_v11  ;;  %v6389_v55 = vadd.f32 1.0, %v10423_v57  ;;  %v6183_v53 = vpop.f32.mrf.mxu0 }
 0xc16   : > { %v6309_v38 = vadd.f32 %v6277_v56, %v10448_v8  ;;  %v10478_v17 = vpop.eup %8693  ;;  %v6215_v46 = vmul.f32 %v10469_v1, %v10469_v1  ;;  %v6391_v35 = vadd.f32 1.0, %v8684_v18  ;;  %8705 = vtanh.f32 %v6339_v42 }
 0xc17   : > { %v8696_v52 = vpop.eup %8695  ;;  %v6308_v56 = vadd.f32 %v6276_v0, %v10434_v43  ;;  %v6478_v9 = vpack.c.bf16 %v6450_v59, %v6448_v25  ;;  %v6246_v50 = vmul.f32 %v6214_v7, %v10465_v33  ;;  %v6421_v61 = vmul.f32 0.5, %v6389_v55 }
 0xc18   : > { %v6247_v44 = vmul.f32 %v6215_v46, %v10469_v1  ;;  %v6423_v63 = vmul.f32 0.5, %v6391_v35  ;;  %v10487_v14 = vadd.f32 %v6181_v21, %v10246_v29  ;;  %v6341_v11 = vmul.f32 0.7978846, %v6309_v38  ;;  %v6185_v46 = vpop.f32.mrf.mxu0 }
 0xc19   : > { %v10489_v3 = vpop.eup %8697  ;;  %6661 = vmatmul.mubr.bf16.gmra.mxu1 %v6478_v9  ;;  %v6278_v57 = vmul.f32 0.044715, %v6246_v50  ;;  %v6216_v18 = vmul.f32 %v10476_v39, %v10476_v39  ;;  %v6388_v0 = vadd.f32 1.0, %v10402_v22  ;;  %v6453_v4 = vmul.f32 %v6421_v61, %v10307_v13 }
 0xc1a   : > { %v6279_v42 = vmul.f32 0.044715, %v6247_v44  ;;  %v6455_v25 = vmul.f32 %v6423_v63, %v10322_v62  ;;  %v6217_v59 = vmul.f32 %v10487_v14, %v10487_v14  ;;  %8707 = vtanh.f32 %v6338_v54 }
 0xc1b   : > { %v6310_v21 = vadd.f32 %v6278_v57, %v10465_v33  ;;  %v6390_v38 = vadd.f32 1.0, %v10428_v10  ;;  %v6420_v7 = vmul.f32 0.5, %v6388_v0  ;;  %v10503_v13 = vadd.f32 %v6183_v53, %v10244_v34 }
 0xc1c   : > { %v8700_v55 = vpop.eup %8699  ;;  %v6311_v35 = vadd.f32 %v6279_v42, %v10469_v1  ;;  %v6481_v9 = vpack.c.bf16 %v6455_v25, %v6453_v4  ;;  %v6249_v22 = vmul.f32 %v6217_v59, %v10487_v14  ;;  %v6340_v62 = vmul.f32 0.7978846, %v6308_v56 }
 0xc1d   : > { %8709 = vtanh.f32 %v6341_v11  ;;  %v6248_v50 = vmul.f32 %v6216_v18, %v10476_v39  ;;  %v6422_v54 = vmul.f32 0.5, %v6390_v38  ;;  %v6218_v63 = vmul.f32 %v10503_v13, %v10503_v13 }
 0xc1e   : > { %v10506_v44 = vpop.eup %8701  ;;  %v6343_v61 = vmul.f32 0.7978846, %v6311_v35  ;;  %6668 = vmatprep.mubr.bf16.mxu1 %v6481_v9  ;;  %v6281_v10 = vmul.f32 0.044715, %v6249_v22  ;;  %v10511_v57 = vadd.f32 %v6185_v46, %v10246_v29  ;;  %v6342_v0 = vmul.f32 0.7978846, %v6310_v21 }
 0xc1f   : > { %v6452_v34 = vmul.f32 %v6420_v7, %v10299_v58  ;;  %v6454_v56 = vmul.f32 %v6422_v54, %v10314_v30  ;;  %v6393_v53 = vadd.f32 1.0, %v10453_v31  ;;  %v6250_v18 = vmul.f32 %v6218_v63, %v10503_v13 }
 0xc20   : > { %8711 = vtanh.f32 %v6343_v61  ;;  %v6313_v11 = vadd.f32 %v6281_v10, %v10487_v14  ;;  %v6219_v42 = vmul.f32 %v10511_v57, %v10511_v57  ;;  %v8704_v4 = vpop.eup %8703  ;;  %v6280_v25 = vmul.f32 0.044715, %v6248_v50 }
 0xc21   : > { %v6480_v59 = vpack.c.bf16 %v6454_v56, %v6452_v34  ;;  %v6395_v29 = vadd.f32 1.0, %v8692_v24  ;;  %v6425_v38 = vmul.f32 0.5, %v6393_v53  ;;  %v6282_v46 = vmul.f32 0.044715, %v6250_v18 }
 0xc22   : > { %v6345_v21 = vmul.f32 0.7978846, %v6313_v11  ;;  %v6251_v58 = vmul.f32 %v6219_v42, %v10511_v57  ;;  %v6392_v30 = vadd.f32 1.0, %v10444_v32  ;;  %8713 = vtanh.f32 %v6340_v62 }
 0xc23   : > { %6669 = vmatmul.mubr.bf16.gmra.mxu1 %v6480_v59  ;;  %v6427_v31 = vmul.f32 0.5, %v6395_v29  ;;  %v6394_v7 = vadd.f32 1.0, %v10461_v36  ;;  %v6397_v35 = vadd.f32 1.0, %v8696_v52  ;;  %v8706_v9 = vpop.eup %8705  ;;  %8715 = vtanh.f32 %v6342_v0 }
 0xc24   : > { %v6314_v22 = vadd.f32 %v6282_v46, %v10503_v13  ;;  %v6283_v50 = vmul.f32 0.044715, %v6251_v58  ;;  %v6457_v24 = vmul.f32 %v6425_v38, %v10336_v51  ;;  %v6424_v61 = vmul.f32 0.5, %v6392_v30 }
 0xc25   : > { %v6459_v54 = vmul.f32 %v6427_v31, %v10351_v45  ;;  %v6426_v10 = vmul.f32 0.5, %v6394_v7  ;;  %v6399_v63 = vadd.f32 1.0, %v8700_v55  ;;  %v6312_v32 = vadd.f32 %v6280_v25, %v10476_v39 }
 0xc26   : > { %8717 = vtanh.f32 %v6345_v21  ;;  %v6315_v62 = vadd.f32 %v6283_v50, %v10511_v57  ;;  %v6429_v34 = vmul.f32 0.5, %v6397_v35  ;;  %v6456_v52 = vmul.f32 %v6424_v61, %v10329_v2 }
 0xc27   : > { %v6483_v36 = vpack.c.bf16 %v6459_v54, %v6457_v24  ;;  %v6458_v0 = vmul.f32 %v6426_v10, %v10339_v47  ;;  %v6431_v56 = vmul.f32 0.5, %v6399_v63  ;;  %v8708_v53 = vpop.eup %8707  ;;  %v6346_v11 = vmul.f32 0.7978846, %v6314_v22 }
 0xc28   : > { %v6347_v51 = vmul.f32 0.7978846, %v6315_v62  ;;  %v6461_v45 = vmul.f32 %v6429_v34, %v10369_v20  ;;  %v6396_v42 = vadd.f32 1.0, %v10478_v17  ;;  %v6398_v25 = vadd.f32 1.0, %v10489_v3 }
 0xc29   : > { %6676 = vmatprep.mubr.bf16.mxu1 %v6483_v36  ;;  %v6482_v18 = vpack.c.bf16 %v6458_v0, %v6456_v52  ;;  %v6463_v55 = vmul.f32 %v6431_v56, %v10386_v23  ;;  %v6401_v29 = vadd.f32 1.0, %v8704_v4  ;;  %v6403_v2 = vadd.f32 1.0, %v8706_v9 }
 0xc2a   : > { %v8710_v59 = vpop.eup %8709  ;;  %8719 = vtanh.f32 %v6347_v51  ;;  %v6344_v38 = vmul.f32 0.7978846, %v6312_v32  ;;  %v6428_v21 = vmul.f32 0.5, %v6396_v42  ;;  %v6430_v46 = vmul.f32 0.5, %v6398_v25 }
 0xc2b   : > { %6677 = vmatmul.mubr.bf16.gmra.mxu1 %v6482_v18  ;;  %v6485_v47 = vpack.c.bf16 %v6463_v55, %v6461_v45  ;;  %v6433_v58 = vmul.f32 0.5, %v6401_v29  ;;  %v6435_v30 = vmul.f32 0.5, %v6403_v2  ;;  %8721 = vtanh.f32 %v6346_v11 }
 0xc2c   : > { %v6462_v23 = vmul.f32 %v6430_v46, %v10381_v26  ;;  %v6402_v31 = vadd.f32 1.0, %v8708_v53  ;;  %v6405_v7 = vadd.f32 1.0, %v8710_v59  ;;  %8723 = vtanh.f32 %v6344_v38 }
 0xc2d   : > { %v8712_v20 = vpop.eup %8711  ;;  %6684 = vmatprep.mubr.bf16.mxu1 %v6485_v47  ;;  %v6465_v17 = vmul.f32 %v6433_v58, %v10408_v28  ;;  %v6467_v3 = vmul.f32 %v6435_v30, %v10421_v60  ;;  %v6460_v35 = vmul.f32 %v6428_v21, %v10354_v40  ;;  %v6400_v9 = vadd.f32 1.0, %v10506_v44 }
 0xc2e   : > { %v6407_v4 = vadd.f32 1.0, %v8712_v20  ;;  %v6434_v10 = vmul.f32 0.5, %v6402_v31  ;;  %v6437_v63 = vmul.f32 0.5, %v6405_v7 }
 0xc2f   : > { %v8714_v22 = vpop.eup %8713  ;;  %v6487_v50 = vpack.c.bf16 %v6467_v3, %v6465_v17  ;;  %v6484_v61 = vpack.c.bf16 %v6462_v23, %v6460_v35  ;;  %v6432_v32 = vmul.f32 0.5, %v6400_v9 }
 0xc30   : > { %v6439_v24 = vmul.f32 0.5, %v6407_v4  ;;  %v8716_v54 = vpop.eup %8715  ;;  %v6466_v62 = vmul.f32 %v6434_v10, %v10418_v48  ;;  %v6469_v40 = vmul.f32 %v6437_v63, %v10448_v8  ;;  %v6404_v36 = vadd.f32 1.0, %v8714_v22 }
 0xc31   : > { %v6406_v60 = vadd.f32 1.0, %v8716_v54  ;;  %v6464_v52 = vmul.f32 %v6432_v32, %v10399_v5 }
 0xc32   : > { %v6471_v28 = vmul.f32 %v6439_v24, %v10469_v1  ;;  %v6436_v55 = vmul.f32 0.5, %v6404_v36 }
 0xc33   : > { %v8718_v26 = vpop.eup %8717  ;;  %6685 = vmatmul.mubr.bf16.gmra.mxu1 %v6484_v61  ;;  %v6438_v53 = vmul.f32 0.5, %v6406_v60  ;;  %v6486_v11 = vpack.c.bf16 %v6466_v62, %v6464_v52 }
 0xc34   : > { %6692 = vmatprep.mubr.bf16.mxu1 %v6487_v50  ;;  %v6409_v34 = vadd.f32 1.0, %v8718_v26  ;;  %v6489_v0 = vpack.c.bf16 %v6471_v28, %v6469_v40  ;;  %v6468_v5 = vmul.f32 %v6436_v55, %v10434_v43  ;;  %v10554_v43 = vld [vmem:[%s722_s20] ss:$0 sm:$0xff] }
 0xc35   : > { %v6470_v8 = vmul.f32 %v6438_v53, %v10465_v33 }
 0xc36   : > { %v6441_v45 = vmul.f32 0.5, %v6409_v34 }
 0xc37   : > { %v8720_v44 = vpop.eup %8719  ;;  %v6488_v38 = vpack.c.bf16 %v6470_v8, %v6468_v5  ;;  %v10695_v8 = vld [vmem:[#allocation7_spill] sm:$0xff] }
 0xc38   : > { %v6411_v56 = vadd.f32 1.0, %v8720_v44  ;;  %v8722_v51 = vpop.eup %8721  ;;  %v6473_v25 = vmul.f32 %v6441_v45, %v10487_v14 }
 0xc39   : > { %v8724_v1 = vpop.eup %8723  ;;  %v6410_v42 = vadd.f32 1.0, %v8722_v51 }
 0xc3a   : > { %v6443_v18 = vmul.f32 0.5, %v6411_v56  ;;  %v6408_v59 = vadd.f32 1.0, %v8724_v1 }
 0xc3b   : > { %6693 = vmatmul.mubr.bf16.gmra.mxu1 %v6486_v11  ;;  %v6442_v2 = vmul.f32 0.5, %v6410_v42 }
 0xc3c   : > { %6700 = vmatprep.mubr.bf16.mxu1 %v6489_v0  ;;  %v6475_v48 = vmul.f32 %v6443_v18, %v10511_v57  ;;  %v6440_v47 = vmul.f32 0.5, %v6408_v59 }
 0xc3d   : > { %v6474_v21 = vmul.f32 %v6442_v2, %v10503_v13 }
 0xc3e   : > { %v6491_v29 = vpack.c.bf16 %v6475_v48, %v6473_v25  ;;  %v6472_v46 = vmul.f32 %v6440_v47, %v10476_v39 }
 0xc40   : > { %v6490_v57 = vpack.c.bf16 %v6474_v21, %v6472_v46  ;;  %v10697_v46 = vld [vmem:[#allocation9_spill] sm:$0xff] }
 0xc43   : > { %6701 = vmatmul.mubr.bf16.gmra.mxu1 %v6488_v38 }
 0xc44   : > { %6708 = vmatprep.mubr.bf16.mxu1 %v6491_v29  ;;  %v10696_v29 = vld [vmem:[#allocation8_spill] sm:$0xff] }
 0xc4b   : > { %6709 = vmatmul.mubr.bf16.gmra.mxu1 %v6490_v57 }
 0xcce   : > { %v7757_v33 = vpop.f32.mrf.mxu1 }
 0xcd0   : > { %v7758_v58 = vpop.f32.mrf.mxu1 }
 0xcd1   : > { %v7759_v30 = vadd.f32 %v7758_v58, %v7757_v33 }
 0xcd2   : > { %v7760_v14 = vpop.f32.mrf.mxu1 }
 0xcd3   : > { %v6717_v20 = vadd.f32 %v7759_v30, %v9998_v37 }
 0xcd4   : > { %v7761_v23 = vpop.f32.mrf.mxu1 }
 0xcd5   : > { %v6740_v31 = vadd.f32 %v10554_v43, %v6717_v20  ;;  %v7762_v13 = vadd.f32 %v7761_v23, %v7760_v14  ;;  %v10698_v20 = vld [vmem:[#allocation10_spill] sm:$0xff] }
 0xcd7   : > { %6756 = vst [vmem:[#allocation2] sm:$0xff] %v6740_v31  ;;  %v6718_v39 = vadd.f32 %v7762_v13, %v10002_v16 }
 0xcd9   : > { %v6741_v17 = vadd.f32 %v10554_v43, %v6718_v39  ;;  %v7763_v3 = vpop.f32.mrf.mxu1 }
 0xcdb   : > { %6757 = vst [vmem:[#allocation2 + $0x8] sm:$0xff] %v6741_v17  ;;  %v7764_v7 = vpop.f32.mrf.mxu1 }
 0xcdc   : > { %v7765_v4 = vadd.f32 %v7764_v7, %v7763_v3  ;;  %v10699_v3 = vld [vmem:[#allocation11_spill] sm:$0xff] }
 0xcdd   : > { %v7766_v35 = vpop.f32.mrf.mxu1 }
 0xcde   : > { %v6719_v9 = vadd.f32 %v7765_v4, %v10005_v15 }
 0xcdf   : > { %v7767_v22 = vpop.f32.mrf.mxu1 }
 0xce0   : > { %v6742_v50 = vadd.f32 %v10554_v43, %v6719_v9  ;;  %v7768_v37 = vadd.f32 %v7767_v22, %v7766_v35 }
 0xce2   : > { %6758 = vst [vmem:[#allocation2 + $0x10] sm:$0xff] %v6742_v50  ;;  %v6720_v24 = vadd.f32 %v7768_v37, %v10010_v19  ;;  %v10700_v50 = vld [vmem:[#allocation12_spill] sm:$0xff] }
 0xce3   : > { %v7769_v54 = vpop.f32.mrf.mxu1 }
 0xce4   : > { %v6743_v61 = vadd.f32 %v10554_v43, %v6720_v24 }
 0xce5   : > { %v7770_v16 = vpop.f32.mrf.mxu1 }
 0xce6   : > { %6759 = vst [vmem:[#allocation2 + $0x18] sm:$0xff] %v6743_v61  ;;  %v7771_v10 = vadd.f32 %v7770_v16, %v7769_v54  ;;  %v10701_v16 = vld [vmem:[#allocation13_spill] sm:$0xff] }
 0xce7   : > { %v7772_v63 = vpop.f32.mrf.mxu1 }
 0xce8   : > { %v6721_v26 = vadd.f32 %v7771_v10, %v10014_v6 }
 0xce9   : > { %v7773_v32 = vpop.f32.mrf.mxu1 }
 0xcea   : > { %v6744_v28 = vadd.f32 %v10554_v43, %v6721_v26  ;;  %v7774_v15 = vadd.f32 %v7773_v32, %v7772_v63 }
 0xceb   : > { %v7775_v60 = vpop.f32.mrf.mxu1 }
 0xcec   : > { %6760 = vst [vmem:[#allocation2 + $0x20] sm:$0xff] %v6744_v28  ;;  %v6722_v62 = vadd.f32 %v7774_v15, %v10021_v41 }
 0xced   : > { %v7776_v40 = vpop.f32.mrf.mxu1 }
 0xcee   : > { %v6745_v19 = vadd.f32 %v10554_v43, %v6722_v62  ;;  %v7777_v34 = vadd.f32 %v7776_v40, %v7775_v60 }
 0xcef   : > { %v7778_v44 = vpop.f32.mrf.mxu1 }
 0xcf0   : > { %6761 = vst [vmem:[#allocation2 + $0x28] sm:$0xff] %v6745_v19  ;;  %v6723_v36 = vadd.f32 %v7777_v34, %v10018_v49 }
 0xcf1   : > { %v7779_v52 = vpop.f32.mrf.mxu1 }
 0xcf2   : > { %v6746_v0 = vadd.f32 %v10554_v43, %v6723_v36  ;;  %v7780_v6 = vadd.f32 %v7779_v52, %v7778_v44 }
 0xcf3   : > { %v7781_v56 = vpop.f32.mrf.mxu1 }
 0xcf4   : > { %6762 = vst [vmem:[#allocation2 + $0x30] sm:$0xff] %v6746_v0  ;;  %v6724_v53 = vadd.f32 %v7780_v6, %v10026_v12 }
 0xcf5   : > { %v7782_v11 = vpop.f32.mrf.mxu1 }
 0xcf6   : > { %v6747_v51 = vadd.f32 %v10554_v43, %v6724_v53  ;;  %v7783_v41 = vadd.f32 %v7782_v11, %v7781_v56 }
 0xcf7   : > { %v7784_v45 = vpop.f32.mrf.mxu1 }
 0xcf8   : > { %6763 = vst [vmem:[#allocation2 + $0x38] sm:$0xff] %v6747_v51  ;;  %v6725_v18 = vadd.f32 %v7783_v41, %v10029_v27 }
 0xcf9   : > { %v7785_v55 = vpop.f32.mrf.mxu1 }
 0xcfa   : > { %v6748_v1 = vadd.f32 %v10554_v43, %v6725_v18  ;;  %v7786_v49 = vadd.f32 %v7785_v55, %v7784_v45 }
 0xcfb   : > { %v7787_v48 = vpop.f32.mrf.mxu1 }
 0xcfc   : > { %6764 = vst [vmem:[#allocation2 + $0x40] sm:$0xff] %v6748_v1  ;;  %v6726_v42 = vadd.f32 %v7786_v49, %v10695_v8 }
 0xcfd   : > { %v7788_v25 = vpop.f32.mrf.mxu1 }
 0xcfe   : > { %v6749_v5 = vadd.f32 %v10554_v43, %v6726_v42  ;;  %v7789_v12 = vadd.f32 %v7788_v25, %v7787_v48 }
 0xcff   : > { %v7790_v59 = vpop.f32.mrf.mxu1 }
 0xd00   : > { %6765 = vst [vmem:[#allocation2 + $0x48] sm:$0xff] %v6749_v5  ;;  %v6727_v2 = vadd.f32 %v7789_v12, %v10696_v29 }
 0xd01   : > { %v7791_v38 = vpop.f32.mrf.mxu1 }
 0xd02   : > { %v6750_v47 = vadd.f32 %v10554_v43, %v6727_v2  ;;  %v7792_v27 = vadd.f32 %v7791_v38, %v7790_v59 }
 0xd03   : > { %v7793_v21 = vpop.f32.mrf.mxu1 }
 0xd04   : > { %6766 = vst [vmem:[#allocation2 + $0x50] sm:$0xff] %v6750_v47  ;;  %v6728_v57 = vadd.f32 %v7792_v27, %v10697_v46 }
 0xd05   : > { %v7794_v33 = vpop.f32.mrf.mxu1 }
 0xd06   : > { %v6751_v58 = vadd.f32 %v10554_v43, %v6728_v57  ;;  %v7795_v30 = vadd.f32 %v7794_v33, %v7793_v21 }
 0xd07   : > { %v7796_v14 = vpop.f32.mrf.mxu1 }
 0xd08   : > { %6767 = vst [vmem:[#allocation2 + $0x58] sm:$0xff] %v6751_v58  ;;  %v6729_v23 = vadd.f32 %v7795_v30, %v10698_v20 }
 0xd09   : > { %v7797_v31 = vpop.f32.mrf.mxu1 }
 0xd0a   : > { %v6752_v13 = vadd.f32 %v10554_v43, %v6729_v23  ;;  %v7798_v39 = vadd.f32 %v7797_v31, %v7796_v14 }
 0xd0b   : > { %v7799_v17 = vpop.f32.mrf.mxu1 }
 0xd0c   : > { %6768 = vst [vmem:[#allocation2 + $0x60] sm:$0xff] %v6752_v13  ;;  %v6730_v7 = vadd.f32 %v7798_v39, %v10699_v3 }
 0xd0d   : > { %v7800_v4 = vpop.f32.mrf.mxu1 }
 0xd0e   : > { %v6753_v35 = vadd.f32 %v10554_v43, %v6730_v7  ;;  %v7801_v9 = vadd.f32 %v7800_v4, %v7799_v17 }
 0xd0f   : > { %v7802_v22 = vpop.f32.mrf.mxu1 }
 0xd10   : > { %6769 = vst [vmem:[#allocation2 + $0x68] sm:$0xff] %v6753_v35  ;;  %v6731_v37 = vadd.f32 %v7801_v9, %v10700_v50 }
 0xd11   : > { %v7803_v24 = vpop.f32.mrf.mxu1 }
 0xd12   : > { %v6754_v54 = vadd.f32 %v10554_v43, %v6731_v37  ;;  %v7804_v61 = vadd.f32 %v7803_v24, %v7802_v22 }
 0xd14   : > { %6770 = vst [vmem:[#allocation2 + $0x70] sm:$0xff] %v6754_v54  ;;  %v6732_v10 = vadd.f32 %v7804_v61, %v10701_v16  ;;  %6775 = sbr.rel (%p7410_p5) target bundleno = 3868 (0xf1c), region = 100 }
 0xd16   : > { %v6755_v63 = vadd.f32 %v10554_v43, %v6732_v10 }
 0xd18   : > { %6771 = vst [vmem:[#allocation2 + $0x78] sm:$0xff] %v6755_v63 }
 0xd19   : > { %v6776_v26 = vld [vmem:[#allocation2] ss:$16 sm:$0x3]  ;;  %v8741_v19 = vld [vmem:[%s10654_s16 + $0x38] sm:$0xff]   ;;  %v8788_v34 = vmov 0.0   ;;  %v8743_v6 = vld [vmem:[%s10654_s16 + $0x28] sm:$0xff]  }
 0xd1a   : > { %v6777_v32 = vld [vmem:[#allocation2] ss:$16 sm:$0xc]  ;;  %8278 = vmatprep.subr.bf16.mxu0 %v8788_v34  ;;  %vm8789_vm2 = vmmov 0   ;;  %v8745_v53 = vld [vmem:[%s10654_s16 + $0x18] sm:$0xff]   ;;  %v8747_v51 = vld [vmem:[%s10654_s16 + $0x8] sm:$0xff]  }
 0xd1b   : > { %v6778_v28 = vor.u32 %v6777_v32, %v6776_v26  ;;  %v6779_v15 = vld [vmem:[#allocation2] ss:$16 sm:$0x30]  ;;  %8279 = vmatpush3.bf16.msra.mxu0 %v8741_v19  ;;  %8294 = vmatprep.mubr.msk.bf16.mxu0 %vm8789_vm2, %v8788_v34 }
 0xd1c   : > { %v6781_v60 = vld [vmem:[#allocation2] ss:$16 sm:$0xc0]  ;;  %8280 = vmatprep.subr.bf16.mxu0 %v8788_v34 }
 0xd1d   : > { %v6780_v62 = vor.u32 %v6779_v15, %v6778_v28  ;;  %v8742_v43 = vld [vmem:[%s10654_s16 + $0x30] sm:$0xff]   ;;  %v8744_v56 = vld [vmem:[%s10654_s16 + $0x20] sm:$0xff]  }
 0xd1e   : > { %v8746_v11 = vld [vmem:[%s10654_s16 + $0x10] sm:$0xff]   ;;  %v8748_v41 = vld [vmem:[%s10654_s16] sm:$0xff]  }
 0xd1f   : > { %v6782_v40 = vor.u32 %v6781_v60, %v6780_v62  ;;  %8281 = vmatpush3.bf16.msra.mxu0 %v8742_v43  ;;  %v7411_v49 = vld [vmem:[%s10702_s21] ss:$0 sm:$0xff] }
 0xd20   : > { %8282 = vmatprep.subr.bf16.mxu0 %v8788_v34  ;;  %v7412_v8 = vld [vmem:[%s10703_s17] ss:$0 sm:$0xff] }
 0xd21   : > { %6785 = vadd.xlane.f32.xlu0 %v6782_v40  ;;  %v7413_v12 = vld [vmem:[%s10704_s6] ss:$0 sm:$0xff] }
 0xd23   : > { %8283 = vmatpush3.bf16.msra.mxu0 %v8743_v6 }
 0xd24   : > { %8284 = vmatprep.subr.bf16.mxu0 %v8788_v34 }
 0xd27   : > { %8285 = vmatpush3.bf16.msra.mxu0 %v8744_v56 }
 0xd28   : > { %8286 = vmatprep.subr.bf16.mxu0 %v8788_v34 }
 0xd2b   : > { %8287 = vmatpush3.bf16.msra.mxu0 %v8745_v53 }
 0xd2c   : > { %8288 = vmatprep.subr.bf16.mxu0 %v8788_v34 }
 0xd2f   : > { %8289 = vmatpush3.bf16.msra.mxu0 %v8746_v11 }
 0xd30   : > { %8290 = vmatprep.subr.bf16.mxu0 %v8788_v34 }
 0xd33   : > { %8291 = vmatpush3.bf16.msra.mxu0 %v8747_v51 }
 0xd34   : > { %8292 = vmatprep.subr.bf16.mxu0 %v8788_v34 }
 0xd37   : > { %8293 = vmatpush3.bf16.msra.mxu0 %v8748_v41 }
 0xdaa   : > { %v6786_v44 = vpop.xlane.xlu0 %6785 }
 0xdab   : > { %v6787_v36 = vmul.f32 0.0078125, %v6786_v44 }
 0xdad   : > { %v6788_v52 = vsub.f32 %v6782_v40, %v6787_v36 }
 0xdaf   : > { %v6789_v0 = vmul.f32 %v6788_v52, %v6788_v52 }
 0xdb1   : > { %6790 = vadd.xlane.f32.xlu0 %v6789_v0 }
 0xe3a   : > { %v6791_v45 = vpop.xlane.xlu0 %6790 }
 0xe3b   : > { %v6792_v18 = vmul.f32 0.0078125, %v6791_v45 }
 0xe3d   : > { %v6793_v55 = vadd.f32 1e-05, %v6792_v18 }
 0xe3f   : > { %8749 = vrsqrt.f32 %v6793_v55 }
 0xe4c   : > { %v8750_v1 = vpop.eup %8749 }
 0xe4d   : > { %v6795_v48 = vmul.f32 %v8750_v1, %v6788_v52 }
 0xe4f   : > { %v6802_v42 = vmul.f32 %v7411_v49, %v6795_v48 }
 0xe51   : > { %v6809_v25 = vadd.f32 %v7412_v8, %v6802_v42 }
 0xe53   : > { %v6810_v5 = vpack.c.bf16 %v6809_v25, %v6809_v25 }
 0xe55   : > { %8295 = vmatmul.mubr.bf16.vlgmr.msra.gmra.mxu0 %v6810_v5 }
 0xf15   : > { %v6916_v59 = vpop.f32.mrf.mxu0 }
 0xf16   : > { %v6917_v29 = vadd.f32 %v7413_v12, %v6916_v59 }
 0xf17   : > { %v8296_v2 = vpop.f32.mrf.mxu0 }
 0xf18   : > { %6922 = vst.msk [vmem:[#allocation3] sm:$0xff] %vm2528_vm1, %v6917_v29 }
 0xf19   : > { %v6919_v38 = vpop.f32.mrf.mxu0 }
 0xf1b   : > { %v8297_v47 = vpop.f32.mrf.mxu0 }
 0xf1c PF: > { %p8319_p6 = scmp.eq.s32.totalorder %s8892_s28, 1  ;;  %s8790_s30 = smov [#allocation3]  }
 0xf1d   : > { %s6930_s27 = sshll.u32 %s8790_s30, 4  ;;  %s6931_s27 = int_to_ptr.vmem [resolvable:$true] %s6930_s27 }
 0xf1e   : > { %s8751_s22 = scalar_lea.vmem %s6931_s27, 128  ;;  %p8758_p10 = scmp.lt.s32.totalorder %s6931_s27, %s6931_s27 }
 0xf1f   : > { %p8752_p7 = scmp.ne.s32.totalorder %s6931_s27, %s8751_s22  ;;  %p8759_p11 = scmp.lt.s32.totalorder %s8751_s22, %s8751_s22 }
 0xf21   : > { %p8753_p8 = pnand %p8752_p7, %p8319_p6  ;;  %p8760_p12 = por %p8759_p11, %p8758_p10 }
 0xf23   : > { %p8754_p9 = pneg %p8753_p8 }
 0xf25   : > { %p8761_p13 = pnand %p8760_p12, %p8754_p9 }
 0xf27   : > { %8764 = shalt.err (!%p8761_p13)
}
 0xf28   : > { %s10705_s18 = sld [smem:[#allocation21_spill]] }
 0xf2e   : > { %8316 = dma.vmem_to_hbm [thread:$0]  (%p8319_p6), %s6931_s27, 128, %s10705_s18, [#allocation4]  }
 0xf2f   : > { %8780 = dma.done.wait (%p8319_p6), [#allocation4], 128  }
 0xf30   : > { %8782 = vsyncadd (%p8319_p6), [#allocation4], 4294967168 }
 0xf31 PF: > { %s10706_s15 = sld [smem:[#allocation6_spill]] }
 0xf37   : > { %s29_s27 = sadd.s32 1, %s10706_s15  }
 0xf38   : > { %p26_p0 = scmp.ge.s32.totalorder %s29_s27, 4  }
 0xf3a   :  { %28 = sbr.rel (!%p26_p0) target bundleno = 10 (0xa), region = 163 }
 0xf3f   :  { %6943 = vsyncpa [#allocation4], 1 }
 0xf40   :  { %6945 = vsyncpa [#allocation4 + $0x1], 1 }

</bundles_post_ra>
